<compile_context>
chip_gen: v5e
topology: v5e:2x2
jax: 0.10.0
libtpu: 0.0.40
codegen_flags: <defaults>
</compile_context>

<pallas_src>
import jax
import jax.numpy as jnp
from jax import lax
from jax.experimental import pallas as pl
from jax.experimental.pallas import tpu as pltpu


_VMEM = pl.BlockSpec(memory_space=pltpu.MemorySpace.VMEM)


# ----------------------------------------------------------------------------
# Fused Pallas kernel (both LSTM stacks + classifier)
# ----------------------------------------------------------------------------
def make_fused_kernel(n_layer, T, B, H):
    """Build the fused kernel. Ref layout (positional):
       inputs : xv (T*B, D), xm (T*B, D),
                then per layer l: wih_v (Din,4H), whh_v (H,4H), b_v (1,4H),
                                  wih_m (Din,4H), whh_m (H,4H), b_m (1,4H),
                then wcls (H, C), bcls (1, C)
       outputs: y (B, C)
       scratch: gxv (T*B,4H), gxm (T*B,4H), hv_buf (T*B,H), hm_buf (T*B,H)
    Gate order in all weights/biases is pre-permuted to [i, f, o, g]."""
    H3 = 3 * H

    def kernel(*refs):
        xv_ref, xm_ref = refs[0], refs[1]
        pos = 2
        layer_refs = []
        for _ in range(n_layer):
            layer_refs.append(refs[pos:pos + 6])
            pos += 6
        wcls_ref, bcls_ref = refs[pos], refs[pos + 1]
        y_ref = refs[pos + 2]
        gxv_buf, gxm_buf, hv_buf, hm_buf = refs[pos + 3:pos + 7]

        hv = cv = hm = cm = None
        for l, (wih_v, whh_v, b_v, wih_m, whh_m, b_m) in enumerate(layer_refs):
            # ---- input projection hoisted out of the recurrence -------------
            # One big (T*B, Din) @ (Din, 4H) matmul per stack, bias folded in.
            if l == 0:
                xin_v, xin_m = xv_ref[...], xm_ref[...]
            else:
                xin_v, xin_m = hv_buf[...], hm_buf[...]
            gxv_buf[...] = (jnp.dot(xin_v, wih_v[...],
                                    preferred_element_type=jnp.float32)
                            + b_v[...])
            gxm_buf[...] = (jnp.dot(xin_m, wih_m[...],
                                    preferred_element_type=jnp.float32)
                            + b_m[...])

            whh_v_val = whh_v[...]
            whh_m_val = whh_m[...]
            last_layer = (l == n_layer - 1)

            # ---- t = 0 peeled: h0 = c0 = 0 -> no h@W_hh, no f*c -------------
            row0 = pl.ds(0, B)
            g0v = gxv_buf[row0, :]
            g0m = gxm_buf[row0, :]
            s0v = jax.nn.sigmoid(g0v[:, :H3])
            t0v = jnp.tanh(g0v[:, H3:])
            s0m = jax.nn.sigmoid(g0m[:, :H3])
            t0m = jnp.tanh(g0m[:, H3:])
            cv = s0v[:, :H] * t0v
            hv = s0v[:, 2 * H:H3] * jnp.tanh(cv)
            cm = s0m[:, :H] * t0m
            hm = s0m[:, 2 * H:H3] * jnp.tanh(cm)
            if not last_layer:
                hv_buf[row0, :] = hv
                hm_buf[row0, :] = hm

            # ---- interleaved val/mask recurrence over t = 1 .. T-1 ----------
            def step(t, carry, _whh_v=whh_v_val, _whh_m=whh_m_val,
                     _last=last_layer):
                hv, cv, hm, cm = carry
                row = pl.ds(pl.multiple_of(t * B, B), B)
                # Only the serial h @ W_hh remains on the critical path; the
                # two stacks are independent chains and pipeline on the MXU.
                gv = gxv_buf[row, :] + jnp.dot(
                    hv, _whh_v, preferred_element_type=jnp.float32)
                gm = gxm_buf[row, :] + jnp.dot(
                    hm, _whh_m, preferred_element_type=jnp.float32)
                # Gates pre-ordered [i, f, o, g]: one sigmoid slab + one tanh.
                sv = jax.nn.sigmoid(gv[:, :H3])
                g_tanh_v = jnp.tanh(gv[:, H3:])
                sm = jax.nn.sigmoid(gm[:, :H3])
                g_tanh_m = jnp.tanh(gm[:, H3:])
                cv = sv[:, H:2 * H] * cv + sv[:, :H] * g_tanh_v
                hv = sv[:, 2 * H:H3] * jnp.tanh(cv)
                cm = sm[:, H:2 * H] * cm + sm[:, :H] * g_tanh_m
                hm = sm[:, 2 * H:H3] * jnp.tanh(cm)
                if not _last:
                    # Next layer's input; stays in VMEM scratch, never hits HBM.
                    hv_buf[row, :] = hv
                    hm_buf[row, :] = hm
                return (hv, cv, hm, cm)

            hv, cv, hm, cm = lax.fori_loop(
                1, T, step, (hv, cv, hm, cm), unroll=True)

        # ---- classifier fused in: y = sigmoid((h_val * h_mask) @ W + b) -----
        z = hv * hm
        logits = (jnp.dot(z, wcls_ref[...], preferred_element_type=jnp.float32)
                  + bcls_ref[...])
        y_ref[...] = jax.nn.sigmoid(logits)

    return kernel


# ----------------------------------------------------------------------------
# Wrappers
# ----------------------------------------------------------------------------
def _reorder_gates(a, axis=0):
    """PyTorch gate blocks [i, f, g, o] -> kernel order [i, f, o, g]."""
    i, f, g, o = jnp.split(a, 4, axis=axis)
    return jnp.concatenate([i, f, o, g], axis=axis)


def _prep_layer(p):
    """PyTorch layer params -> (W_ih (Din,4H), W_hh (H,4H), b (1,4H)),
    gate-reordered and pre-transposed so gate matmuls are plain x @ W."""
    wih = jnp.transpose(_reorder_gates(p["w_ih"])).astype(jnp.float32)
    whh = jnp.transpose(_reorder_gates(p["w_hh"])).astype(jnp.float32)
    b = _reorder_gates(p["b_ih"] + p["b_hh"]).reshape(1, -1).astype(jnp.float32)
    return wih, whh, b


def sepsis_lstm_forward(x_val, x_mask, params_val, params_mask, cls_w, cls_b):
    """x_val, x_mask: (B, T, in_dim) batch_first, like the PyTorch module.
    Returns y: (B, n_classes)."""
    B, T, _ = x_val.shape
    n_layer = len(params_val)
    H = params_val[0]["w_hh"].shape[1]
    C = cls_w.shape[0]

    # Time-major flattened layout: row t*B + b  <->  (timestep t, batch b).
    xv = jnp.swapaxes(x_val, 0, 1).reshape(T * B, -1).astype(jnp.float32)
    xm = jnp.swapaxes(x_mask, 0, 1).reshape(T * B, -1).astype(jnp.float32)

    args = [xv, xm]
    for pv, pm in zip(params_val, params_mask):
        args.extend(_prep_layer(pv))
        args.extend(_prep_layer(pm))
    args.append(jnp.transpose(cls_w).astype(jnp.float32))    # (H, C)
    args.append(cls_b.reshape(1, C).astype(jnp.float32))     # (1, C)

    kernel = make_fused_kernel(n_layer, T, B, H)
    return pl.pallas_call(
        kernel,
        out_shape=jax.ShapeDtypeStruct((B, C), jnp.float32),
        in_specs=[_VMEM] * len(args),
        out_specs=_VMEM,
        scratch_shapes=[
            pltpu.VMEM((T * B, 4 * H), jnp.float32),   # gxv_buf
            pltpu.VMEM((T * B, 4 * H), jnp.float32),   # gxm_buf
            pltpu.VMEM((T * B, H), jnp.float32),       # hv_buf (next-layer input)
            pltpu.VMEM((T * B, H), jnp.float32),       # hm_buf
        ],
    )(*args)


# ----------------------------------------------------------------------------
# Pure-JAX reference (for correctness check)
# ----------------------------------------------------------------------------
def ref_lstm_layer(x_bf, w_ih, w_hh, b_ih, b_hh):
    B, T, _ = x_bf.shape
    H = w_hh.shape[1]

    def cell(carry, x_t):
        h, c = carry
        gates = x_t @ w_ih.T + h @ w_hh.T + b_ih + b_hh
        i, f, g, o = jnp.split(gates, 4, axis=-1)
        c = jax.nn.sigmoid(f) * c + jax.nn.sigmoid(i) * jnp.tanh(g)
        h = jax.nn.sigmoid(o) * jnp.tanh(c)
        return (h, c), h

    h0 = jnp.zeros((B, H), jnp.float32)
    c0 = jnp.zeros((B, H), jnp.float32)
    (h, _), outs = lax.scan(cell, (h0, c0), jnp.swapaxes(x_bf, 0, 1))
    return jnp.swapaxes(outs, 0, 1), h


def ref_forward(x_val, x_mask, params_val, params_mask, cls_w, cls_b):
    def run(x, params):
        h = None
        for p in params:
            x, h = ref_lstm_layer(x, p["w_ih"], p["w_hh"], p["b_ih"], p["b_hh"])
        return h
    h_val = run(x_val, params_val)
    h_mask = run(x_mask, params_mask)
    return jax.nn.sigmoid((h_val * h_mask) @ cls_w.T + cls_b)


# ----------------------------------------------------------------------------
# Deterministic parameter init (mimics PyTorch uniform(-1/sqrt(H), 1/sqrt(H)))
# ----------------------------------------------------------------------------
def init_lstm_params(key, in_dim, hidden_dim, n_layer):
    k = 1.0 / jnp.sqrt(hidden_dim)
    params = []
    for layer in range(n_layer):
        din = in_dim if layer == 0 else hidden_dim
        key, k1, k2, k3, k4 = jax.random.split(key, 5)
        params.append({
            "w_ih": jax.random.uniform(k1, (4 * hidden_dim, din), jnp.float32, -k, k),
            "w_hh": jax.random.uniform(k2, (4 * hidden_dim, hidden_dim), jnp.float32, -k, k),
            "b_ih": jax.random.uniform(k3, (4 * hidden_dim,), jnp.float32, -k, k),
            "b_hh": jax.random.uniform(k4, (4 * hidden_dim,), jnp.float32, -k, k),
        })
    return key, params


if __name__ == "__main__":
    # Small shapes consistent with the module: x is a pair of (B, T, in_dim).
    B, T, IN_DIM, HIDDEN, N_LAYER, N_CLASSES = 8, 8, 8, 32, 2, 2

    key = jax.random.PRNGKey(0)
    key, kx1, kx2 = jax.random.split(key, 3)
    x_val = jax.random.normal(kx1, (B, T, IN_DIM), jnp.float32)
    x_mask = (jax.random.uniform(kx2, (B, T, IN_DIM)) > 0.5).astype(jnp.float32)

    key, params_val = init_lstm_params(key, IN_DIM, HIDDEN, N_LAYER)
    key, params_mask = init_lstm_params(key, IN_DIM, HIDDEN, N_LAYER)
    key, kw, kb = jax.random.split(key, 3)
    kc = 1.0 / jnp.sqrt(HIDDEN)
    cls_w = jax.random.uniform(kw, (N_CLASSES, HIDDEN), jnp.float32, -kc, kc)
    cls_b = jax.random.uniform(kb, (N_CLASSES,), jnp.float32, -kc, kc)

    forward = jax.jit(sepsis_lstm_forward)
    y = forward(x_val, x_mask, params_val, params_mask, cls_w, cls_b)
    y = jax.block_until_ready(y)

    y_ref = ref_forward(x_val, x_mask, params_val, params_mask, cls_w, cls_b)
    assert y.shape == (B, N_CLASSES)
    assert jnp.allclose(y, y_ref, atol=2e-5, rtol=2e-5), (
        f"mismatch: max abs err {jnp.max(jnp.abs(y - y_ref))}")

    print("KERNEL_OK")
</pallas_src>

<mosaic_0001>
module attributes {stable_mosaic.version = 11 : i64} {
  func.func @kernel(%arg0: memref<64x8xf32, #tpu.memory_space<vmem>>, %arg1: memref<64x8xf32, #tpu.memory_space<vmem>>, %arg2: memref<8x128xf32, #tpu.memory_space<vmem>>, %arg3: memref<32x128xf32, #tpu.memory_space<vmem>>, %arg4: memref<1x128xf32, #tpu.memory_space<vmem>>, %arg5: memref<8x128xf32, #tpu.memory_space<vmem>>, %arg6: memref<32x128xf32, #tpu.memory_space<vmem>>, %arg7: memref<1x128xf32, #tpu.memory_space<vmem>>, %arg8: memref<32x128xf32, #tpu.memory_space<vmem>>, %arg9: memref<32x128xf32, #tpu.memory_space<vmem>>, %arg10: memref<1x128xf32, #tpu.memory_space<vmem>>, %arg11: memref<32x128xf32, #tpu.memory_space<vmem>>, %arg12: memref<32x128xf32, #tpu.memory_space<vmem>>, %arg13: memref<1x128xf32, #tpu.memory_space<vmem>>, %arg14: memref<32x2xf32, #tpu.memory_space<vmem>>, %arg15: memref<1x2xf32, #tpu.memory_space<vmem>>, %arg16: memref<8x2xf32, #tpu.memory_space<vmem>>, %arg17: memref<64x128xf32, #tpu.memory_space<vmem>>, %arg18: memref<64x128xf32, #tpu.memory_space<vmem>>, %arg19: memref<64x32xf32, #tpu.memory_space<vmem>>, %arg20: memref<64x32xf32, #tpu.memory_space<vmem>>) attributes {dimension_semantics = [], scalar_prefetch = 0 : i64, scratch_operands = 4 : i64, tpu.core_type = #tpu.core_type<tc>} {
    %c0 = arith.constant 0 : index
    %c0_0 = arith.constant 0 : index
    %0 = vector.load %arg0[%c0, %c0_0] : memref<64x8xf32, #tpu.memory_space<vmem>>, vector<64x8xf32>
    %c0_1 = arith.constant 0 : index
    %c0_2 = arith.constant 0 : index
    %1 = vector.load %arg1[%c0_1, %c0_2] : memref<64x8xf32, #tpu.memory_space<vmem>>, vector<64x8xf32>
    %c0_3 = arith.constant 0 : index
    %c0_4 = arith.constant 0 : index
    %2 = vector.load %arg2[%c0_3, %c0_4] : memref<8x128xf32, #tpu.memory_space<vmem>>, vector<8x128xf32>
    %cst = arith.constant dense<0.000000e+00> : vector<64x128xf32>
    %3 = tpu.matmul %0, %2, %cst {dimension_numbers = #tpu.dot_dimension_numbers<[1], [0], [0], [1], [0, 0, 1, 1], [], []>} : vector<64x8xf32>, vector<8x128xf32>, vector<64x128xf32> -> vector<64x128xf32>
    %c0_5 = arith.constant 0 : index
    %c0_6 = arith.constant 0 : index
    %4 = vector.load %arg4[%c0_5, %c0_6] : memref<1x128xf32, #tpu.memory_space<vmem>>, vector<1x128xf32>
    %5 = vector.broadcast %4 : vector<1x128xf32> to vector<64x128xf32>
    %6 = arith.addf %3, %5 : vector<64x128xf32>
    %c0_7 = arith.constant 0 : index
    %c0_8 = arith.constant 0 : index
    %7 = vector.load %arg17[%c0_7, %c0_8] : memref<64x128xf32, #tpu.memory_space<vmem>>, vector<64x128xf32>
    tpu.vector_store %arg17[%c0_7, %c0_8], %6 {strides = array<i32>} : memref<64x128xf32, #tpu.memory_space<vmem>>, vector<64x128xf32>,
    %c0_9 = arith.constant 0 : index
    %c0_10 = arith.constant 0 : index
    %8 = vector.load %arg5[%c0_9, %c0_10] : memref<8x128xf32, #tpu.memory_space<vmem>>, vector<8x128xf32>
    %cst_11 = arith.constant dense<0.000000e+00> : vector<64x128xf32>
    %9 = tpu.matmul %1, %8, %cst_11 {dimension_numbers = #tpu.dot_dimension_numbers<[1], [0], [0], [1], [0, 0, 1, 1], [], []>} : vector<64x8xf32>, vector<8x128xf32>, vector<64x128xf32> -> vector<64x128xf32>
    %c0_12 = arith.constant 0 : index
    %c0_13 = arith.constant 0 : index
    %10 = vector.load %arg7[%c0_12, %c0_13] : memref<1x128xf32, #tpu.memory_space<vmem>>, vector<1x128xf32>
    %11 = vector.broadcast %10 : vector<1x128xf32> to vector<64x128xf32>
    %12 = arith.addf %9, %11 : vector<64x128xf32>
    %c0_14 = arith.constant 0 : index
    %c0_15 = arith.constant 0 : index
    %13 = vector.load %arg18[%c0_14, %c0_15] : memref<64x128xf32, #tpu.memory_space<vmem>>, vector<64x128xf32>
    tpu.vector_store %arg18[%c0_14, %c0_15], %12 {strides = array<i32>} : memref<64x128xf32, #tpu.memory_space<vmem>>, vector<64x128xf32>,
    %c0_16 = arith.constant 0 : index
    %c0_17 = arith.constant 0 : index
    %14 = vector.load %arg3[%c0_16, %c0_17] : memref<32x128xf32, #tpu.memory_space<vmem>>, vector<32x128xf32>
    %c0_18 = arith.constant 0 : index
    %c0_19 = arith.constant 0 : index
    %15 = vector.load %arg6[%c0_18, %c0_19] : memref<32x128xf32, #tpu.memory_space<vmem>>, vector<32x128xf32>
    %c0_20 = arith.constant 0 : index
    %c0_21 = arith.constant 0 : index
    %16 = vector.load %arg17[%c0_20, %c0_21] : memref<64x128xf32, #tpu.memory_space<vmem>>, vector<8x128xf32>
    %c0_22 = arith.constant 0 : index
    %c0_23 = arith.constant 0 : index
    %17 = vector.load %arg18[%c0_22, %c0_23] : memref<64x128xf32, #tpu.memory_space<vmem>>, vector<8x128xf32>
    %18 = vector.extract_strided_slice %16 {offsets = [0, 0], sizes = [8, 96], strides = [1, 1]} : vector<8x128xf32> to vector<8x96xf32>
    %19 = arith.negf %18 : vector<8x96xf32>
    %20 = math.exp %19 : vector<8x96xf32>
    %cst_24 = arith.constant 1.000000e+00 : f32
    %21 = vector.broadcast %cst_24 : f32 to vector<8x96xf32>
    %22 = arith.addf %21, %20 : vector<8x96xf32>
    %23 = arith.divf %21, %22 : vector<8x96xf32>
    %24 = vector.extract_strided_slice %16 {offsets = [0, 96], sizes = [8, 32], strides = [1, 1]} : vector<8x128xf32> to vector<8x32xf32>
    %25 = math.tanh %24 : vector<8x32xf32>
    %26 = vector.extract_strided_slice %17 {offsets = [0, 0], sizes = [8, 96], strides = [1, 1]} : vector<8x128xf32> to vector<8x96xf32>
    %27 = arith.negf %26 : vector<8x96xf32>
    %28 = math.exp %27 : vector<8x96xf32>
    %cst_25 = arith.constant 1.000000e+00 : f32
    %29 = vector.broadcast %cst_25 : f32 to vector<8x96xf32>
    %30 = arith.addf %29, %28 : vector<8x96xf32>
    %31 = arith.divf %29, %30 : vector<8x96xf32>
    %32 = vector.extract_strided_slice %17 {offsets = [0, 96], sizes = [8, 32], strides = [1, 1]} : vector<8x128xf32> to vector<8x32xf32>
    %33 = math.tanh %32 : vector<8x32xf32>
    %34 = vector.extract_strided_slice %23 {offsets = [0, 0], sizes = [8, 32], strides = [1, 1]} : vector<8x96xf32> to vector<8x32xf32>
    %35 = arith.mulf %34, %25 : vector<8x32xf32>
    %36 = vector.extract_strided_slice %23 {offsets = [0, 64], sizes = [8, 32], strides = [1, 1]} : vector<8x96xf32> to vector<8x32xf32>
    %37 = math.tanh %35 : vector<8x32xf32>
    %38 = arith.mulf %36, %37 : vector<8x32xf32>
    %39 = vector.extract_strided_slice %31 {offsets = [0, 0], sizes = [8, 32], strides = [1, 1]} : vector<8x96xf32> to vector<8x32xf32>
    %40 = arith.mulf %39, %33 : vector<8x32xf32>
    %41 = vector.extract_strided_slice %31 {offsets = [0, 64], sizes = [8, 32], strides = [1, 1]} : vector<8x96xf32> to vector<8x32xf32>
    %42 = math.tanh %40 : vector<8x32xf32>
    %43 = arith.mulf %41, %42 : vector<8x32xf32>
    %c0_26 = arith.constant 0 : index
    %c0_27 = arith.constant 0 : index
    %44 = vector.load %arg19[%c0_26, %c0_27] : memref<64x32xf32, #tpu.memory_space<vmem>>, vector<8x32xf32>
    tpu.vector_store %arg19[%c0_26, %c0_27], %38 {strides = array<i32>} : memref<64x32xf32, #tpu.memory_space<vmem>>, vector<8x32xf32>,
    %c0_28 = arith.constant 0 : index
    %c0_29 = arith.constant 0 : index
    %45 = vector.load %arg20[%c0_28, %c0_29] : memref<64x32xf32, #tpu.memory_space<vmem>>, vector<8x32xf32>
    tpu.vector_store %arg20[%c0_28, %c0_29], %43 {strides = array<i32>} : memref<64x32xf32, #tpu.memory_space<vmem>>, vector<8x32xf32>,
    %c1_i32 = arith.constant 1 : i32
    %c8_i32 = arith.constant 8 : i32
    %46 = arith.muli %c1_i32, %c8_i32 : i32
    %47 = tpu.assume_multiple %46, 8 : i32
    %48 = arith.index_cast %47 : i32 to index
    %c0_30 = arith.constant 0 : index
    %49 = vector.load %arg17[%48, %c0_30] : memref<64x128xf32, #tpu.memory_space<vmem>>, vector<8x128xf32>
    %cst_31 = arith.constant dense<0.000000e+00> : vector<8x128xf32>
    %50 = tpu.matmul %38, %14, %cst_31 {dimension_numbers = #tpu.dot_dimension_numbers<[1], [0], [0], [1], [0, 0, 1, 1], [], []>} : vector<8x32xf32>, vector<32x128xf32>, vector<8x128xf32> -> vector<8x128xf32>
    %51 = arith.addf %49, %50 : vector<8x128xf32>
    %52 = arith.index_cast %47 : i32 to index
    %c0_32 = arith.constant 0 : index
    %53 = vector.load %arg18[%52, %c0_32] : memref<64x128xf32, #tpu.memory_space<vmem>>, vector<8x128xf32>
    %cst_33 = arith.constant dense<0.000000e+00> : vector<8x128xf32>
    %54 = tpu.matmul %43, %15, %cst_33 {dimension_numbers = #tpu.dot_dimension_numbers<[1], [0], [0], [1], [0, 0, 1, 1], [], []>} : vector<8x32xf32>, vector<32x128xf32>, vector<8x128xf32> -> vector<8x128xf32>
    %55 = arith.addf %53, %54 : vector<8x128xf32>
    %56 = vector.extract_strided_slice %51 {offsets = [0, 0], sizes = [8, 96], strides = [1, 1]} : vector<8x128xf32> to vector<8x96xf32>
    %57 = arith.negf %56 : vector<8x96xf32>
    %58 = math.exp %57 : vector<8x96xf32>
    %cst_34 = arith.constant 1.000000e+00 : f32
    %59 = vector.broadcast %cst_34 : f32 to vector<8x96xf32>
    %60 = arith.addf %59, %58 : vector<8x96xf32>
    %61 = arith.divf %59, %60 : vector<8x96xf32>
    %62 = vector.extract_strided_slice %51 {offsets = [0, 96], sizes = [8, 32], strides = [1, 1]} : vector<8x128xf32> to vector<8x32xf32>
    %63 = math.tanh %62 : vector<8x32xf32>
    %64 = vector.extract_strided_slice %55 {offsets = [0, 0], sizes = [8, 96], strides = [1, 1]} : vector<8x128xf32> to vector<8x96xf32>
    %65 = arith.negf %64 : vector<8x96xf32>
    %66 = math.exp %65 : vector<8x96xf32>
    %cst_35 = arith.constant 1.000000e+00 : f32
    %67 = vector.broadcast %cst_35 : f32 to vector<8x96xf32>
    %68 = arith.addf %67, %66 : vector<8x96xf32>
    %69 = arith.divf %67, %68 : vector<8x96xf32>
    %70 = vector.extract_strided_slice %55 {offsets = [0, 96], sizes = [8, 32], strides = [1, 1]} : vector<8x128xf32> to vector<8x32xf32>
    %71 = math.tanh %70 : vector<8x32xf32>
    %72 = vector.extract_strided_slice %61 {offsets = [0, 32], sizes = [8, 32], strides = [1, 1]} : vector<8x96xf32> to vector<8x32xf32>
    %73 = arith.mulf %72, %35 : vector<8x32xf32>
    %74 = vector.extract_strided_slice %61 {offsets = [0, 0], sizes = [8, 32], strides = [1, 1]} : vector<8x96xf32> to vector<8x32xf32>
    %75 = arith.mulf %74, %63 : vector<8x32xf32>
    %76 = arith.addf %73, %75 : vector<8x32xf32>
    %77 = vector.extract_strided_slice %61 {offsets = [0, 64], sizes = [8, 32], strides = [1, 1]} : vector<8x96xf32> to vector<8x32xf32>
    %78 = math.tanh %76 : vector<8x32xf32>
    %79 = arith.mulf %77, %78 : vector<8x32xf32>
    %80 = vector.extract_strided_slice %69 {offsets = [0, 32], sizes = [8, 32], strides = [1, 1]} : vector<8x96xf32> to vector<8x32xf32>
    %81 = arith.mulf %80, %40 : vector<8x32xf32>
    %82 = vector.extract_strided_slice %69 {offsets = [0, 0], sizes = [8, 32], strides = [1, 1]} : vector<8x96xf32> to vector<8x32xf32>
    %83 = arith.mulf %82, %71 : vector<8x32xf32>
    %84 = arith.addf %81, %83 : vector<8x32xf32>
    %85 = vector.extract_strided_slice %69 {offsets = [0, 64], sizes = [8, 32], strides = [1, 1]} : vector<8x96xf32> to vector<8x32xf32>
    %86 = math.tanh %84 : vector<8x32xf32>
    %87 = arith.mulf %85, %86 : vector<8x32xf32>
    %88 = arith.index_cast %47 : i32 to index
    %c0_36 = arith.constant 0 : index
    %89 = vector.load %arg19[%88, %c0_36] : memref<64x32xf32, #tpu.memory_space<vmem>>, vector<8x32xf32>
    tpu.vector_store %arg19[%88, %c0_36], %79 {strides = array<i32>} : memref<64x32xf32, #tpu.memory_space<vmem>>, vector<8x32xf32>,
    %90 = arith.index_cast %47 : i32 to index
    %c0_37 = arith.constant 0 : index
    %91 = vector.load %arg20[%90, %c0_37] : memref<64x32xf32, #tpu.memory_space<vmem>>, vector<8x32xf32>
    tpu.vector_store %arg20[%90, %c0_37], %87 {strides = array<i32>} : memref<64x32xf32, #tpu.memory_space<vmem>>, vector<8x32xf32>,
    %c2_i32 = arith.constant 2 : i32
    %c8_i32_38 = arith.constant 8 : i32
    %92 = arith.muli %c2_i32, %c8_i32_38 : i32
    %93 = tpu.assume_multiple %92, 8 : i32
    %94 = arith.index_cast %93 : i32 to index
    %c0_39 = arith.constant 0 : index
    %95 = vector.load %arg17[%94, %c0_39] : memref<64x128xf32, #tpu.memory_space<vmem>>, vector<8x128xf32>
    %cst_40 = arith.constant dense<0.000000e+00> : vector<8x128xf32>
    %96 = tpu.matmul %79, %14, %cst_40 {dimension_numbers = #tpu.dot_dimension_numbers<[1], [0], [0], [1], [0, 0, 1, 1], [], []>} : vector<8x32xf32>, vector<32x128xf32>, vector<8x128xf32> -> vector<8x128xf32>
    %97 = arith.addf %95, %96 : vector<8x128xf32>
    %98 = arith.index_cast %93 : i32 to index
    %c0_41 = arith.constant 0 : index
    %99 = vector.load %arg18[%98, %c0_41] : memref<64x128xf32, #tpu.memory_space<vmem>>, vector<8x128xf32>
    %cst_42 = arith.constant dense<0.000000e+00> : vector<8x128xf32>
    %100 = tpu.matmul %87, %15, %cst_42 {dimension_numbers = #tpu.dot_dimension_numbers<[1], [0], [0], [1], [0, 0, 1, 1], [], []>} : vector<8x32xf32>, vector<32x128xf32>, vector<8x128xf32> -> vector<8x128xf32>
    %101 = arith.addf %99, %100 : vector<8x128xf32>
    %102 = vector.extract_strided_slice %97 {offsets = [0, 0], sizes = [8, 96], strides = [1, 1]} : vector<8x128xf32> to vector<8x96xf32>
    %103 = arith.negf %102 : vector<8x96xf32>
    %104 = math.exp %103 : vector<8x96xf32>
    %cst_43 = arith.constant 1.000000e+00 : f32
    %105 = vector.broadcast %cst_43 : f32 to vector<8x96xf32>
    %106 = arith.addf %105, %104 : vector<8x96xf32>
    %107 = arith.divf %105, %106 : vector<8x96xf32>
    %108 = vector.extract_strided_slice %97 {offsets = [0, 96], sizes = [8, 32], strides = [1, 1]} : vector<8x128xf32> to vector<8x32xf32>
    %109 = math.tanh %108 : vector<8x32xf32>
    %110 = vector.extract_strided_slice %101 {offsets = [0, 0], sizes = [8, 96], strides = [1, 1]} : vector<8x128xf32> to vector<8x96xf32>
    %111 = arith.negf %110 : vector<8x96xf32>
    %112 = math.exp %111 : vector<8x96xf32>
    %cst_44 = arith.constant 1.000000e+00 : f32
    %113 = vector.broadcast %cst_44 : f32 to vector<8x96xf32>
    %114 = arith.addf %113, %112 : vector<8x96xf32>
    %115 = arith.divf %113, %114 : vector<8x96xf32>
    %116 = vector.extract_strided_slice %101 {offsets = [0, 96], sizes = [8, 32], strides = [1, 1]} : vector<8x128xf32> to vector<8x32xf32>
    %117 = math.tanh %116 : vector<8x32xf32>
    %118 = vector.extract_strided_slice %107 {offsets = [0, 32], sizes = [8, 32], strides = [1, 1]} : vector<8x96xf32> to vector<8x32xf32>
    %119 = arith.mulf %118, %76 : vector<8x32xf32>
    %120 = vector.extract_strided_slice %107 {offsets = [0, 0], sizes = [8, 32], strides = [1, 1]} : vector<8x96xf32> to vector<8x32xf32>
    %121 = arith.mulf %120, %109 : vector<8x32xf32>
    %122 = arith.addf %119, %121 : vector<8x32xf32>
    %123 = vector.extract_strided_slice %107 {offsets = [0, 64], sizes = [8, 32], strides = [1, 1]} : vector<8x96xf32> to vector<8x32xf32>
    %124 = math.tanh %122 : vector<8x32xf32>
    %125 = arith.mulf %123, %124 : vector<8x32xf32>
    %126 = vector.extract_strided_slice %115 {offsets = [0, 32], sizes = [8, 32], strides = [1, 1]} : vector<8x96xf32> to vector<8x32xf32>
    %127 = arith.mulf %126, %84 : vector<8x32xf32>
    %128 = vector.extract_strided_slice %115 {offsets = [0, 0], sizes = [8, 32], strides = [1, 1]} : vector<8x96xf32> to vector<8x32xf32>
    %129 = arith.mulf %128, %117 : vector<8x32xf32>
    %130 = arith.addf %127, %129 : vector<8x32xf32>
    %131 = vector.extract_strided_slice %115 {offsets = [0, 64], sizes = [8, 32], strides = [1, 1]} : vector<8x96xf32> to vector<8x32xf32>
    %132 = math.tanh %130 : vector<8x32xf32>
    %133 = arith.mulf %131, %132 : vector<8x32xf32>
    %134 = arith.index_cast %93 : i32 to index
    %c0_45 = arith.constant 0 : index
    %135 = vector.load %arg19[%134, %c0_45] : memref<64x32xf32, #tpu.memory_space<vmem>>, vector<8x32xf32>
    tpu.vector_store %arg19[%134, %c0_45], %125 {strides = array<i32>} : memref<64x32xf32, #tpu.memory_space<vmem>>, vector<8x32xf32>,
    %136 = arith.index_cast %93 : i32 to index
    %c0_46 = arith.constant 0 : index
    %137 = vector.load %arg20[%136, %c0_46] : memref<64x32xf32, #tpu.memory_space<vmem>>, vector<8x32xf32>
    tpu.vector_store %arg20[%136, %c0_46], %133 {strides = array<i32>} : memref<64x32xf32, #tpu.memory_space<vmem>>, vector<8x32xf32>,
    %c3_i32 = arith.constant 3 : i32
    %c8_i32_47 = arith.constant 8 : i32
    %138 = arith.muli %c3_i32, %c8_i32_47 : i32
    %139 = tpu.assume_multiple %138, 8 : i32
    %140 = arith.index_cast %139 : i32 to index
    %c0_48 = arith.constant 0 : index
    %141 = vector.load %arg17[%140, %c0_48] : memref<64x128xf32, #tpu.memory_space<vmem>>, vector<8x128xf32>
    %cst_49 = arith.constant dense<0.000000e+00> : vector<8x128xf32>
    %142 = tpu.matmul %125, %14, %cst_49 {dimension_numbers = #tpu.dot_dimension_numbers<[1], [0], [0], [1], [0, 0, 1, 1], [], []>} : vector<8x32xf32>, vector<32x128xf32>, vector<8x128xf32> -> vector<8x128xf32>
    %143 = arith.addf %141, %142 : vector<8x128xf32>
    %144 = arith.index_cast %139 : i32 to index
    %c0_50 = arith.constant 0 : index
    %145 = vector.load %arg18[%144, %c0_50] : memref<64x128xf32, #tpu.memory_space<vmem>>, vector<8x128xf32>
    %cst_51 = arith.constant dense<0.000000e+00> : vector<8x128xf32>
    %146 = tpu.matmul %133, %15, %cst_51 {dimension_numbers = #tpu.dot_dimension_numbers<[1], [0], [0], [1], [0, 0, 1, 1], [], []>} : vector<8x32xf32>, vector<32x128xf32>, vector<8x128xf32> -> vector<8x128xf32>
    %147 = arith.addf %145, %146 : vector<8x128xf32>
    %148 = vector.extract_strided_slice %143 {offsets = [0, 0], sizes = [8, 96], strides = [1, 1]} : vector<8x128xf32> to vector<8x96xf32>
    %149 = arith.negf %148 : vector<8x96xf32>
    %150 = math.exp %149 : vector<8x96xf32>
    %cst_52 = arith.constant 1.000000e+00 : f32
    %151 = vector.broadcast %cst_52 : f32 to vector<8x96xf32>
    %152 = arith.addf %151, %150 : vector<8x96xf32>
    %153 = arith.divf %151, %152 : vector<8x96xf32>
    %154 = vector.extract_strided_slice %143 {offsets = [0, 96], sizes = [8, 32], strides = [1, 1]} : vector<8x128xf32> to vector<8x32xf32>
    %155 = math.tanh %154 : vector<8x32xf32>
    %156 = vector.extract_strided_slice %147 {offsets = [0, 0], sizes = [8, 96], strides = [1, 1]} : vector<8x128xf32> to vector<8x96xf32>
    %157 = arith.negf %156 : vector<8x96xf32>
    %158 = math.exp %157 : vector<8x96xf32>
    %cst_53 = arith.constant 1.000000e+00 : f32
    %159 = vector.broadcast %cst_53 : f32 to vector<8x96xf32>
    %160 = arith.addf %159, %158 : vector<8x96xf32>
    %161 = arith.divf %159, %160 : vector<8x96xf32>
    %162 = vector.extract_strided_slice %147 {offsets = [0, 96], sizes = [8, 32], strides = [1, 1]} : vector<8x128xf32> to vector<8x32xf32>
    %163 = math.tanh %162 : vector<8x32xf32>
    %164 = vector.extract_strided_slice %153 {offsets = [0, 32], sizes = [8, 32], strides = [1, 1]} : vector<8x96xf32> to vector<8x32xf32>
    %165 = arith.mulf %164, %122 : vector<8x32xf32>
    %166 = vector.extract_strided_slice %153 {offsets = [0, 0], sizes = [8, 32], strides = [1, 1]} : vector<8x96xf32> to vector<8x32xf32>
    %167 = arith.mulf %166, %155 : vector<8x32xf32>
    %168 = arith.addf %165, %167 : vector<8x32xf32>
    %169 = vector.extract_strided_slice %153 {offsets = [0, 64], sizes = [8, 32], strides = [1, 1]} : vector<8x96xf32> to vector<8x32xf32>
    %170 = math.tanh %168 : vector<8x32xf32>
    %171 = arith.mulf %169, %170 : vector<8x32xf32>
    %172 = vector.extract_strided_slice %161 {offsets = [0, 32], sizes = [8, 32], strides = [1, 1]} : vector<8x96xf32> to vector<8x32xf32>
    %173 = arith.mulf %172, %130 : vector<8x32xf32>
    %174 = vector.extract_strided_slice %161 {offsets = [0, 0], sizes = [8, 32], strides = [1, 1]} : vector<8x96xf32> to vector<8x32xf32>
    %175 = arith.mulf %174, %163 : vector<8x32xf32>
    %176 = arith.addf %173, %175 : vector<8x32xf32>
    %177 = vector.extract_strided_slice %161 {offsets = [0, 64], sizes = [8, 32], strides = [1, 1]} : vector<8x96xf32> to vector<8x32xf32>
    %178 = math.tanh %176 : vector<8x32xf32>
    %179 = arith.mulf %177, %178 : vector<8x32xf32>
    %180 = arith.index_cast %139 : i32 to index
    %c0_54 = arith.constant 0 : index
    %181 = vector.load %arg19[%180, %c0_54] : memref<64x32xf32, #tpu.memory_space<vmem>>, vector<8x32xf32>
    tpu.vector_store %arg19[%180, %c0_54], %171 {strides = array<i32>} : memref<64x32xf32, #tpu.memory_space<vmem>>, vector<8x32xf32>,
    %182 = arith.index_cast %139 : i32 to index
    %c0_55 = arith.constant 0 : index
    %183 = vector.load %arg20[%182, %c0_55] : memref<64x32xf32, #tpu.memory_space<vmem>>, vector<8x32xf32>
    tpu.vector_store %arg20[%182, %c0_55], %179 {strides = array<i32>} : memref<64x32xf32, #tpu.memory_space<vmem>>, vector<8x32xf32>,
    %c4_i32 = arith.constant 4 : i32
    %c8_i32_56 = arith.constant 8 : i32
    %184 = arith.muli %c4_i32, %c8_i32_56 : i32
    %185 = tpu.assume_multiple %184, 8 : i32
    %186 = arith.index_cast %185 : i32 to index
    %c0_57 = arith.constant 0 : index
    %187 = vector.load %arg17[%186, %c0_57] : memref<64x128xf32, #tpu.memory_space<vmem>>, vector<8x128xf32>
    %cst_58 = arith.constant dense<0.000000e+00> : vector<8x128xf32>
    %188 = tpu.matmul %171, %14, %cst_58 {dimension_numbers = #tpu.dot_dimension_numbers<[1], [0], [0], [1], [0, 0, 1, 1], [], []>} : vector<8x32xf32>, vector<32x128xf32>, vector<8x128xf32> -> vector<8x128xf32>
    %189 = arith.addf %187, %188 : vector<8x128xf32>
    %190 = arith.index_cast %185 : i32 to index
    %c0_59 = arith.constant 0 : index
    %191 = vector.load %arg18[%190, %c0_59] : memref<64x128xf32, #tpu.memory_space<vmem>>, vector<8x128xf32>
    %cst_60 = arith.constant dense<0.000000e+00> : vector<8x128xf32>
    %192 = tpu.matmul %179, %15, %cst_60 {dimension_numbers = #tpu.dot_dimension_numbers<[1], [0], [0], [1], [0, 0, 1, 1], [], []>} : vector<8x32xf32>, vector<32x128xf32>, vector<8x128xf32> -> vector<8x128xf32>
    %193 = arith.addf %191, %192 : vector<8x128xf32>
    %194 = vector.extract_strided_slice %189 {offsets = [0, 0], sizes = [8, 96], strides = [1, 1]} : vector<8x128xf32> to vector<8x96xf32>
    %195 = arith.negf %194 : vector<8x96xf32>
    %196 = math.exp %195 : vector<8x96xf32>
    %cst_61 = arith.constant 1.000000e+00 : f32
    %197 = vector.broadcast %cst_61 : f32 to vector<8x96xf32>
    %198 = arith.addf %197, %196 : vector<8x96xf32>
    %199 = arith.divf %197, %198 : vector<8x96xf32>
    %200 = vector.extract_strided_slice %189 {offsets = [0, 96], sizes = [8, 32], strides = [1, 1]} : vector<8x128xf32> to vector<8x32xf32>
    %201 = math.tanh %200 : vector<8x32xf32>
    %202 = vector.extract_strided_slice %193 {offsets = [0, 0], sizes = [8, 96], strides = [1, 1]} : vector<8x128xf32> to vector<8x96xf32>
    %203 = arith.negf %202 : vector<8x96xf32>
    %204 = math.exp %203 : vector<8x96xf32>
    %cst_62 = arith.constant 1.000000e+00 : f32
    %205 = vector.broadcast %cst_62 : f32 to vector<8x96xf32>
    %206 = arith.addf %205, %204 : vector<8x96xf32>
    %207 = arith.divf %205, %206 : vector<8x96xf32>
    %208 = vector.extract_strided_slice %193 {offsets = [0, 96], sizes = [8, 32], strides = [1, 1]} : vector<8x128xf32> to vector<8x32xf32>
    %209 = math.tanh %208 : vector<8x32xf32>
    %210 = vector.extract_strided_slice %199 {offsets = [0, 32], sizes = [8, 32], strides = [1, 1]} : vector<8x96xf32> to vector<8x32xf32>
    %211 = arith.mulf %210, %168 : vector<8x32xf32>
    %212 = vector.extract_strided_slice %199 {offsets = [0, 0], sizes = [8, 32], strides = [1, 1]} : vector<8x96xf32> to vector<8x32xf32>
    %213 = arith.mulf %212, %201 : vector<8x32xf32>
    %214 = arith.addf %211, %213 : vector<8x32xf32>
    %215 = vector.extract_strided_slice %199 {offsets = [0, 64], sizes = [8, 32], strides = [1, 1]} : vector<8x96xf32> to vector<8x32xf32>
    %216 = math.tanh %214 : vector<8x32xf32>
    %217 = arith.mulf %215, %216 : vector<8x32xf32>
    %218 = vector.extract_strided_slice %207 {offsets = [0, 32], sizes = [8, 32], strides = [1, 1]} : vector<8x96xf32> to vector<8x32xf32>
    %219 = arith.mulf %218, %176 : vector<8x32xf32>
    %220 = vector.extract_strided_slice %207 {offsets = [0, 0], sizes = [8, 32], strides = [1, 1]} : vector<8x96xf32> to vector<8x32xf32>
    %221 = arith.mulf %220, %209 : vector<8x32xf32>
    %222 = arith.addf %219, %221 : vector<8x32xf32>
    %223 = vector.extract_strided_slice %207 {offsets = [0, 64], sizes = [8, 32], strides = [1, 1]} : vector<8x96xf32> to vector<8x32xf32>
    %224 = math.tanh %222 : vector<8x32xf32>
    %225 = arith.mulf %223, %224 : vector<8x32xf32>
    %226 = arith.index_cast %185 : i32 to index
    %c0_63 = arith.constant 0 : index
    %227 = vector.load %arg19[%226, %c0_63] : memref<64x32xf32, #tpu.memory_space<vmem>>, vector<8x32xf32>
    tpu.vector_store %arg19[%226, %c0_63], %217 {strides = array<i32>} : memref<64x32xf32, #tpu.memory_space<vmem>>, vector<8x32xf32>,
    %228 = arith.index_cast %185 : i32 to index
    %c0_64 = arith.constant 0 : index
    %229 = vector.load %arg20[%228, %c0_64] : memref<64x32xf32, #tpu.memory_space<vmem>>, vector<8x32xf32>
    tpu.vector_store %arg20[%228, %c0_64], %225 {strides = array<i32>} : memref<64x32xf32, #tpu.memory_space<vmem>>, vector<8x32xf32>,
    %c5_i32 = arith.constant 5 : i32
    %c8_i32_65 = arith.constant 8 : i32
    %230 = arith.muli %c5_i32, %c8_i32_65 : i32
    %231 = tpu.assume_multiple %230, 8 : i32
    %232 = arith.index_cast %231 : i32 to index
    %c0_66 = arith.constant 0 : index
    %233 = vector.load %arg17[%232, %c0_66] : memref<64x128xf32, #tpu.memory_space<vmem>>, vector<8x128xf32>
    %cst_67 = arith.constant dense<0.000000e+00> : vector<8x128xf32>
    %234 = tpu.matmul %217, %14, %cst_67 {dimension_numbers = #tpu.dot_dimension_numbers<[1], [0], [0], [1], [0, 0, 1, 1], [], []>} : vector<8x32xf32>, vector<32x128xf32>, vector<8x128xf32> -> vector<8x128xf32>
    %235 = arith.addf %233, %234 : vector<8x128xf32>
    %236 = arith.index_cast %231 : i32 to index
    %c0_68 = arith.constant 0 : index
    %237 = vector.load %arg18[%236, %c0_68] : memref<64x128xf32, #tpu.memory_space<vmem>>, vector<8x128xf32>
    %cst_69 = arith.constant dense<0.000000e+00> : vector<8x128xf32>
    %238 = tpu.matmul %225, %15, %cst_69 {dimension_numbers = #tpu.dot_dimension_numbers<[1], [0], [0], [1], [0, 0, 1, 1], [], []>} : vector<8x32xf32>, vector<32x128xf32>, vector<8x128xf32> -> vector<8x128xf32>
    %239 = arith.addf %237, %238 : vector<8x128xf32>
    %240 = vector.extract_strided_slice %235 {offsets = [0, 0], sizes = [8, 96], strides = [1, 1]} : vector<8x128xf32> to vector<8x96xf32>
    %241 = arith.negf %240 : vector<8x96xf32>
    %242 = math.exp %241 : vector<8x96xf32>
    %cst_70 = arith.constant 1.000000e+00 : f32
    %243 = vector.broadcast %cst_70 : f32 to vector<8x96xf32>
    %244 = arith.addf %243, %242 : vector<8x96xf32>
    %245 = arith.divf %243, %244 : vector<8x96xf32>
    %246 = vector.extract_strided_slice %235 {offsets = [0, 96], sizes = [8, 32], strides = [1, 1]} : vector<8x128xf32> to vector<8x32xf32>
    %247 = math.tanh %246 : vector<8x32xf32>
    %248 = vector.extract_strided_slice %239 {offsets = [0, 0], sizes = [8, 96], strides = [1, 1]} : vector<8x128xf32> to vector<8x96xf32>
    %249 = arith.negf %248 : vector<8x96xf32>
    %250 = math.exp %249 : vector<8x96xf32>
    %cst_71 = arith.constant 1.000000e+00 : f32
    %251 = vector.broadcast %cst_71 : f32 to vector<8x96xf32>
    %252 = arith.addf %251, %250 : vector<8x96xf32>
    %253 = arith.divf %251, %252 : vector<8x96xf32>
    %254 = vector.extract_strided_slice %239 {offsets = [0, 96], sizes = [8, 32], strides = [1, 1]} : vector<8x128xf32> to vector<8x32xf32>
    %255 = math.tanh %254 : vector<8x32xf32>
    %256 = vector.extract_strided_slice %245 {offsets = [0, 32], sizes = [8, 32], strides = [1, 1]} : vector<8x96xf32> to vector<8x32xf32>
    %257 = arith.mulf %256, %214 : vector<8x32xf32>
    %258 = vector.extract_strided_slice %245 {offsets = [0, 0], sizes = [8, 32], strides = [1, 1]} : vector<8x96xf32> to vector<8x32xf32>
    %259 = arith.mulf %258, %247 : vector<8x32xf32>
    %260 = arith.addf %257, %259 : vector<8x32xf32>
    %261 = vector.extract_strided_slice %245 {offsets = [0, 64], sizes = [8, 32], strides = [1, 1]} : vector<8x96xf32> to vector<8x32xf32>
    %262 = math.tanh %260 : vector<8x32xf32>
    %263 = arith.mulf %261, %262 : vector<8x32xf32>
    %264 = vector.extract_strided_slice %253 {offsets = [0, 32], sizes = [8, 32], strides = [1, 1]} : vector<8x96xf32> to vector<8x32xf32>
    %265 = arith.mulf %264, %222 : vector<8x32xf32>
    %266 = vector.extract_strided_slice %253 {offsets = [0, 0], sizes = [8, 32], strides = [1, 1]} : vector<8x96xf32> to vector<8x32xf32>
    %267 = arith.mulf %266, %255 : vector<8x32xf32>
    %268 = arith.addf %265, %267 : vector<8x32xf32>
    %269 = vector.extract_strided_slice %253 {offsets = [0, 64], sizes = [8, 32], strides = [1, 1]} : vector<8x96xf32> to vector<8x32xf32>
    %270 = math.tanh %268 : vector<8x32xf32>
    %271 = arith.mulf %269, %270 : vector<8x32xf32>
    %272 = arith.index_cast %231 : i32 to index
    %c0_72 = arith.constant 0 : index
    %273 = vector.load %arg19[%272, %c0_72] : memref<64x32xf32, #tpu.memory_space<vmem>>, vector<8x32xf32>
    tpu.vector_store %arg19[%272, %c0_72], %263 {strides = array<i32>} : memref<64x32xf32, #tpu.memory_space<vmem>>, vector<8x32xf32>,
    %274 = arith.index_cast %231 : i32 to index
    %c0_73 = arith.constant 0 : index
    %275 = vector.load %arg20[%274, %c0_73] : memref<64x32xf32, #tpu.memory_space<vmem>>, vector<8x32xf32>
    tpu.vector_store %arg20[%274, %c0_73], %271 {strides = array<i32>} : memref<64x32xf32, #tpu.memory_space<vmem>>, vector<8x32xf32>,
    %c6_i32 = arith.constant 6 : i32
    %c8_i32_74 = arith.constant 8 : i32
    %276 = arith.muli %c6_i32, %c8_i32_74 : i32
    %277 = tpu.assume_multiple %276, 8 : i32
    %278 = arith.index_cast %277 : i32 to index
    %c0_75 = arith.constant 0 : index
    %279 = vector.load %arg17[%278, %c0_75] : memref<64x128xf32, #tpu.memory_space<vmem>>, vector<8x128xf32>
    %cst_76 = arith.constant dense<0.000000e+00> : vector<8x128xf32>
    %280 = tpu.matmul %263, %14, %cst_76 {dimension_numbers = #tpu.dot_dimension_numbers<[1], [0], [0], [1], [0, 0, 1, 1], [], []>} : vector<8x32xf32>, vector<32x128xf32>, vector<8x128xf32> -> vector<8x128xf32>
    %281 = arith.addf %279, %280 : vector<8x128xf32>
    %282 = arith.index_cast %277 : i32 to index
    %c0_77 = arith.constant 0 : index
    %283 = vector.load %arg18[%282, %c0_77] : memref<64x128xf32, #tpu.memory_space<vmem>>, vector<8x128xf32>
    %cst_78 = arith.constant dense<0.000000e+00> : vector<8x128xf32>
    %284 = tpu.matmul %271, %15, %cst_78 {dimension_numbers = #tpu.dot_dimension_numbers<[1], [0], [0], [1], [0, 0, 1, 1], [], []>} : vector<8x32xf32>, vector<32x128xf32>, vector<8x128xf32> -> vector<8x128xf32>
    %285 = arith.addf %283, %284 : vector<8x128xf32>
    %286 = vector.extract_strided_slice %281 {offsets = [0, 0], sizes = [8, 96], strides = [1, 1]} : vector<8x128xf32> to vector<8x96xf32>
    %287 = arith.negf %286 : vector<8x96xf32>
    %288 = math.exp %287 : vector<8x96xf32>
    %cst_79 = arith.constant 1.000000e+00 : f32
    %289 = vector.broadcast %cst_79 : f32 to vector<8x96xf32>
    %290 = arith.addf %289, %288 : vector<8x96xf32>
    %291 = arith.divf %289, %290 : vector<8x96xf32>
    %292 = vector.extract_strided_slice %281 {offsets = [0, 96], sizes = [8, 32], strides = [1, 1]} : vector<8x128xf32> to vector<8x32xf32>
    %293 = math.tanh %292 : vector<8x32xf32>
    %294 = vector.extract_strided_slice %285 {offsets = [0, 0], sizes = [8, 96], strides = [1, 1]} : vector<8x128xf32> to vector<8x96xf32>
    %295 = arith.negf %294 : vector<8x96xf32>
    %296 = math.exp %295 : vector<8x96xf32>
    %cst_80 = arith.constant 1.000000e+00 : f32
    %297 = vector.broadcast %cst_80 : f32 to vector<8x96xf32>
    %298 = arith.addf %297, %296 : vector<8x96xf32>
    %299 = arith.divf %297, %298 : vector<8x96xf32>
    %300 = vector.extract_strided_slice %285 {offsets = [0, 96], sizes = [8, 32], strides = [1, 1]} : vector<8x128xf32> to vector<8x32xf32>
    %301 = math.tanh %300 : vector<8x32xf32>
    %302 = vector.extract_strided_slice %291 {offsets = [0, 32], sizes = [8, 32], strides = [1, 1]} : vector<8x96xf32> to vector<8x32xf32>
    %303 = arith.mulf %302, %260 : vector<8x32xf32>
    %304 = vector.extract_strided_slice %291 {offsets = [0, 0], sizes = [8, 32], strides = [1, 1]} : vector<8x96xf32> to vector<8x32xf32>
    %305 = arith.mulf %304, %293 : vector<8x32xf32>
    %306 = arith.addf %303, %305 : vector<8x32xf32>
    %307 = vector.extract_strided_slice %291 {offsets = [0, 64], sizes = [8, 32], strides = [1, 1]} : vector<8x96xf32> to vector<8x32xf32>
    %308 = math.tanh %306 : vector<8x32xf32>
    %309 = arith.mulf %307, %308 : vector<8x32xf32>
    %310 = vector.extract_strided_slice %299 {offsets = [0, 32], sizes = [8, 32], strides = [1, 1]} : vector<8x96xf32> to vector<8x32xf32>
    %311 = arith.mulf %310, %268 : vector<8x32xf32>
    %312 = vector.extract_strided_slice %299 {offsets = [0, 0], sizes = [8, 32], strides = [1, 1]} : vector<8x96xf32> to vector<8x32xf32>
    %313 = arith.mulf %312, %301 : vector<8x32xf32>
    %314 = arith.addf %311, %313 : vector<8x32xf32>
    %315 = vector.extract_strided_slice %299 {offsets = [0, 64], sizes = [8, 32], strides = [1, 1]} : vector<8x96xf32> to vector<8x32xf32>
    %316 = math.tanh %314 : vector<8x32xf32>
    %317 = arith.mulf %315, %316 : vector<8x32xf32>
    %318 = arith.index_cast %277 : i32 to index
    %c0_81 = arith.constant 0 : index
    %319 = vector.load %arg19[%318, %c0_81] : memref<64x32xf32, #tpu.memory_space<vmem>>, vector<8x32xf32>
    tpu.vector_store %arg19[%318, %c0_81], %309 {strides = array<i32>} : memref<64x32xf32, #tpu.memory_space<vmem>>, vector<8x32xf32>,
    %320 = arith.index_cast %277 : i32 to index
    %c0_82 = arith.constant 0 : index
    %321 = vector.load %arg20[%320, %c0_82] : memref<64x32xf32, #tpu.memory_space<vmem>>, vector<8x32xf32>
    tpu.vector_store %arg20[%320, %c0_82], %317 {strides = array<i32>} : memref<64x32xf32, #tpu.memory_space<vmem>>, vector<8x32xf32>,
    %c7_i32 = arith.constant 7 : i32
    %c8_i32_83 = arith.constant 8 : i32
    %322 = arith.muli %c7_i32, %c8_i32_83 : i32
    %323 = tpu.assume_multiple %322, 8 : i32
    %324 = arith.index_cast %323 : i32 to index
    %c0_84 = arith.constant 0 : index
    %325 = vector.load %arg17[%324, %c0_84] : memref<64x128xf32, #tpu.memory_space<vmem>>, vector<8x128xf32>
    %cst_85 = arith.constant dense<0.000000e+00> : vector<8x128xf32>
    %326 = tpu.matmul %309, %14, %cst_85 {dimension_numbers = #tpu.dot_dimension_numbers<[1], [0], [0], [1], [0, 0, 1, 1], [], []>} : vector<8x32xf32>, vector<32x128xf32>, vector<8x128xf32> -> vector<8x128xf32>
    %327 = arith.addf %325, %326 : vector<8x128xf32>
    %328 = arith.index_cast %323 : i32 to index
    %c0_86 = arith.constant 0 : index
    %329 = vector.load %arg18[%328, %c0_86] : memref<64x128xf32, #tpu.memory_space<vmem>>, vector<8x128xf32>
    %cst_87 = arith.constant dense<0.000000e+00> : vector<8x128xf32>
    %330 = tpu.matmul %317, %15, %cst_87 {dimension_numbers = #tpu.dot_dimension_numbers<[1], [0], [0], [1], [0, 0, 1, 1], [], []>} : vector<8x32xf32>, vector<32x128xf32>, vector<8x128xf32> -> vector<8x128xf32>
    %331 = arith.addf %329, %330 : vector<8x128xf32>
    %332 = vector.extract_strided_slice %327 {offsets = [0, 0], sizes = [8, 96], strides = [1, 1]} : vector<8x128xf32> to vector<8x96xf32>
    %333 = arith.negf %332 : vector<8x96xf32>
    %334 = math.exp %333 : vector<8x96xf32>
    %cst_88 = arith.constant 1.000000e+00 : f32
    %335 = vector.broadcast %cst_88 : f32 to vector<8x96xf32>
    %336 = arith.addf %335, %334 : vector<8x96xf32>
    %337 = arith.divf %335, %336 : vector<8x96xf32>
    %338 = vector.extract_strided_slice %327 {offsets = [0, 96], sizes = [8, 32], strides = [1, 1]} : vector<8x128xf32> to vector<8x32xf32>
    %339 = math.tanh %338 : vector<8x32xf32>
    %340 = vector.extract_strided_slice %331 {offsets = [0, 0], sizes = [8, 96], strides = [1, 1]} : vector<8x128xf32> to vector<8x96xf32>
    %341 = arith.negf %340 : vector<8x96xf32>
    %342 = math.exp %341 : vector<8x96xf32>
    %cst_89 = arith.constant 1.000000e+00 : f32
    %343 = vector.broadcast %cst_89 : f32 to vector<8x96xf32>
    %344 = arith.addf %343, %342 : vector<8x96xf32>
    %345 = arith.divf %343, %344 : vector<8x96xf32>
    %346 = vector.extract_strided_slice %331 {offsets = [0, 96], sizes = [8, 32], strides = [1, 1]} : vector<8x128xf32> to vector<8x32xf32>
    %347 = math.tanh %346 : vector<8x32xf32>
    %348 = vector.extract_strided_slice %337 {offsets = [0, 32], sizes = [8, 32], strides = [1, 1]} : vector<8x96xf32> to vector<8x32xf32>
    %349 = arith.mulf %348, %306 : vector<8x32xf32>
    %350 = vector.extract_strided_slice %337 {offsets = [0, 0], sizes = [8, 32], strides = [1, 1]} : vector<8x96xf32> to vector<8x32xf32>
    %351 = arith.mulf %350, %339 : vector<8x32xf32>
    %352 = arith.addf %349, %351 : vector<8x32xf32>
    %353 = vector.extract_strided_slice %337 {offsets = [0, 64], sizes = [8, 32], strides = [1, 1]} : vector<8x96xf32> to vector<8x32xf32>
    %354 = math.tanh %352 : vector<8x32xf32>
    %355 = arith.mulf %353, %354 : vector<8x32xf32>
    %356 = vector.extract_strided_slice %345 {offsets = [0, 32], sizes = [8, 32], strides = [1, 1]} : vector<8x96xf32> to vector<8x32xf32>
    %357 = arith.mulf %356, %314 : vector<8x32xf32>
    %358 = vector.extract_strided_slice %345 {offsets = [0, 0], sizes = [8, 32], strides = [1, 1]} : vector<8x96xf32> to vector<8x32xf32>
    %359 = arith.mulf %358, %347 : vector<8x32xf32>
    %360 = arith.addf %357, %359 : vector<8x32xf32>
    %361 = vector.extract_strided_slice %345 {offsets = [0, 64], sizes = [8, 32], strides = [1, 1]} : vector<8x96xf32> to vector<8x32xf32>
    %362 = math.tanh %360 : vector<8x32xf32>
    %363 = arith.mulf %361, %362 : vector<8x32xf32>
    %364 = arith.index_cast %323 : i32 to index
    %c0_90 = arith.constant 0 : index
    %365 = vector.load %arg19[%364, %c0_90] : memref<64x32xf32, #tpu.memory_space<vmem>>, vector<8x32xf32>
    tpu.vector_store %arg19[%364, %c0_90], %355 {strides = array<i32>} : memref<64x32xf32, #tpu.memory_space<vmem>>, vector<8x32xf32>,
    %366 = arith.index_cast %323 : i32 to index
    %c0_91 = arith.constant 0 : index
    %367 = vector.load %arg20[%366, %c0_91] : memref<64x32xf32, #tpu.memory_space<vmem>>, vector<8x32xf32>
    tpu.vector_store %arg20[%366, %c0_91], %363 {strides = array<i32>} : memref<64x32xf32, #tpu.memory_space<vmem>>, vector<8x32xf32>,
    %c7_i32_92 = arith.constant 7 : i32
    %c0_93 = arith.constant 0 : index
    %c0_94 = arith.constant 0 : index
    %368 = vector.load %arg19[%c0_93, %c0_94] : memref<64x32xf32, #tpu.memory_space<vmem>>, vector<64x32xf32>
    %c0_95 = arith.constant 0 : index
    %c0_96 = arith.constant 0 : index
    %369 = vector.load %arg20[%c0_95, %c0_96] : memref<64x32xf32, #tpu.memory_space<vmem>>, vector<64x32xf32>
    %c0_97 = arith.constant 0 : index
    %c0_98 = arith.constant 0 : index
    %370 = vector.load %arg8[%c0_97, %c0_98] : memref<32x128xf32, #tpu.memory_space<vmem>>, vector<32x128xf32>
    %cst_99 = arith.constant dense<0.000000e+00> : vector<64x128xf32>
    %371 = tpu.matmul %368, %370, %cst_99 {dimension_numbers = #tpu.dot_dimension_numbers<[1], [0], [0], [1], [0, 0, 1, 1], [], []>} : vector<64x32xf32>, vector<32x128xf32>, vector<64x128xf32> -> vector<64x128xf32>
    %c0_100 = arith.constant 0 : index
    %c0_101 = arith.constant 0 : index
    %372 = vector.load %arg10[%c0_100, %c0_101] : memref<1x128xf32, #tpu.memory_space<vmem>>, vector<1x128xf32>
    %373 = vector.broadcast %372 : vector<1x128xf32> to vector<64x128xf32>
    %374 = arith.addf %371, %373 : vector<64x128xf32>
    %c0_102 = arith.constant 0 : index
    %c0_103 = arith.constant 0 : index
    %375 = vector.load %arg17[%c0_102, %c0_103] : memref<64x128xf32, #tpu.memory_space<vmem>>, vector<64x128xf32>
    tpu.vector_store %arg17[%c0_102, %c0_103], %374 {strides = array<i32>} : memref<64x128xf32, #tpu.memory_space<vmem>>, vector<64x128xf32>,
    %c0_104 = arith.constant 0 : index
    %c0_105 = arith.constant 0 : index
    %376 = vector.load %arg11[%c0_104, %c0_105] : memref<32x128xf32, #tpu.memory_space<vmem>>, vector<32x128xf32>
    %cst_106 = arith.constant dense<0.000000e+00> : vector<64x128xf32>
    %377 = tpu.matmul %369, %376, %cst_106 {dimension_numbers = #tpu.dot_dimension_numbers<[1], [0], [0], [1], [0, 0, 1, 1], [], []>} : vector<64x32xf32>, vector<32x128xf32>, vector<64x128xf32> -> vector<64x128xf32>
    %c0_107 = arith.constant 0 : index
    %c0_108 = arith.constant 0 : index
    %378 = vector.load %arg13[%c0_107, %c0_108] : memref<1x128xf32, #tpu.memory_space<vmem>>, vector<1x128xf32>
    %379 = vector.broadcast %378 : vector<1x128xf32> to vector<64x128xf32>
    %380 = arith.addf %377, %379 : vector<64x128xf32>
    %c0_109 = arith.constant 0 : index
    %c0_110 = arith.constant 0 : index
    %381 = vector.load %arg18[%c0_109, %c0_110] : memref<64x128xf32, #tpu.memory_space<vmem>>, vector<64x128xf32>
    tpu.vector_store %arg18[%c0_109, %c0_110], %380 {strides = array<i32>} : memref<64x128xf32, #tpu.memory_space<vmem>>, vector<64x128xf32>,
    %c0_111 = arith.constant 0 : index
    %c0_112 = arith.constant 0 : index
    %382 = vector.load %arg9[%c0_111, %c0_112] : memref<32x128xf32, #tpu.memory_space<vmem>>, vector<32x128xf32>
    %c0_113 = arith.constant 0 : index
    %c0_114 = arith.constant 0 : index
    %383 = vector.load %arg12[%c0_113, %c0_114] : memref<32x128xf32, #tpu.memory_space<vmem>>, vector<32x128xf32>
    %c0_115 = arith.constant 0 : index
    %c0_116 = arith.constant 0 : index
    %384 = vector.load %arg17[%c0_115, %c0_116] : memref<64x128xf32, #tpu.memory_space<vmem>>, vector<8x128xf32>
    %c0_117 = arith.constant 0 : index
    %c0_118 = arith.constant 0 : index
    %385 = vector.load %arg18[%c0_117, %c0_118] : memref<64x128xf32, #tpu.memory_space<vmem>>, vector<8x128xf32>
    %386 = vector.extract_strided_slice %384 {offsets = [0, 0], sizes = [8, 96], strides = [1, 1]} : vector<8x128xf32> to vector<8x96xf32>
    %387 = arith.negf %386 : vector<8x96xf32>
    %388 = math.exp %387 : vector<8x96xf32>
    %cst_119 = arith.constant 1.000000e+00 : f32
    %389 = vector.broadcast %cst_119 : f32 to vector<8x96xf32>
    %390 = arith.addf %389, %388 : vector<8x96xf32>
    %391 = arith.divf %389, %390 : vector<8x96xf32>
    %392 = vector.extract_strided_slice %384 {offsets = [0, 96], sizes = [8, 32], strides = [1, 1]} : vector<8x128xf32> to vector<8x32xf32>
    %393 = math.tanh %392 : vector<8x32xf32>
    %394 = vector.extract_strided_slice %385 {offsets = [0, 0], sizes = [8, 96], strides = [1, 1]} : vector<8x128xf32> to vector<8x96xf32>
    %395 = arith.negf %394 : vector<8x96xf32>
    %396 = math.exp %395 : vector<8x96xf32>
    %cst_120 = arith.constant 1.000000e+00 : f32
    %397 = vector.broadcast %cst_120 : f32 to vector<8x96xf32>
    %398 = arith.addf %397, %396 : vector<8x96xf32>
    %399 = arith.divf %397, %398 : vector<8x96xf32>
    %400 = vector.extract_strided_slice %385 {offsets = [0, 96], sizes = [8, 32], strides = [1, 1]} : vector<8x128xf32> to vector<8x32xf32>
    %401 = math.tanh %400 : vector<8x32xf32>
    %402 = vector.extract_strided_slice %391 {offsets = [0, 0], sizes = [8, 32], strides = [1, 1]} : vector<8x96xf32> to vector<8x32xf32>
    %403 = arith.mulf %402, %393 : vector<8x32xf32>
    %404 = vector.extract_strided_slice %391 {offsets = [0, 64], sizes = [8, 32], strides = [1, 1]} : vector<8x96xf32> to vector<8x32xf32>
    %405 = math.tanh %403 : vector<8x32xf32>
    %406 = arith.mulf %404, %405 : vector<8x32xf32>
    %407 = vector.extract_strided_slice %399 {offsets = [0, 0], sizes = [8, 32], strides = [1, 1]} : vector<8x96xf32> to vector<8x32xf32>
    %408 = arith.mulf %407, %401 : vector<8x32xf32>
    %409 = vector.extract_strided_slice %399 {offsets = [0, 64], sizes = [8, 32], strides = [1, 1]} : vector<8x96xf32> to vector<8x32xf32>
    %410 = math.tanh %408 : vector<8x32xf32>
    %411 = arith.mulf %409, %410 : vector<8x32xf32>
    %c1_i32_121 = arith.constant 1 : i32
    %c8_i32_122 = arith.constant 8 : i32
    %412 = arith.muli %c1_i32_121, %c8_i32_122 : i32
    %413 = tpu.assume_multiple %412, 8 : i32
    %414 = arith.index_cast %413 : i32 to index
    %c0_123 = arith.constant 0 : index
    %415 = vector.load %arg17[%414, %c0_123] : memref<64x128xf32, #tpu.memory_space<vmem>>, vector<8x128xf32>
    %cst_124 = arith.constant dense<0.000000e+00> : vector<8x128xf32>
    %416 = tpu.matmul %406, %382, %cst_124 {dimension_numbers = #tpu.dot_dimension_numbers<[1], [0], [0], [1], [0, 0, 1, 1], [], []>} : vector<8x32xf32>, vector<32x128xf32>, vector<8x128xf32> -> vector<8x128xf32>
    %417 = arith.addf %415, %416 : vector<8x128xf32>
    %418 = arith.index_cast %413 : i32 to index
    %c0_125 = arith.constant 0 : index
    %419 = vector.load %arg18[%418, %c0_125] : memref<64x128xf32, #tpu.memory_space<vmem>>, vector<8x128xf32>
    %cst_126 = arith.constant dense<0.000000e+00> : vector<8x128xf32>
    %420 = tpu.matmul %411, %383, %cst_126 {dimension_numbers = #tpu.dot_dimension_numbers<[1], [0], [0], [1], [0, 0, 1, 1], [], []>} : vector<8x32xf32>, vector<32x128xf32>, vector<8x128xf32> -> vector<8x128xf32>
    %421 = arith.addf %419, %420 : vector<8x128xf32>
    %422 = vector.extract_strided_slice %417 {offsets = [0, 0], sizes = [8, 96], strides = [1, 1]} : vector<8x128xf32> to vector<8x96xf32>
    %423 = arith.negf %422 : vector<8x96xf32>
    %424 = math.exp %423 : vector<8x96xf32>
    %cst_127 = arith.constant 1.000000e+00 : f32
    %425 = vector.broadcast %cst_127 : f32 to vector<8x96xf32>
    %426 = arith.addf %425, %424 : vector<8x96xf32>
    %427 = arith.divf %425, %426 : vector<8x96xf32>
    %428 = vector.extract_strided_slice %417 {offsets = [0, 96], sizes = [8, 32], strides = [1, 1]} : vector<8x128xf32> to vector<8x32xf32>
    %429 = math.tanh %428 : vector<8x32xf32>
    %430 = vector.extract_strided_slice %421 {offsets = [0, 0], sizes = [8, 96], strides = [1, 1]} : vector<8x128xf32> to vector<8x96xf32>
    %431 = arith.negf %430 : vector<8x96xf32>
    %432 = math.exp %431 : vector<8x96xf32>
    %cst_128 = arith.constant 1.000000e+00 : f32
    %433 = vector.broadcast %cst_128 : f32 to vector<8x96xf32>
    %434 = arith.addf %433, %432 : vector<8x96xf32>
    %435 = arith.divf %433, %434 : vector<8x96xf32>
    %436 = vector.extract_strided_slice %421 {offsets = [0, 96], sizes = [8, 32], strides = [1, 1]} : vector<8x128xf32> to vector<8x32xf32>
    %437 = math.tanh %436 : vector<8x32xf32>
    %438 = vector.extract_strided_slice %427 {offsets = [0, 32], sizes = [8, 32], strides = [1, 1]} : vector<8x96xf32> to vector<8x32xf32>
    %439 = arith.mulf %438, %403 : vector<8x32xf32>
    %440 = vector.extract_strided_slice %427 {offsets = [0, 0], sizes = [8, 32], strides = [1, 1]} : vector<8x96xf32> to vector<8x32xf32>
    %441 = arith.mulf %440, %429 : vector<8x32xf32>
    %442 = arith.addf %439, %441 : vector<8x32xf32>
    %443 = vector.extract_strided_slice %427 {offsets = [0, 64], sizes = [8, 32], strides = [1, 1]} : vector<8x96xf32> to vector<8x32xf32>
    %444 = math.tanh %442 : vector<8x32xf32>
    %445 = arith.mulf %443, %444 : vector<8x32xf32>
    %446 = vector.extract_strided_slice %435 {offsets = [0, 32], sizes = [8, 32], strides = [1, 1]} : vector<8x96xf32> to vector<8x32xf32>
    %447 = arith.mulf %446, %408 : vector<8x32xf32>
    %448 = vector.extract_strided_slice %435 {offsets = [0, 0], sizes = [8, 32], strides = [1, 1]} : vector<8x96xf32> to vector<8x32xf32>
    %449 = arith.mulf %448, %437 : vector<8x32xf32>
    %450 = arith.addf %447, %449 : vector<8x32xf32>
    %451 = vector.extract_strided_slice %435 {offsets = [0, 64], sizes = [8, 32], strides = [1, 1]} : vector<8x96xf32> to vector<8x32xf32>
    %452 = math.tanh %450 : vector<8x32xf32>
    %453 = arith.mulf %451, %452 : vector<8x32xf32>
    %c2_i32_129 = arith.constant 2 : i32
    %c8_i32_130 = arith.constant 8 : i32
    %454 = arith.muli %c2_i32_129, %c8_i32_130 : i32
    %455 = tpu.assume_multiple %454, 8 : i32
    %456 = arith.index_cast %455 : i32 to index
    %c0_131 = arith.constant 0 : index
    %457 = vector.load %arg17[%456, %c0_131] : memref<64x128xf32, #tpu.memory_space<vmem>>, vector<8x128xf32>
    %cst_132 = arith.constant dense<0.000000e+00> : vector<8x128xf32>
    %458 = tpu.matmul %445, %382, %cst_132 {dimension_numbers = #tpu.dot_dimension_numbers<[1], [0], [0], [1], [0, 0, 1, 1], [], []>} : vector<8x32xf32>, vector<32x128xf32>, vector<8x128xf32> -> vector<8x128xf32>
    %459 = arith.addf %457, %458 : vector<8x128xf32>
    %460 = arith.index_cast %455 : i32 to index
    %c0_133 = arith.constant 0 : index
    %461 = vector.load %arg18[%460, %c0_133] : memref<64x128xf32, #tpu.memory_space<vmem>>, vector<8x128xf32>
    %cst_134 = arith.constant dense<0.000000e+00> : vector<8x128xf32>
    %462 = tpu.matmul %453, %383, %cst_134 {dimension_numbers = #tpu.dot_dimension_numbers<[1], [0], [0], [1], [0, 0, 1, 1], [], []>} : vector<8x32xf32>, vector<32x128xf32>, vector<8x128xf32> -> vector<8x128xf32>
    %463 = arith.addf %461, %462 : vector<8x128xf32>
    %464 = vector.extract_strided_slice %459 {offsets = [0, 0], sizes = [8, 96], strides = [1, 1]} : vector<8x128xf32> to vector<8x96xf32>
    %465 = arith.negf %464 : vector<8x96xf32>
    %466 = math.exp %465 : vector<8x96xf32>
    %cst_135 = arith.constant 1.000000e+00 : f32
    %467 = vector.broadcast %cst_135 : f32 to vector<8x96xf32>
    %468 = arith.addf %467, %466 : vector<8x96xf32>
    %469 = arith.divf %467, %468 : vector<8x96xf32>
    %470 = vector.extract_strided_slice %459 {offsets = [0, 96], sizes = [8, 32], strides = [1, 1]} : vector<8x128xf32> to vector<8x32xf32>
    %471 = math.tanh %470 : vector<8x32xf32>
    %472 = vector.extract_strided_slice %463 {offsets = [0, 0], sizes = [8, 96], strides = [1, 1]} : vector<8x128xf32> to vector<8x96xf32>
    %473 = arith.negf %472 : vector<8x96xf32>
    %474 = math.exp %473 : vector<8x96xf32>
    %cst_136 = arith.constant 1.000000e+00 : f32
    %475 = vector.broadcast %cst_136 : f32 to vector<8x96xf32>
    %476 = arith.addf %475, %474 : vector<8x96xf32>
    %477 = arith.divf %475, %476 : vector<8x96xf32>
    %478 = vector.extract_strided_slice %463 {offsets = [0, 96], sizes = [8, 32], strides = [1, 1]} : vector<8x128xf32> to vector<8x32xf32>
    %479 = math.tanh %478 : vector<8x32xf32>
    %480 = vector.extract_strided_slice %469 {offsets = [0, 32], sizes = [8, 32], strides = [1, 1]} : vector<8x96xf32> to vector<8x32xf32>
    %481 = arith.mulf %480, %442 : vector<8x32xf32>
    %482 = vector.extract_strided_slice %469 {offsets = [0, 0], sizes = [8, 32], strides = [1, 1]} : vector<8x96xf32> to vector<8x32xf32>
    %483 = arith.mulf %482, %471 : vector<8x32xf32>
    %484 = arith.addf %481, %483 : vector<8x32xf32>
    %485 = vector.extract_strided_slice %469 {offsets = [0, 64], sizes = [8, 32], strides = [1, 1]} : vector<8x96xf32> to vector<8x32xf32>
    %486 = math.tanh %484 : vector<8x32xf32>
    %487 = arith.mulf %485, %486 : vector<8x32xf32>
    %488 = vector.extract_strided_slice %477 {offsets = [0, 32], sizes = [8, 32], strides = [1, 1]} : vector<8x96xf32> to vector<8x32xf32>
    %489 = arith.mulf %488, %450 : vector<8x32xf32>
    %490 = vector.extract_strided_slice %477 {offsets = [0, 0], sizes = [8, 32], strides = [1, 1]} : vector<8x96xf32> to vector<8x32xf32>
    %491 = arith.mulf %490, %479 : vector<8x32xf32>
    %492 = arith.addf %489, %491 : vector<8x32xf32>
    %493 = vector.extract_strided_slice %477 {offsets = [0, 64], sizes = [8, 32], strides = [1, 1]} : vector<8x96xf32> to vector<8x32xf32>
    %494 = math.tanh %492 : vector<8x32xf32>
    %495 = arith.mulf %493, %494 : vector<8x32xf32>
    %c3_i32_137 = arith.constant 3 : i32
    %c8_i32_138 = arith.constant 8 : i32
    %496 = arith.muli %c3_i32_137, %c8_i32_138 : i32
    %497 = tpu.assume_multiple %496, 8 : i32
    %498 = arith.index_cast %497 : i32 to index
    %c0_139 = arith.constant 0 : index
    %499 = vector.load %arg17[%498, %c0_139] : memref<64x128xf32, #tpu.memory_space<vmem>>, vector<8x128xf32>
    %cst_140 = arith.constant dense<0.000000e+00> : vector<8x128xf32>
    %500 = tpu.matmul %487, %382, %cst_140 {dimension_numbers = #tpu.dot_dimension_numbers<[1], [0], [0], [1], [0, 0, 1, 1], [], []>} : vector<8x32xf32>, vector<32x128xf32>, vector<8x128xf32> -> vector<8x128xf32>
    %501 = arith.addf %499, %500 : vector<8x128xf32>
    %502 = arith.index_cast %497 : i32 to index
    %c0_141 = arith.constant 0 : index
    %503 = vector.load %arg18[%502, %c0_141] : memref<64x128xf32, #tpu.memory_space<vmem>>, vector<8x128xf32>
    %cst_142 = arith.constant dense<0.000000e+00> : vector<8x128xf32>
    %504 = tpu.matmul %495, %383, %cst_142 {dimension_numbers = #tpu.dot_dimension_numbers<[1], [0], [0], [1], [0, 0, 1, 1], [], []>} : vector<8x32xf32>, vector<32x128xf32>, vector<8x128xf32> -> vector<8x128xf32>
    %505 = arith.addf %503, %504 : vector<8x128xf32>
    %506 = vector.extract_strided_slice %501 {offsets = [0, 0], sizes = [8, 96], strides = [1, 1]} : vector<8x128xf32> to vector<8x96xf32>
    %507 = arith.negf %506 : vector<8x96xf32>
    %508 = math.exp %507 : vector<8x96xf32>
    %cst_143 = arith.constant 1.000000e+00 : f32
    %509 = vector.broadcast %cst_143 : f32 to vector<8x96xf32>
    %510 = arith.addf %509, %508 : vector<8x96xf32>
    %511 = arith.divf %509, %510 : vector<8x96xf32>
    %512 = vector.extract_strided_slice %501 {offsets = [0, 96], sizes = [8, 32], strides = [1, 1]} : vector<8x128xf32> to vector<8x32xf32>
    %513 = math.tanh %512 : vector<8x32xf32>
    %514 = vector.extract_strided_slice %505 {offsets = [0, 0], sizes = [8, 96], strides = [1, 1]} : vector<8x128xf32> to vector<8x96xf32>
    %515 = arith.negf %514 : vector<8x96xf32>
    %516 = math.exp %515 : vector<8x96xf32>
    %cst_144 = arith.constant 1.000000e+00 : f32
    %517 = vector.broadcast %cst_144 : f32 to vector<8x96xf32>
    %518 = arith.addf %517, %516 : vector<8x96xf32>
    %519 = arith.divf %517, %518 : vector<8x96xf32>
    %520 = vector.extract_strided_slice %505 {offsets = [0, 96], sizes = [8, 32], strides = [1, 1]} : vector<8x128xf32> to vector<8x32xf32>
    %521 = math.tanh %520 : vector<8x32xf32>
    %522 = vector.extract_strided_slice %511 {offsets = [0, 32], sizes = [8, 32], strides = [1, 1]} : vector<8x96xf32> to vector<8x32xf32>
    %523 = arith.mulf %522, %484 : vector<8x32xf32>
    %524 = vector.extract_strided_slice %511 {offsets = [0, 0], sizes = [8, 32], strides = [1, 1]} : vector<8x96xf32> to vector<8x32xf32>
    %525 = arith.mulf %524, %513 : vector<8x32xf32>
    %526 = arith.addf %523, %525 : vector<8x32xf32>
    %527 = vector.extract_strided_slice %511 {offsets = [0, 64], sizes = [8, 32], strides = [1, 1]} : vector<8x96xf32> to vector<8x32xf32>
    %528 = math.tanh %526 : vector<8x32xf32>
    %529 = arith.mulf %527, %528 : vector<8x32xf32>
    %530 = vector.extract_strided_slice %519 {offsets = [0, 32], sizes = [8, 32], strides = [1, 1]} : vector<8x96xf32> to vector<8x32xf32>
    %531 = arith.mulf %530, %492 : vector<8x32xf32>
    %532 = vector.extract_strided_slice %519 {offsets = [0, 0], sizes = [8, 32], strides = [1, 1]} : vector<8x96xf32> to vector<8x32xf32>
    %533 = arith.mulf %532, %521 : vector<8x32xf32>
    %534 = arith.addf %531, %533 : vector<8x32xf32>
    %535 = vector.extract_strided_slice %519 {offsets = [0, 64], sizes = [8, 32], strides = [1, 1]} : vector<8x96xf32> to vector<8x32xf32>
    %536 = math.tanh %534 : vector<8x32xf32>
    %537 = arith.mulf %535, %536 : vector<8x32xf32>
    %c4_i32_145 = arith.constant 4 : i32
    %c8_i32_146 = arith.constant 8 : i32
    %538 = arith.muli %c4_i32_145, %c8_i32_146 : i32
    %539 = tpu.assume_multiple %538, 8 : i32
    %540 = arith.index_cast %539 : i32 to index
    %c0_147 = arith.constant 0 : index
    %541 = vector.load %arg17[%540, %c0_147] : memref<64x128xf32, #tpu.memory_space<vmem>>, vector<8x128xf32>
    %cst_148 = arith.constant dense<0.000000e+00> : vector<8x128xf32>
    %542 = tpu.matmul %529, %382, %cst_148 {dimension_numbers = #tpu.dot_dimension_numbers<[1], [0], [0], [1], [0, 0, 1, 1], [], []>} : vector<8x32xf32>, vector<32x128xf32>, vector<8x128xf32> -> vector<8x128xf32>
    %543 = arith.addf %541, %542 : vector<8x128xf32>
    %544 = arith.index_cast %539 : i32 to index
    %c0_149 = arith.constant 0 : index
    %545 = vector.load %arg18[%544, %c0_149] : memref<64x128xf32, #tpu.memory_space<vmem>>, vector<8x128xf32>
    %cst_150 = arith.constant dense<0.000000e+00> : vector<8x128xf32>
    %546 = tpu.matmul %537, %383, %cst_150 {dimension_numbers = #tpu.dot_dimension_numbers<[1], [0], [0], [1], [0, 0, 1, 1], [], []>} : vector<8x32xf32>, vector<32x128xf32>, vector<8x128xf32> -> vector<8x128xf32>
    %547 = arith.addf %545, %546 : vector<8x128xf32>
    %548 = vector.extract_strided_slice %543 {offsets = [0, 0], sizes = [8, 96], strides = [1, 1]} : vector<8x128xf32> to vector<8x96xf32>
    %549 = arith.negf %548 : vector<8x96xf32>
    %550 = math.exp %549 : vector<8x96xf32>
    %cst_151 = arith.constant 1.000000e+00 : f32
    %551 = vector.broadcast %cst_151 : f32 to vector<8x96xf32>
    %552 = arith.addf %551, %550 : vector<8x96xf32>
    %553 = arith.divf %551, %552 : vector<8x96xf32>
    %554 = vector.extract_strided_slice %543 {offsets = [0, 96], sizes = [8, 32], strides = [1, 1]} : vector<8x128xf32> to vector<8x32xf32>
    %555 = math.tanh %554 : vector<8x32xf32>
    %556 = vector.extract_strided_slice %547 {offsets = [0, 0], sizes = [8, 96], strides = [1, 1]} : vector<8x128xf32> to vector<8x96xf32>
    %557 = arith.negf %556 : vector<8x96xf32>
    %558 = math.exp %557 : vector<8x96xf32>
    %cst_152 = arith.constant 1.000000e+00 : f32
    %559 = vector.broadcast %cst_152 : f32 to vector<8x96xf32>
    %560 = arith.addf %559, %558 : vector<8x96xf32>
    %561 = arith.divf %559, %560 : vector<8x96xf32>
    %562 = vector.extract_strided_slice %547 {offsets = [0, 96], sizes = [8, 32], strides = [1, 1]} : vector<8x128xf32> to vector<8x32xf32>
    %563 = math.tanh %562 : vector<8x32xf32>
    %564 = vector.extract_strided_slice %553 {offsets = [0, 32], sizes = [8, 32], strides = [1, 1]} : vector<8x96xf32> to vector<8x32xf32>
    %565 = arith.mulf %564, %526 : vector<8x32xf32>
    %566 = vector.extract_strided_slice %553 {offsets = [0, 0], sizes = [8, 32], strides = [1, 1]} : vector<8x96xf32> to vector<8x32xf32>
    %567 = arith.mulf %566, %555 : vector<8x32xf32>
    %568 = arith.addf %565, %567 : vector<8x32xf32>
    %569 = vector.extract_strided_slice %553 {offsets = [0, 64], sizes = [8, 32], strides = [1, 1]} : vector<8x96xf32> to vector<8x32xf32>
    %570 = math.tanh %568 : vector<8x32xf32>
    %571 = arith.mulf %569, %570 : vector<8x32xf32>
    %572 = vector.extract_strided_slice %561 {offsets = [0, 32], sizes = [8, 32], strides = [1, 1]} : vector<8x96xf32> to vector<8x32xf32>
    %573 = arith.mulf %572, %534 : vector<8x32xf32>
    %574 = vector.extract_strided_slice %561 {offsets = [0, 0], sizes = [8, 32], strides = [1, 1]} : vector<8x96xf32> to vector<8x32xf32>
    %575 = arith.mulf %574, %563 : vector<8x32xf32>
    %576 = arith.addf %573, %575 : vector<8x32xf32>
    %577 = vector.extract_strided_slice %561 {offsets = [0, 64], sizes = [8, 32], strides = [1, 1]} : vector<8x96xf32> to vector<8x32xf32>
    %578 = math.tanh %576 : vector<8x32xf32>
    %579 = arith.mulf %577, %578 : vector<8x32xf32>
    %c5_i32_153 = arith.constant 5 : i32
    %c8_i32_154 = arith.constant 8 : i32
    %580 = arith.muli %c5_i32_153, %c8_i32_154 : i32
    %581 = tpu.assume_multiple %580, 8 : i32
    %582 = arith.index_cast %581 : i32 to index
    %c0_155 = arith.constant 0 : index
    %583 = vector.load %arg17[%582, %c0_155] : memref<64x128xf32, #tpu.memory_space<vmem>>, vector<8x128xf32>
    %cst_156 = arith.constant dense<0.000000e+00> : vector<8x128xf32>
    %584 = tpu.matmul %571, %382, %cst_156 {dimension_numbers = #tpu.dot_dimension_numbers<[1], [0], [0], [1], [0, 0, 1, 1], [], []>} : vector<8x32xf32>, vector<32x128xf32>, vector<8x128xf32> -> vector<8x128xf32>
    %585 = arith.addf %583, %584 : vector<8x128xf32>
    %586 = arith.index_cast %581 : i32 to index
    %c0_157 = arith.constant 0 : index
    %587 = vector.load %arg18[%586, %c0_157] : memref<64x128xf32, #tpu.memory_space<vmem>>, vector<8x128xf32>
    %cst_158 = arith.constant dense<0.000000e+00> : vector<8x128xf32>
    %588 = tpu.matmul %579, %383, %cst_158 {dimension_numbers = #tpu.dot_dimension_numbers<[1], [0], [0], [1], [0, 0, 1, 1], [], []>} : vector<8x32xf32>, vector<32x128xf32>, vector<8x128xf32> -> vector<8x128xf32>
    %589 = arith.addf %587, %588 : vector<8x128xf32>
    %590 = vector.extract_strided_slice %585 {offsets = [0, 0], sizes = [8, 96], strides = [1, 1]} : vector<8x128xf32> to vector<8x96xf32>
    %591 = arith.negf %590 : vector<8x96xf32>
    %592 = math.exp %591 : vector<8x96xf32>
    %cst_159 = arith.constant 1.000000e+00 : f32
    %593 = vector.broadcast %cst_159 : f32 to vector<8x96xf32>
    %594 = arith.addf %593, %592 : vector<8x96xf32>
    %595 = arith.divf %593, %594 : vector<8x96xf32>
    %596 = vector.extract_strided_slice %585 {offsets = [0, 96], sizes = [8, 32], strides = [1, 1]} : vector<8x128xf32> to vector<8x32xf32>
    %597 = math.tanh %596 : vector<8x32xf32>
    %598 = vector.extract_strided_slice %589 {offsets = [0, 0], sizes = [8, 96], strides = [1, 1]} : vector<8x128xf32> to vector<8x96xf32>
    %599 = arith.negf %598 : vector<8x96xf32>
    %600 = math.exp %599 : vector<8x96xf32>
    %cst_160 = arith.constant 1.000000e+00 : f32
    %601 = vector.broadcast %cst_160 : f32 to vector<8x96xf32>
    %602 = arith.addf %601, %600 : vector<8x96xf32>
    %603 = arith.divf %601, %602 : vector<8x96xf32>
    %604 = vector.extract_strided_slice %589 {offsets = [0, 96], sizes = [8, 32], strides = [1, 1]} : vector<8x128xf32> to vector<8x32xf32>
    %605 = math.tanh %604 : vector<8x32xf32>
    %606 = vector.extract_strided_slice %595 {offsets = [0, 32], sizes = [8, 32], strides = [1, 1]} : vector<8x96xf32> to vector<8x32xf32>
    %607 = arith.mulf %606, %568 : vector<8x32xf32>
    %608 = vector.extract_strided_slice %595 {offsets = [0, 0], sizes = [8, 32], strides = [1, 1]} : vector<8x96xf32> to vector<8x32xf32>
    %609 = arith.mulf %608, %597 : vector<8x32xf32>
    %610 = arith.addf %607, %609 : vector<8x32xf32>
    %611 = vector.extract_strided_slice %595 {offsets = [0, 64], sizes = [8, 32], strides = [1, 1]} : vector<8x96xf32> to vector<8x32xf32>
    %612 = math.tanh %610 : vector<8x32xf32>
    %613 = arith.mulf %611, %612 : vector<8x32xf32>
    %614 = vector.extract_strided_slice %603 {offsets = [0, 32], sizes = [8, 32], strides = [1, 1]} : vector<8x96xf32> to vector<8x32xf32>
    %615 = arith.mulf %614, %576 : vector<8x32xf32>
    %616 = vector.extract_strided_slice %603 {offsets = [0, 0], sizes = [8, 32], strides = [1, 1]} : vector<8x96xf32> to vector<8x32xf32>
    %617 = arith.mulf %616, %605 : vector<8x32xf32>
    %618 = arith.addf %615, %617 : vector<8x32xf32>
    %619 = vector.extract_strided_slice %603 {offsets = [0, 64], sizes = [8, 32], strides = [1, 1]} : vector<8x96xf32> to vector<8x32xf32>
    %620 = math.tanh %618 : vector<8x32xf32>
    %621 = arith.mulf %619, %620 : vector<8x32xf32>
    %c6_i32_161 = arith.constant 6 : i32
    %c8_i32_162 = arith.constant 8 : i32
    %622 = arith.muli %c6_i32_161, %c8_i32_162 : i32
    %623 = tpu.assume_multiple %622, 8 : i32
    %624 = arith.index_cast %623 : i32 to index
    %c0_163 = arith.constant 0 : index
    %625 = vector.load %arg17[%624, %c0_163] : memref<64x128xf32, #tpu.memory_space<vmem>>, vector<8x128xf32>
    %cst_164 = arith.constant dense<0.000000e+00> : vector<8x128xf32>
    %626 = tpu.matmul %613, %382, %cst_164 {dimension_numbers = #tpu.dot_dimension_numbers<[1], [0], [0], [1], [0, 0, 1, 1], [], []>} : vector<8x32xf32>, vector<32x128xf32>, vector<8x128xf32> -> vector<8x128xf32>
    %627 = arith.addf %625, %626 : vector<8x128xf32>
    %628 = arith.index_cast %623 : i32 to index
    %c0_165 = arith.constant 0 : index
    %629 = vector.load %arg18[%628, %c0_165] : memref<64x128xf32, #tpu.memory_space<vmem>>, vector<8x128xf32>
    %cst_166 = arith.constant dense<0.000000e+00> : vector<8x128xf32>
    %630 = tpu.matmul %621, %383, %cst_166 {dimension_numbers = #tpu.dot_dimension_numbers<[1], [0], [0], [1], [0, 0, 1, 1], [], []>} : vector<8x32xf32>, vector<32x128xf32>, vector<8x128xf32> -> vector<8x128xf32>
    %631 = arith.addf %629, %630 : vector<8x128xf32>
    %632 = vector.extract_strided_slice %627 {offsets = [0, 0], sizes = [8, 96], strides = [1, 1]} : vector<8x128xf32> to vector<8x96xf32>
    %633 = arith.negf %632 : vector<8x96xf32>
    %634 = math.exp %633 : vector<8x96xf32>
    %cst_167 = arith.constant 1.000000e+00 : f32
    %635 = vector.broadcast %cst_167 : f32 to vector<8x96xf32>
    %636 = arith.addf %635, %634 : vector<8x96xf32>
    %637 = arith.divf %635, %636 : vector<8x96xf32>
    %638 = vector.extract_strided_slice %627 {offsets = [0, 96], sizes = [8, 32], strides = [1, 1]} : vector<8x128xf32> to vector<8x32xf32>
    %639 = math.tanh %638 : vector<8x32xf32>
    %640 = vector.extract_strided_slice %631 {offsets = [0, 0], sizes = [8, 96], strides = [1, 1]} : vector<8x128xf32> to vector<8x96xf32>
    %641 = arith.negf %640 : vector<8x96xf32>
    %642 = math.exp %641 : vector<8x96xf32>
    %cst_168 = arith.constant 1.000000e+00 : f32
    %643 = vector.broadcast %cst_168 : f32 to vector<8x96xf32>
    %644 = arith.addf %643, %642 : vector<8x96xf32>
    %645 = arith.divf %643, %644 : vector<8x96xf32>
    %646 = vector.extract_strided_slice %631 {offsets = [0, 96], sizes = [8, 32], strides = [1, 1]} : vector<8x128xf32> to vector<8x32xf32>
    %647 = math.tanh %646 : vector<8x32xf32>
    %648 = vector.extract_strided_slice %637 {offsets = [0, 32], sizes = [8, 32], strides = [1, 1]} : vector<8x96xf32> to vector<8x32xf32>
    %649 = arith.mulf %648, %610 : vector<8x32xf32>
    %650 = vector.extract_strided_slice %637 {offsets = [0, 0], sizes = [8, 32], strides = [1, 1]} : vector<8x96xf32> to vector<8x32xf32>
    %651 = arith.mulf %650, %639 : vector<8x32xf32>
    %652 = arith.addf %649, %651 : vector<8x32xf32>
    %653 = vector.extract_strided_slice %637 {offsets = [0, 64], sizes = [8, 32], strides = [1, 1]} : vector<8x96xf32> to vector<8x32xf32>
    %654 = math.tanh %652 : vector<8x32xf32>
    %655 = arith.mulf %653, %654 : vector<8x32xf32>
    %656 = vector.extract_strided_slice %645 {offsets = [0, 32], sizes = [8, 32], strides = [1, 1]} : vector<8x96xf32> to vector<8x32xf32>
    %657 = arith.mulf %656, %618 : vector<8x32xf32>
    %658 = vector.extract_strided_slice %645 {offsets = [0, 0], sizes = [8, 32], strides = [1, 1]} : vector<8x96xf32> to vector<8x32xf32>
    %659 = arith.mulf %658, %647 : vector<8x32xf32>
    %660 = arith.addf %657, %659 : vector<8x32xf32>
    %661 = vector.extract_strided_slice %645 {offsets = [0, 64], sizes = [8, 32], strides = [1, 1]} : vector<8x96xf32> to vector<8x32xf32>
    %662 = math.tanh %660 : vector<8x32xf32>
    %663 = arith.mulf %661, %662 : vector<8x32xf32>
    %c7_i32_169 = arith.constant 7 : i32
    %c8_i32_170 = arith.constant 8 : i32
    %664 = arith.muli %c7_i32_169, %c8_i32_170 : i32
    %665 = tpu.assume_multiple %664, 8 : i32
    %666 = arith.index_cast %665 : i32 to index
    %c0_171 = arith.constant 0 : index
    %667 = vector.load %arg17[%666, %c0_171] : memref<64x128xf32, #tpu.memory_space<vmem>>, vector<8x128xf32>
    %cst_172 = arith.constant dense<0.000000e+00> : vector<8x128xf32>
    %668 = tpu.matmul %655, %382, %cst_172 {dimension_numbers = #tpu.dot_dimension_numbers<[1], [0], [0], [1], [0, 0, 1, 1], [], []>} : vector<8x32xf32>, vector<32x128xf32>, vector<8x128xf32> -> vector<8x128xf32>
    %669 = arith.addf %667, %668 : vector<8x128xf32>
    %670 = arith.index_cast %665 : i32 to index
    %c0_173 = arith.constant 0 : index
    %671 = vector.load %arg18[%670, %c0_173] : memref<64x128xf32, #tpu.memory_space<vmem>>, vector<8x128xf32>
    %cst_174 = arith.constant dense<0.000000e+00> : vector<8x128xf32>
    %672 = tpu.matmul %663, %383, %cst_174 {dimension_numbers = #tpu.dot_dimension_numbers<[1], [0], [0], [1], [0, 0, 1, 1], [], []>} : vector<8x32xf32>, vector<32x128xf32>, vector<8x128xf32> -> vector<8x128xf32>
    %673 = arith.addf %671, %672 : vector<8x128xf32>
    %674 = vector.extract_strided_slice %669 {offsets = [0, 0], sizes = [8, 96], strides = [1, 1]} : vector<8x128xf32> to vector<8x96xf32>
    %675 = arith.negf %674 : vector<8x96xf32>
    %676 = math.exp %675 : vector<8x96xf32>
    %cst_175 = arith.constant 1.000000e+00 : f32
    %677 = vector.broadcast %cst_175 : f32 to vector<8x96xf32>
    %678 = arith.addf %677, %676 : vector<8x96xf32>
    %679 = arith.divf %677, %678 : vector<8x96xf32>
    %680 = vector.extract_strided_slice %669 {offsets = [0, 96], sizes = [8, 32], strides = [1, 1]} : vector<8x128xf32> to vector<8x32xf32>
    %681 = math.tanh %680 : vector<8x32xf32>
    %682 = vector.extract_strided_slice %673 {offsets = [0, 0], sizes = [8, 96], strides = [1, 1]} : vector<8x128xf32> to vector<8x96xf32>
    %683 = arith.negf %682 : vector<8x96xf32>
    %684 = math.exp %683 : vector<8x96xf32>
    %cst_176 = arith.constant 1.000000e+00 : f32
    %685 = vector.broadcast %cst_176 : f32 to vector<8x96xf32>
    %686 = arith.addf %685, %684 : vector<8x96xf32>
    %687 = arith.divf %685, %686 : vector<8x96xf32>
    %688 = vector.extract_strided_slice %673 {offsets = [0, 96], sizes = [8, 32], strides = [1, 1]} : vector<8x128xf32> to vector<8x32xf32>
    %689 = math.tanh %688 : vector<8x32xf32>
    %690 = vector.extract_strided_slice %679 {offsets = [0, 32], sizes = [8, 32], strides = [1, 1]} : vector<8x96xf32> to vector<8x32xf32>
    %691 = arith.mulf %690, %652 : vector<8x32xf32>
    %692 = vector.extract_strided_slice %679 {offsets = [0, 0], sizes = [8, 32], strides = [1, 1]} : vector<8x96xf32> to vector<8x32xf32>
    %693 = arith.mulf %692, %681 : vector<8x32xf32>
    %694 = arith.addf %691, %693 : vector<8x32xf32>
    %695 = vector.extract_strided_slice %679 {offsets = [0, 64], sizes = [8, 32], strides = [1, 1]} : vector<8x96xf32> to vector<8x32xf32>
    %696 = math.tanh %694 : vector<8x32xf32>
    %697 = arith.mulf %695, %696 : vector<8x32xf32>
    %698 = vector.extract_strided_slice %687 {offsets = [0, 32], sizes = [8, 32], strides = [1, 1]} : vector<8x96xf32> to vector<8x32xf32>
    %699 = arith.mulf %698, %660 : vector<8x32xf32>
    %700 = vector.extract_strided_slice %687 {offsets = [0, 0], sizes = [8, 32], strides = [1, 1]} : vector<8x96xf32> to vector<8x32xf32>
    %701 = arith.mulf %700, %689 : vector<8x32xf32>
    %702 = arith.addf %699, %701 : vector<8x32xf32>
    %703 = vector.extract_strided_slice %687 {offsets = [0, 64], sizes = [8, 32], strides = [1, 1]} : vector<8x96xf32> to vector<8x32xf32>
    %704 = math.tanh %702 : vector<8x32xf32>
    %705 = arith.mulf %703, %704 : vector<8x32xf32>
    %c7_i32_177 = arith.constant 7 : i32
    %706 = arith.mulf %697, %705 : vector<8x32xf32>
    %c0_178 = arith.constant 0 : index
    %c0_179 = arith.constant 0 : index
    %707 = vector.load %arg14[%c0_178, %c0_179] : memref<32x2xf32, #tpu.memory_space<vmem>>, vector<32x2xf32>
    %cst_180 = arith.constant dense<0.000000e+00> : vector<8x2xf32>
    %708 = tpu.matmul %706, %707, %cst_180 {dimension_numbers = #tpu.dot_dimension_numbers<[1], [0], [0], [1], [0, 0, 1, 1], [], []>} : vector<8x32xf32>, vector<32x2xf32>, vector<8x2xf32> -> vector<8x2xf32>
    %c0_181 = arith.constant 0 : index
    %c0_182 = arith.constant 0 : index
    %709 = vector.load %arg15[%c0_181, %c0_182] : memref<1x2xf32, #tpu.memory_space<vmem>>, vector<1x2xf32>
    %710 = vector.broadcast %709 : vector<1x2xf32> to vector<8x2xf32>
    %711 = arith.addf %708, %710 : vector<8x2xf32>
    %712 = arith.negf %711 : vector<8x2xf32>
    %713 = math.exp %712 : vector<8x2xf32>
    %cst_183 = arith.constant 1.000000e+00 : f32
    %714 = vector.broadcast %cst_183 : f32 to vector<8x2xf32>
    %715 = arith.addf %714, %713 : vector<8x2xf32>
    %716 = arith.divf %714, %715 : vector<8x2xf32>
    %c0_184 = arith.constant 0 : index
    %c0_185 = arith.constant 0 : index
    %717 = vector.load %arg16[%c0_184, %c0_185] : memref<8x2xf32, #tpu.memory_space<vmem>>, vector<8x2xf32>
    tpu.vector_store %arg16[%c0_184, %c0_185], %716 {strides = array<i32>} : memref<8x2xf32, #tpu.memory_space<vmem>>, vector<8x2xf32>,
    return
  }
}

</mosaic_0001>

<bundles_post_ra>
// kernel: sepsis_lstm_forward.1
= control target key start
LH: loop header
LB: loop body
LE: loop exit
PB: predicated region body
PF: predicated region fallthrough
CT: control target
= control target key end

     0   :  { %vm74_vm0 = vcmask 64512   ;;  %s2849_s18 = smov 32   ;;  %s2850_s19 = smov 64   ;;  %vm302_vm9 = vcmask 261120   ;;  %s3624_s2 = inlined_call_operand.vmem [shape: f32[8,128], index: 2, kind: input, shape index: {}]   ;;  %s3625_s0 = inlined_call_operand.vmem [shape: f32[64,8], index: 0, kind: input, shape index: {}]   ;;  %s3626_s5 = inlined_call_operand.vmem [shape: f32[8,128], index: 5, kind: input, shape index: {}]   ;;  %s3627_s1 = inlined_call_operand.vmem [shape: f32[64,8], index: 1, kind: input, shape index: {}]   ;;  %s3628_s4 = inlined_call_operand.vmem [shape: f32[1,128], index: 4, kind: input, shape index: {}]   ;;  %s3629_s7 = inlined_call_operand.vmem [shape: f32[1,128], index: 7, kind: input, shape index: {}]   ;;  %s3630_s3 = inlined_call_operand.vmem [shape: f32[32,128], index: 3, kind: input, shape index: {}]   ;;  %s3631_s6 = inlined_call_operand.vmem [shape: f32[32,128], index: 6, kind: input, shape index: {}]   ;;  %s3632_s11 = inlined_call_operand.vmem [shape: f32[32,128], index: 11, kind: input, shape index: {}]   ;;  %s3633_s8 = inlined_call_operand.vmem [shape: f32[32,128], index: 8, kind: input, shape index: {}]   ;;  %s3634_s13 = inlined_call_operand.vmem [shape: f32[1,128], index: 13, kind: input, shape index: {}]   ;;  %s3635_s10 = inlined_call_operand.vmem [shape: f32[1,128], index: 10, kind: input, shape index: {}]   ;;  %s3636_s9 = inlined_call_operand.vmem [shape: f32[32,128], index: 9, kind: input, shape index: {}]   ;;  %s3637_s12 = inlined_call_operand.vmem [shape: f32[32,128], index: 12, kind: input, shape index: {}]   ;;  %s3638_s14 = inlined_call_operand.vmem [shape: f32[32,2], index: 14, kind: input, shape index: {}]   ;;  %s3639_s15 = inlined_call_operand.vmem [shape: f32[1,2], index: 15, kind: input, shape index: {}]   ;;  %s3640_s16 = inlined_call_operand.vmem [shape: f32[8,2], index: 16, kind: output, shape index: {}]  }
   0x1   :  { %3641 = sst [smem:[#allocation6_spill]] %s3624_s2  ;;  %v53_v1 = vld [vmem:[%s3625_s0] sm:$0xff]  ;;  %v2972_v44 = vld [vmem:[%s3630_s3 + $0x18] sm:$0xff]  ;;  %v2977_v45 = vld [vmem:[%s3630_s3 + $0x10] sm:$0xff] }
   0x2   :  { %s3642_s23 = sld [smem:[#allocation6_spill]]  ;;  %v148_v2 = vld [vmem:[%s3626_s5] sm:$0xff]  ;;  %325 = vmatpush.msra.mxu2 %v2972_v44  ;;  %v2983_v46 = vld [vmem:[%s3630_s3 + $0x8] sm:$0xff]  ;;  %v3003_v52 = vld [vmem:[%s3631_s6 + $0x18] sm:$0xff] }
   0x3   :  { %192 = vmatpush.msra.mxu1 %v148_v2  ;;  %v61_v3 = vld [vmem:[%s3627_s1] sm:$0xff]  ;;  %v3008_v53 = vld [vmem:[%s3631_s6 + $0x10] sm:$0xff]  ;;  %v54_v54 = vld [vmem:[%s3625_s0 + $0x8] sm:$0xff]  ;;  %350 = vmatpush.msra.mxu3 %v3003_v52 }
   0x4   :  { %2490 = vmatmul.msk.f32.vlgmr.msra.gmra.mxu1 %vm74_vm0, %v61_v3  ;;  %v2953_v4 = vld [vmem:[%s3628_s4] ss:$0 sm:$0xff]  ;;  %326 = vmatpush.msra.mxu2 %v2977_v45  ;;  %v3018_v55 = vld [vmem:[%s3631_s6 + $0x8] sm:$0xff] }
   0x5   :  { %v2959_v7 = vld [vmem:[%s3629_s7] ss:$0 sm:$0xff]  ;;  %351 = vmatpush.msra.mxu3 %v3008_v53  ;;  %v62_v57 = vld [vmem:[%s3627_s1 + $0x8] sm:$0xff] }
   0x6   :  { %v2989_v47 = vld [vmem:[%s3630_s3] sm:$0xff]  ;;  %327 = vmatpush.msra.mxu2 %v2983_v46 }
   0x7   :  { %v3024_v56 = vld [vmem:[%s3631_s6] sm:$0xff]  ;;  %352 = vmatpush.msra.mxu3 %v3018_v55 }
   0x8   :  { %v69_v0 = vld [vmem:[%s3642_s23] sm:$0xff]  ;;  %328 = vmatpush.msra.mxu2 %v2989_v47 }
   0x9   :  { %114 = vmatpush.msra.mxu0 %v69_v0  ;;  %353 = vmatpush.msra.mxu3 %v3024_v56 }
   0xa   :  { %2482 = vmatmul.msk.f32.vlgmr.msra.gmra.mxu0 %vm74_vm0, %v53_v1  ;;  %469 = vmatpush.msrb.mxu2 %v2972_v44 }
   0xb   :  { %494 = vmatpush.msrb.mxu3 %v3003_v52 }
   0xc   :  { %470 = vmatpush.msrb.mxu2 %v2977_v45  ;;  %2491 = vmatmul.msk.f32.gmra.mxu1 %vm74_vm0, %v62_v57 }
   0xd   :  { %495 = vmatpush.msrb.mxu3 %v3008_v53 }
   0xe   :  { %471 = vmatpush.msrb.mxu2 %v2983_v46 }
   0xf   :  { %496 = vmatpush.msrb.mxu3 %v3018_v55 }
  0x10   :  { %472 = vmatpush.msrb.mxu2 %v2989_v47 }
  0x11   :  { %497 = vmatpush.msrb.mxu3 %v3024_v56 }
  0x12   :  { %2483 = vmatmul.msk.f32.gmra.mxu0 %vm74_vm0, %v54_v54 }
  0x81   :  { %v194_v8 = vpop.f32.mrf.mxu1 }
  0x82   :  { %v195_v9 = vadd.f32 %v2959_v7, %v194_v8 }
  0x84   :  { %v2499_v13 = vmul.f32 -1.442695, %v195_v9 }
  0x87   :  { %v116_v5 = vpop.f32.mrf.mxu0 }
  0x88   :  { %v117_v6 = vadd.f32 %v2953_v4, %v116_v5 }
  0x89   :  { %v197_v0 = vpop.f32.mrf.mxu1 }
  0x8a   :  { %2583 = vtanh.f32 %v117_v6  ;;  %v2498_v12 = vmul.f32 -1.442695, %v117_v6  ;;  %v198_v1 = vadd.f32 %v2959_v7, %v197_v0 }
  0x8b   :  { %2585 = vtanh.f32 %v195_v9 }
  0x8c   :  { %2587 = vpow2.f32 %v2498_v12 }
  0x8d   :  { %2589 = vpow2.f32 %v2499_v13 }
  0x8f   :  { %v119_v60 = vpop.f32.mrf.mxu0 }
  0x90   :  { %v2584_v10 = vpop.eup %2583  ;;  %v120_v61 = vadd.f32 %v2953_v4, %v119_v60  ;;  %v55_v60 = vld [vmem:[%s3625_s0 + $0x10] sm:$0xff] }
  0x91   :  { %277 = vrot.lane.b32.xlu0 %v2584_v10, %s2849_s18  ;;  %v2586_v11 = vpop.eup %2585  ;;  %2484 = vmatmul.msk.f32.gmra.mxu0 %vm74_vm0, %v55_v60 }
  0x92   :  { %v2588_v14 = vpop.eup %2587 }
  0x93   :  { %v239_v15 = vadd.f32 1.0, %v2588_v14  ;;  %v2590_v16 = vpop.eup %2589 }
  0x94   :  { %v259_v17 = vadd.f32 1.0, %v2590_v16 }
  0x95   :  { %2591 = vrcp.f32 %v239_v15  ;;  %v251_v26 = vand.u32 2147483648, %v239_v15  ;;  %vm245_vm2 = vweird.f32 %v239_v15  ;;  %v249_v27 = vand.u32 2147483647, %v239_v15 }
  0x96   :  { %2593 = vrcp.f32 %v259_v17  ;;  %vm265_vm5 = vweird.f32 %v259_v17  ;;  %v271_v33 = vand.u32 2147483648, %v259_v17  ;;  %v269_v36 = vand.u32 2147483647, %v259_v17 }
  0x97   :  { %v252_v30 = vor.u32 1.1754944e-38, %v251_v26  ;;  %vm250_vm4 = vcmp.eq.f32.partialorder %v249_v27, 8.507059e+37 }
  0x98   :  { %v272_v37 = vor.u32 1.1754944e-38, %v271_v33  ;;  %vm270_vm8 = vcmp.eq.f32.partialorder %v269_v36, 8.507059e+37 }
  0x99   :  { %288 = vrot.lane.b32.xlu0 %v2586_v11, %s2849_s18 }
  0x9b   :  { %v2592_v18 = vpop.eup %2591 }
  0x9c   :  { %v241_v19 = vmul.f32 %v2592_v18, %v239_v15  ;;  %v2594_v21 = vpop.eup %2593  ;;  %vm246_vm1 = vweird.f32 %v2592_v18 }
  0x9d   :  { %v261_v23 = vmul.f32 %v2594_v21, %v259_v17  ;;  %vm247_vm3 = vmor %vm245_vm2, %vm246_vm1  ;;  %vm266_vm6 = vweird.f32 %v2594_v21 }
  0x9e   :  { %v242_v20 = vsub.f32 1.0, %v241_v19  ;;  %vm267_vm7 = vmor %vm265_vm5, %vm266_vm6 }
  0x9f   :  { %v262_v25 = vsub.f32 1.0, %v261_v23 }
  0xa0   :  { %v243_v22 = vmul.f32 %v2592_v18, %v242_v20 }
  0xa1   :  { %v263_v29 = vmul.f32 %v2594_v21, %v262_v25 }
  0xa2   :  { %v244_v24 = vadd.f32 %v2592_v18, %v243_v22 }
  0xa3   :  { %v264_v35 = vadd.f32 %v2594_v21, %v263_v29 }
  0xa4   :  { %v248_v28 = vsel %vm247_vm3, %v2592_v18, %v244_v24 }
  0xa5   :  { %v253_v32 = vsel %vm250_vm4, %v252_v30, %v248_v28  ;;  %v268_v38 = vsel %vm267_vm7, %v2594_v21, %v264_v35 }
  0xa6   :  { %v273_v39 = vsel %vm270_vm8, %v272_v37, %v268_v38 }
 0x103   :  { %v278_v31 = vpop.permute.xlu0 %277 }
 0x104   :  { %v280_v34 = vmul.f32 %v278_v31, %v253_v32 }
 0x106   :  { %2595 = vtanh.f32 %v280_v34 }
 0x10b   :  { %v289_v40 = vpop.permute.xlu0 %288 }
 0x10c   :  { %v2596_v41 = vpop.eup %2595  ;;  %v2964_v42 = vmul.f32 %v289_v40, %v273_v39 }
 0x10d   :  { %283 = vrot.lane.b32.xlu1 %v2596_v41, %s2850_s19 }
 0x10e   :  { %2597 = vtanh.f32 %v2964_v42  ;;  %v122_v0 = vpop.f32.mrf.mxu0 }
 0x114   :  { %v2598_v43 = vpop.eup %2597 }
 0x115   :  { %294 = vrot.lane.b32.xlu1 %v2598_v43, %s2850_s19 }
 0x17f   :  { %v284_v48 = vpop.permute.xlu1 %283 }
 0x180   :  { %v286_v49 = vmul.f32 %v284_v48, %v253_v32 }
 0x182   :  { %299 = vrot.lane.b32.xlu2 %v286_v49, %s2850_s19 }
 0x187   :  { %v295_v50 = vpop.permute.xlu1 %294 }
 0x188   :  { %v297_v51 = vmul.f32 %v295_v50, %v273_v39 }
 0x18a   :  { %305 = vrot.lane.b32.xlu2 %v297_v51, %s2850_s19 }
 0x192   :  { %400 = vrot.lane.b32.xlu2 %v280_v34, %s2849_s18 }
 0x1dc   :  { %v300_v58 = vpop.permute.xlu2 %299 }
 0x1dd   :  { %303 = vst.msk [vmem:[#allocation4] sm:$0xff] %vm302_vm9, %v300_v58  ;;  %2500 = vmatmul.msk.f32.vlgmr.msra.gmra.mxu2 %vm302_vm9, %v300_v58 }
 0x1de   :  { %605 = vmatpush.msra.mxu2 %v2972_v44 }
 0x1e0   :  { %606 = vmatpush.msra.mxu2 %v2977_v45 }
 0x1e2   :  { %607 = vmatpush.msra.mxu2 %v2983_v46 }
 0x1e4   :  { %v306_v59 = vpop.permute.xlu2 %305  ;;  %608 = vmatpush.msra.mxu2 %v2989_v47 }
 0x1e5   :  { %308 = vst.msk [vmem:[#allocation5] sm:$0xff] %vm302_vm9, %v306_v59  ;;  %2501 = vmatmul.msk.f32.vlgmr.msra.gmra.mxu3 %vm302_vm9, %v306_v59 }
 0x1e6   :  { %630 = vmatpush.msra.mxu3 %v3003_v52 }
 0x1e8   :  { %631 = vmatpush.msra.mxu3 %v3008_v53 }
 0x1ea   :  { %632 = vmatpush.msra.mxu3 %v3018_v55 }
 0x1ec   :  { %633 = vmatpush.msra.mxu3 %v3024_v56  ;;  %v401_v38 = vpop.permute.xlu2 %400 }
 0x260   :  { %v330_v62 = vpop.f32.mrf.mxu2 }
 0x261   :  { %v333_v63 = vadd.f32 %v330_v62, %v120_v61  ;;  %v63_v61 = vld [vmem:[%s3627_s1 + $0x10] sm:$0xff] }
 0x262   :  { %2492 = vmatmul.msk.f32.gmra.mxu1 %vm74_vm0, %v63_v61 }
 0x263   :  { %2599 = vtanh.f32 %v333_v63  ;;  %v2502_v8 = vmul.f32 -1.442695, %v333_v63 }
 0x268   :  { %v355_v2 = vpop.f32.mrf.mxu3 }
 0x269   :  { %v2600_v3 = vpop.eup %2599  ;;  %v358_v5 = vadd.f32 %v355_v2, %v198_v1  ;;  %v123_v1 = vadd.f32 %v2953_v4, %v122_v0 }
 0x26a   :  { %405 = vrot.lane.b32.xlu0 %v2600_v3, %s2849_s18 }
 0x26b   :  { %2601 = vtanh.f32 %v358_v5  ;;  %v2503_v9 = vmul.f32 -1.442695, %v358_v5 }
 0x26c   :  { %2603 = vpow2.f32 %v2502_v8 }
 0x26d   :  { %2605 = vpow2.f32 %v2503_v9 }
 0x271   :  { %v2602_v6 = vpop.eup %2601 }
 0x272   :  { %421 = vrot.lane.b32.xlu0 %v2964_v42, %s2849_s18  ;;  %426 = vrot.lane.b32.xlu1 %v2602_v6, %s2849_s18  ;;  %v2604_v10 = vpop.eup %2603 }
 0x273   :  { %v362_v11 = vadd.f32 1.0, %v2604_v10  ;;  %v2606_v12 = vpop.eup %2605 }
 0x274   :  { %v382_v13 = vadd.f32 1.0, %v2606_v12 }
 0x275   :  { %2607 = vrcp.f32 %v362_v11  ;;  %v374_v22 = vand.u32 2147483648, %v362_v11  ;;  %vm368_vm11 = vweird.f32 %v362_v11  ;;  %v372_v23 = vand.u32 2147483647, %v362_v11 }
 0x276   :  { %2609 = vrcp.f32 %v382_v13  ;;  %v394_v31 = vand.u32 2147483648, %v382_v13  ;;  %vm388_vm15 = vweird.f32 %v382_v13  ;;  %v392_v32 = vand.u32 2147483647, %v382_v13 }
 0x277   :  { %v375_v26 = vor.u32 1.1754944e-38, %v374_v22  ;;  %vm373_vm13 = vcmp.eq.f32.partialorder %v372_v23, 8.507059e+37 }
 0x278   :  { %v395_v34 = vor.u32 1.1754944e-38, %v394_v31  ;;  %vm393_vm2 = vcmp.eq.f32.partialorder %v392_v32, 8.507059e+37 }
 0x27b   :  { %v2608_v14 = vpop.eup %2607 }
 0x27c   :  { %v364_v15 = vmul.f32 %v2608_v14, %v362_v11  ;;  %v2610_v17 = vpop.eup %2609  ;;  %vm369_vm10 = vweird.f32 %v2608_v14 }
 0x27d   :  { %v384_v19 = vmul.f32 %v2610_v17, %v382_v13  ;;  %vm370_vm12 = vmor %vm368_vm11, %vm369_vm10  ;;  %vm389_vm14 = vweird.f32 %v2610_v17 }
 0x27e   :  { %v365_v16 = vsub.f32 1.0, %v364_v15  ;;  %vm390_vm1 = vmor %vm388_vm15, %vm389_vm14 }
 0x27f   :  { %v385_v21 = vsub.f32 1.0, %v384_v19 }
 0x280   :  { %v366_v18 = vmul.f32 %v2608_v14, %v365_v16 }
 0x281   :  { %v386_v25 = vmul.f32 %v2610_v17, %v385_v21 }
 0x282   :  { %v367_v20 = vadd.f32 %v2608_v14, %v366_v18 }
 0x283   :  { %v387_v30 = vadd.f32 %v2610_v17, %v386_v25 }
 0x284   :  { %v371_v24 = vsel %vm370_vm12, %v2608_v14, %v367_v20 }
 0x285   :  { %v376_v28 = vsel %vm373_vm13, %v375_v26, %v371_v24  ;;  %v391_v33 = vsel %vm390_vm1, %v2610_v17, %v387_v30 }
 0x286   :  { %v396_v35 = vsel %vm393_vm2, %v395_v34, %v391_v33  ;;  %v403_v48 = vmul.f32 %v401_v38, %v376_v28 }
 0x2dc   :  { %v406_v27 = vpop.permute.xlu0 %405 }
 0x2dd   :  { %v408_v29 = vmul.f32 %v406_v27, %v376_v28 }
 0x2df   :  { %410 = vrot.lane.b32.xlu1 %v408_v29, %s2849_s18  ;;  %v200_v5 = vpop.f32.mrf.mxu1 }
 0x2e0   :  { %v201_v6 = vadd.f32 %v2959_v7, %v200_v5 }
 0x2e4   :  { %v427_v36 = vpop.permute.xlu1 %426  ;;  %v422_v39 = vpop.permute.xlu0 %421 }
 0x2e5   :  { %v429_v37 = vmul.f32 %v427_v36, %v396_v35  ;;  %v424_v40 = vmul.f32 %v422_v39, %v396_v35 }
 0x2e7   :  { %431 = vrot.lane.b32.xlu2 %v429_v37, %s2849_s18 }
 0x341   :  { %v432_v41 = vpop.permute.xlu2 %431 }
 0x342   :  { %v3056_v42 = vadd.f32 %v432_v41, %v424_v40 }
 0x344   :  { %2611 = vtanh.f32 %v3056_v42 }
 0x34a   :  { %v2612_v43 = vpop.eup %2611 }
 0x34b   :  { %437 = vrot.lane.b32.xlu1 %v2612_v43, %s2849_s18 }
 0x351   :  { %v411_v49 = vpop.permute.xlu1 %410 }
 0x352   :  { %v3060_v50 = vadd.f32 %v411_v49, %v403_v48 }
 0x354   :  { %2613 = vtanh.f32 %v3060_v50 }
 0x35a   :  { %v2614_v51 = vpop.eup %2613 }
 0x35b   :  { %416 = vrot.lane.b32.xlu0 %v2614_v51, %s2849_s18 }
 0x3bd   :  { %v438_v54 = vpop.permute.xlu1 %437 }
 0x3be   :  { %v440_v57 = vmul.f32 %v438_v54, %v396_v35 }
 0x3c0   :  { %448 = vrot.lane.b32.xlu0 %v440_v57, %s2850_s19 }
 0x3cd   :  { %v417_v58 = vpop.permute.xlu0 %416 }
 0x3ce   :  { %v419_v59 = vmul.f32 %v417_v58, %v376_v28 }
 0x3d0   :  { %442 = vrot.lane.b32.xlu2 %v419_v59, %s2850_s19 }
 0x42a   :  { %v443_v62 = vpop.permute.xlu2 %442 }
 0x42b   :  { %446 = vst.msk [vmem:[#allocation4 + $0x8] sm:$0xff] %vm302_vm9, %v443_v62  ;;  %2504 = vmatmul.msk.f32.vlgmr.msrb.gmra.mxu2 %vm302_vm9, %v443_v62 }
 0x42c   :  { %741 = vmatpush.msrb.mxu2 %v2972_v44 }
 0x42e   :  { %742 = vmatpush.msrb.mxu2 %v2977_v45 }
 0x430   :  { %743 = vmatpush.msrb.mxu2 %v2983_v46 }
 0x432   :  { %v449_v63 = vpop.permute.xlu0 %448  ;;  %744 = vmatpush.msrb.mxu2 %v2989_v47 }
 0x433   :  { %452 = vst.msk [vmem:[#allocation5 + $0x8] sm:$0xff] %vm302_vm9, %v449_v63  ;;  %2505 = vmatmul.msk.f32.vlgmr.msrb.gmra.mxu3 %vm302_vm9, %v449_v63  ;;  %v56_v63 = vld [vmem:[%s3625_s0 + $0x18] sm:$0xff] }
 0x434   :  { %766 = vmatpush.msrb.mxu3 %v3003_v52  ;;  %2485 = vmatmul.msk.f32.gmra.mxu0 %vm74_vm0, %v56_v63 }
 0x436   :  { %767 = vmatpush.msrb.mxu3 %v3008_v53 }
 0x438   :  { %768 = vmatpush.msrb.mxu3 %v3018_v55 }
 0x43a   :  { %769 = vmatpush.msrb.mxu3 %v3024_v56 }
 0x4ae   :  { %v474_v2 = vpop.f32.mrf.mxu2 }
 0x4af   :  { %v477_v3 = vadd.f32 %v474_v2, %v123_v1 }
 0x4b1   :  { %2615 = vtanh.f32 %v477_v3  ;;  %v2506_v15 = vmul.f32 -1.442695, %v477_v3 }
 0x4b6   :  { %v499_v8 = vpop.f32.mrf.mxu3 }
 0x4b7   :  { %v2616_v9 = vpop.eup %2615  ;;  %v502_v10 = vadd.f32 %v499_v8, %v201_v6 }
 0x4b8   :  { %545 = vrot.lane.b32.xlu1 %v2616_v9, %s2849_s18  ;;  %v125_v9 = vpop.f32.mrf.mxu0 }
 0x4b9   :  { %2617 = vtanh.f32 %v502_v10  ;;  %v2507_v12 = vmul.f32 -1.442695, %v502_v10  ;;  %v126_v10 = vadd.f32 %v2953_v4, %v125_v9 }
 0x4bb   :  { %2619 = vpow2.f32 %v2507_v12 }
 0x4bf   :  { %v2618_v11 = vpop.eup %2617 }
 0x4c0   :  { %562 = vrot.lane.b32.xlu2 %v2618_v11, %s2849_s18 }
 0x4c1   :  { %v2620_v13 = vpop.eup %2619 }
 0x4c2   :  { %v526_v14 = vadd.f32 1.0, %v2620_v13 }
 0x4c4   :  { %2621 = vrcp.f32 %v526_v14  ;;  %v538_v24 = vand.u32 2147483648, %v526_v14  ;;  %vm532_vm4 = vweird.f32 %v526_v14  ;;  %v536_v25 = vand.u32 2147483647, %v526_v14 }
 0x4c5   :  { %2623 = vpow2.f32 %v2506_v15 }
 0x4c6   :  { %v539_v28 = vor.u32 1.1754944e-38, %v538_v24  ;;  %vm537_vm6 = vcmp.eq.f32.partialorder %v536_v25, 8.507059e+37 }
 0x4ca   :  { %v2622_v16 = vpop.eup %2621 }
 0x4cb   :  { %v2624_v17 = vpop.eup %2623  ;;  %v528_v18 = vmul.f32 %v2622_v16, %v526_v14  ;;  %vm533_vm3 = vweird.f32 %v2622_v16 }
 0x4cc   :  { %v506_v19 = vadd.f32 1.0, %v2624_v17  ;;  %vm534_vm5 = vmor %vm532_vm4, %vm533_vm3 }
 0x4cd   :  { %v529_v20 = vsub.f32 1.0, %v528_v18 }
 0x4ce   :  { %2625 = vrcp.f32 %v506_v19  ;;  %v518_v35 = vand.u32 2147483648, %v506_v19  ;;  %vm512_vm8 = vweird.f32 %v506_v19  ;;  %v516_v36 = vand.u32 2147483647, %v506_v19 }
 0x4cf   :  { %v530_v21 = vmul.f32 %v2622_v16, %v529_v20 }
 0x4d0   :  { %v519_v38 = vor.u32 1.1754944e-38, %v518_v35  ;;  %vm517_vm11 = vcmp.eq.f32.partialorder %v516_v36, 8.507059e+37 }
 0x4d1   :  { %v531_v22 = vadd.f32 %v2622_v16, %v530_v21 }
 0x4d3   :  { %v535_v26 = vsel %vm534_vm5, %v2622_v16, %v531_v22 }
 0x4d4   :  { %v2626_v23 = vpop.eup %2625  ;;  %v540_v29 = vsel %vm537_vm6, %v539_v28, %v535_v26 }
 0x4d5   :  { %v508_v27 = vmul.f32 %v2626_v23, %v506_v19  ;;  %vm513_vm7 = vweird.f32 %v2626_v23  ;;  %v560_v43 = vmul.f32 %v540_v29, %v3056_v42 }
 0x4d6   :  { %vm514_vm10 = vmor %vm512_vm8, %vm513_vm7 }
 0x4d7   :  { %v509_v32 = vsub.f32 1.0, %v508_v27 }
 0x4d9   :  { %v510_v33 = vmul.f32 %v2626_v23, %v509_v32 }
 0x4db   :  { %v511_v34 = vadd.f32 %v2626_v23, %v510_v33 }
 0x4dd   :  { %v515_v37 = vsel %vm514_vm10, %v2626_v23, %v511_v34 }
 0x4de   :  { %v520_v40 = vsel %vm517_vm11, %v519_v38, %v515_v37 }
 0x4df   :  { %v543_v54 = vmul.f32 %v520_v40, %v3060_v50  ;;  %v64_v50 = vld [vmem:[%s3627_s1 + $0x18] sm:$0xff] }
 0x4e0   :  { %2493 = vmatmul.msk.f32.gmra.mxu1 %vm74_vm0, %v64_v50 }
 0x51a   :  { %v563_v30 = vpop.permute.xlu2 %562 }
 0x51b   :  { %v565_v31 = vmul.f32 %v563_v30, %v540_v29 }
 0x51d   :  { %567 = vrot.lane.b32.xlu1 %v565_v31, %s2849_s18 }
 0x52a   :  { %v546_v39 = vpop.permute.xlu1 %545 }
 0x52b   :  { %v548_v41 = vmul.f32 %v546_v39, %v520_v40 }
 0x52d   :  { %550 = vrot.lane.b32.xlu0 %v548_v41, %s2849_s18 }
 0x55d   :  { %v203_v2 = vpop.f32.mrf.mxu1 }
 0x55e   :  { %v204_v3 = vadd.f32 %v2959_v7, %v203_v2 }
 0x58f   :  { %v568_v48 = vpop.permute.xlu1 %567 }
 0x590   :  { %v3093_v49 = vadd.f32 %v568_v48, %v560_v43 }
 0x592   :  { %2627 = vtanh.f32 %v3093_v49 }
 0x598   :  { %v2628_v51 = vpop.eup %2627 }
 0x599   :  { %573 = vrot.lane.b32.xlu0 %v2628_v51, %s2849_s18 }
 0x59f   :  { %v551_v57 = vpop.permute.xlu0 %550 }
 0x5a0   :  { %v3098_v58 = vadd.f32 %v551_v57, %v543_v54 }
 0x5a2   :  { %2629 = vtanh.f32 %v3098_v58 }
 0x5a8   :  { %v2630_v59 = vpop.eup %2629 }
 0x5a9   :  { %556 = vrot.lane.b32.xlu2 %v2630_v59, %s2849_s18 }
 0x603   :  { %v557_v60 = vpop.permute.xlu2 %556 }
 0x604   :  { %v559_v42 = vmul.f32 %v557_v60, %v520_v40 }
 0x606   :  { %578 = vrot.lane.b32.xlu1 %v559_v42, %s2850_s19 }
 0x60b   :  { %v574_v61 = vpop.permute.xlu0 %573 }
 0x60c   :  { %v576_v62 = vmul.f32 %v574_v61, %v540_v29 }
 0x60e   :  { %584 = vrot.lane.b32.xlu2 %v576_v62, %s2850_s19 }
 0x668   :  { %v585_v0 = vpop.permute.xlu2 %584 }
 0x669   :  { %588 = vst.msk [vmem:[#allocation5 + $0x10] sm:$0xff] %vm302_vm9, %v585_v0  ;;  %2509 = vmatmul.msk.f32.vlgmr.msra.gmra.mxu3 %vm302_vm9, %v585_v0 }
 0x66a   :  { %902 = vmatpush.msra.mxu3 %v3003_v52 }
 0x66c   :  { %903 = vmatpush.msra.mxu3 %v3008_v53 }
 0x66e   :  { %904 = vmatpush.msra.mxu3 %v3018_v55 }
 0x670   :  { %905 = vmatpush.msra.mxu3 %v3024_v56 }
 0x678   :  { %v579_v1 = vpop.permute.xlu1 %578 }
 0x679   :  { %582 = vst.msk [vmem:[#allocation4 + $0x10] sm:$0xff] %vm302_vm9, %v579_v1  ;;  %2508 = vmatmul.msk.f32.vlgmr.msra.gmra.mxu2 %vm302_vm9, %v579_v1  ;;  %v57_v1 = vld [vmem:[%s3625_s0 + $0x20] sm:$0xff] }
 0x67a   :  { %877 = vmatpush.msra.mxu2 %v2972_v44  ;;  %2486 = vmatmul.msk.f32.gmra.mxu0 %vm74_vm0, %v57_v1 }
 0x67c   :  { %878 = vmatpush.msra.mxu2 %v2977_v45 }
 0x67e   :  { %879 = vmatpush.msra.mxu2 %v2983_v46 }
 0x680   :  { %880 = vmatpush.msra.mxu2 %v2989_v47 }
 0x6ec   :  { %v635_v5 = vpop.f32.mrf.mxu3 }
 0x6ed   :  { %v638_v6 = vadd.f32 %v635_v5, %v204_v3 }
 0x6ef   :  { %2631 = vtanh.f32 %v638_v6  ;;  %v2511_v14 = vmul.f32 -1.442695, %v638_v6 }
 0x6f5   :  { %v2632_v8 = vpop.eup %2631 }
 0x6f6   :  { %698 = vrot.lane.b32.xlu1 %v2632_v8, %s2849_s18 }
 0x6fc   :  { %v610_v11 = vpop.f32.mrf.mxu2 }
 0x6fd   :  { %v613_v12 = vadd.f32 %v610_v11, %v126_v10  ;;  %v128_v11 = vpop.f32.mrf.mxu0 }
 0x6ff   :  { %2633 = vtanh.f32 %v613_v12  ;;  %v2510_v17 = vmul.f32 -1.442695, %v613_v12  ;;  %v129_v12 = vadd.f32 %v2953_v4, %v128_v11 }
 0x700   :  { %2635 = vpow2.f32 %v2511_v14 }
 0x705   :  { %v2634_v13 = vpop.eup %2633 }
 0x706   :  { %681 = vrot.lane.b32.xlu0 %v2634_v13, %s2849_s18  ;;  %v2636_v15 = vpop.eup %2635 }
 0x707   :  { %v662_v16 = vadd.f32 1.0, %v2636_v15 }
 0x709   :  { %2637 = vrcp.f32 %v662_v16  ;;  %v674_v26 = vand.u32 2147483648, %v662_v16  ;;  %vm668_vm13 = vweird.f32 %v662_v16  ;;  %v672_v27 = vand.u32 2147483647, %v662_v16 }
 0x70a   :  { %2639 = vpow2.f32 %v2510_v17 }
 0x70b   :  { %v675_v30 = vor.u32 1.1754944e-38, %v674_v26  ;;  %vm673_vm15 = vcmp.eq.f32.partialorder %v672_v27, 8.507059e+37 }
 0x70f   :  { %v2638_v18 = vpop.eup %2637 }
 0x710   :  { %v2640_v19 = vpop.eup %2639  ;;  %v664_v20 = vmul.f32 %v2638_v18, %v662_v16  ;;  %vm669_vm12 = vweird.f32 %v2638_v18 }
 0x711   :  { %v642_v21 = vadd.f32 1.0, %v2640_v19  ;;  %vm670_vm14 = vmor %vm668_vm13, %vm669_vm12 }
 0x712   :  { %v665_v22 = vsub.f32 1.0, %v664_v20 }
 0x713   :  { %2641 = vrcp.f32 %v642_v21  ;;  %v654_v37 = vand.u32 2147483648, %v642_v21  ;;  %vm648_vm2 = vweird.f32 %v642_v21  ;;  %v652_v38 = vand.u32 2147483647, %v642_v21 }
 0x714   :  { %v666_v23 = vmul.f32 %v2638_v18, %v665_v22 }
 0x715   :  { %v655_v40 = vor.u32 1.1754944e-38, %v654_v37  ;;  %vm653_vm4 = vcmp.eq.f32.partialorder %v652_v38, 8.507059e+37 }
 0x716   :  { %v667_v24 = vadd.f32 %v2638_v18, %v666_v23 }
 0x718   :  { %v671_v28 = vsel %vm670_vm14, %v2638_v18, %v667_v24 }
 0x719   :  { %v2642_v25 = vpop.eup %2641  ;;  %v676_v32 = vsel %vm673_vm15, %v675_v30, %v671_v28 }
 0x71a   :  { %v644_v29 = vmul.f32 %v2642_v25, %v642_v21  ;;  %vm649_vm1 = vweird.f32 %v2642_v25  ;;  %v696_v59 = vmul.f32 %v676_v32, %v3093_v49  ;;  %v65_v49 = vld [vmem:[%s3627_s1 + $0x20] sm:$0xff] }
 0x71b   :  { %vm650_vm3 = vmor %vm648_vm2, %vm649_vm1  ;;  %2494 = vmatmul.msk.f32.gmra.mxu1 %vm74_vm0, %v65_v49 }
 0x71c   :  { %v645_v34 = vsub.f32 1.0, %v644_v29 }
 0x71e   :  { %v646_v35 = vmul.f32 %v2642_v25, %v645_v34 }
 0x720   :  { %v647_v36 = vadd.f32 %v2642_v25, %v646_v35 }
 0x722   :  { %v651_v39 = vsel %vm650_vm3, %v2642_v25, %v647_v36 }
 0x723   :  { %v656_v43 = vsel %vm653_vm4, %v655_v40, %v651_v39 }
 0x724   :  { %v679_v51 = vmul.f32 %v656_v43, %v3098_v58 }
 0x768   :  { %v699_v31 = vpop.permute.xlu1 %698 }
 0x769   :  { %v701_v33 = vmul.f32 %v699_v31, %v676_v32 }
 0x76b   :  { %703 = vrot.lane.b32.xlu0 %v701_v33, %s2849_s18 }
 0x778   :  { %v682_v41 = vpop.permute.xlu0 %681 }
 0x779   :  { %v684_v48 = vmul.f32 %v682_v41, %v656_v43 }
 0x77b   :  { %686 = vrot.lane.b32.xlu2 %v684_v48, %s2849_s18 }
 0x798   :  { %v206_v5 = vpop.f32.mrf.mxu1 }
 0x799   :  { %v207_v6 = vadd.f32 %v2959_v7, %v206_v5 }
 0x7d5   :  { %v687_v54 = vpop.permute.xlu2 %686 }
 0x7d6   :  { %v3131_v57 = vadd.f32 %v687_v54, %v679_v51 }
 0x7d8   :  { %2643 = vtanh.f32 %v3131_v57 }
 0x7dd   :  { %v704_v60 = vpop.permute.xlu0 %703 }
 0x7de   :  { %v2644_v42 = vpop.eup %2643  ;;  %v3135_v61 = vadd.f32 %v704_v60, %v696_v59 }
 0x7df   :  { %692 = vrot.lane.b32.xlu1 %v2644_v42, %s2849_s18 }
 0x7e0   :  { %2645 = vtanh.f32 %v3135_v61 }
 0x7e6   :  { %v2646_v62 = vpop.eup %2645 }
 0x7e7   :  { %709 = vrot.lane.b32.xlu2 %v2646_v62, %s2849_s18 }
 0x841   :  { %v710_v50 = vpop.permute.xlu2 %709 }
 0x842   :  { %v712_v58 = vmul.f32 %v710_v50, %v676_v32 }
 0x844   :  { %720 = vrot.lane.b32.xlu1 %v712_v58, %s2850_s19 }
 0x851   :  { %v693_v63 = vpop.permute.xlu1 %692 }
 0x852   :  { %v695_v0 = vmul.f32 %v693_v63, %v656_v43 }
 0x854   :  { %714 = vrot.lane.b32.xlu0 %v695_v0, %s2850_s19 }
 0x8b6   :  { %v721_v2 = vpop.permute.xlu1 %720 }
 0x8b7   :  { %724 = vst.msk [vmem:[#allocation5 + $0x18] sm:$0xff] %vm302_vm9, %v721_v2  ;;  %2513 = vmatmul.msk.f32.vlgmr.msrb.gmra.mxu3 %vm302_vm9, %v721_v2 }
 0x8b8   :  { %1038 = vmatpush.msrb.mxu3 %v3003_v52 }
 0x8ba   :  { %1039 = vmatpush.msrb.mxu3 %v3008_v53 }
 0x8bc   :  { %1040 = vmatpush.msrb.mxu3 %v3018_v55 }
 0x8be   :  { %1041 = vmatpush.msrb.mxu3 %v3024_v56 }
 0x8c6   :  { %v715_v3 = vpop.permute.xlu0 %714 }
 0x8c7   :  { %718 = vst.msk [vmem:[#allocation4 + $0x18] sm:$0xff] %vm302_vm9, %v715_v3  ;;  %2512 = vmatmul.msk.f32.vlgmr.msrb.gmra.mxu2 %vm302_vm9, %v715_v3  ;;  %v66_v3 = vld [vmem:[%s3627_s1 + $0x28] sm:$0xff] }
 0x8c8   :  { %1013 = vmatpush.msrb.mxu2 %v2972_v44  ;;  %2495 = vmatmul.msk.f32.gmra.mxu1 %vm74_vm0, %v66_v3 }
 0x8ca   :  { %1014 = vmatpush.msrb.mxu2 %v2977_v45 }
 0x8cc   :  { %1015 = vmatpush.msrb.mxu2 %v2983_v46 }
 0x8ce   :  { %1016 = vmatpush.msrb.mxu2 %v2989_v47 }
 0x93a   :  { %v771_v8 = vpop.f32.mrf.mxu3 }
 0x93b   :  { %v774_v9 = vadd.f32 %v771_v8, %v207_v6 }
 0x93d   :  { %2647 = vtanh.f32 %v774_v9  ;;  %v2515_v17 = vmul.f32 -1.442695, %v774_v9 }
 0x943   :  { %v2648_v10 = vpop.eup %2647 }
 0x944   :  { %834 = vrot.lane.b32.xlu0 %v2648_v10, %s2849_s18 }
 0x945   :  { %v209_v9 = vpop.f32.mrf.mxu1 }
 0x94a   :  { %v746_v13 = vpop.f32.mrf.mxu2 }
 0x94b   :  { %v749_v14 = vadd.f32 %v746_v13, %v129_v12 }
 0x94d   :  { %2649 = vtanh.f32 %v749_v14  ;;  %v2514_v16 = vmul.f32 -1.442695, %v749_v14 }
 0x94f   :  { %2651 = vpow2.f32 %v2514_v16 }
 0x950   :  { %2653 = vpow2.f32 %v2515_v17 }
 0x953   :  { %v2650_v15 = vpop.eup %2649 }
 0x954   :  { %817 = vrot.lane.b32.xlu2 %v2650_v15, %s2849_s18 }
 0x955   :  { %v2652_v18 = vpop.eup %2651 }
 0x956   :  { %v778_v19 = vadd.f32 1.0, %v2652_v18  ;;  %v2654_v20 = vpop.eup %2653 }
 0x957   :  { %v798_v21 = vadd.f32 1.0, %v2654_v20 }
 0x958   :  { %2655 = vrcp.f32 %v778_v19  ;;  %v790_v30 = vand.u32 2147483648, %v778_v19  ;;  %vm784_vm6 = vweird.f32 %v778_v19  ;;  %v788_v31 = vand.u32 2147483647, %v778_v19 }
 0x959   :  { %2657 = vrcp.f32 %v798_v21  ;;  %v810_v39 = vand.u32 2147483648, %v798_v21  ;;  %vm804_vm11 = vweird.f32 %v798_v21  ;;  %v808_v40 = vand.u32 2147483647, %v798_v21 }
 0x95a   :  { %v791_v34 = vor.u32 1.1754944e-38, %v790_v30  ;;  %vm789_vm8 = vcmp.eq.f32.partialorder %v788_v31, 8.507059e+37 }
 0x95b   :  { %v811_v43 = vor.u32 1.1754944e-38, %v810_v39  ;;  %vm809_vm13 = vcmp.eq.f32.partialorder %v808_v40, 8.507059e+37 }
 0x95e   :  { %v2656_v22 = vpop.eup %2655 }
 0x95f   :  { %v780_v23 = vmul.f32 %v2656_v22, %v778_v19  ;;  %v2658_v25 = vpop.eup %2657  ;;  %vm785_vm5 = vweird.f32 %v2656_v22 }
 0x960   :  { %v800_v27 = vmul.f32 %v2658_v25, %v798_v21  ;;  %vm786_vm7 = vmor %vm784_vm6, %vm785_vm5  ;;  %vm805_vm10 = vweird.f32 %v2658_v25 }
 0x961   :  { %v781_v24 = vsub.f32 1.0, %v780_v23  ;;  %vm806_vm12 = vmor %vm804_vm11, %vm805_vm10 }
 0x962   :  { %v801_v29 = vsub.f32 1.0, %v800_v27 }
 0x963   :  { %v782_v26 = vmul.f32 %v2656_v22, %v781_v24 }
 0x964   :  { %v802_v33 = vmul.f32 %v2658_v25, %v801_v29 }
 0x965   :  { %v783_v28 = vadd.f32 %v2656_v22, %v782_v26 }
 0x966   :  { %v803_v38 = vadd.f32 %v2658_v25, %v802_v33 }
 0x967   :  { %v787_v32 = vsel %vm786_vm7, %v2656_v22, %v783_v28 }
 0x968   :  { %v792_v35 = vsel %vm789_vm8, %v791_v34, %v787_v32  ;;  %v807_v41 = vsel %vm806_vm12, %v2658_v25, %v803_v38 }
 0x969   :  { %v812_v51 = vsel %vm809_vm13, %v811_v43, %v807_v41  ;;  %v815_v50 = vmul.f32 %v792_v35, %v3131_v57  ;;  %v58_v57 = vld [vmem:[%s3625_s0 + $0x28] sm:$0xff] }
 0x96a   :  { %v832_v59 = vmul.f32 %v812_v51, %v3135_v61  ;;  %2487 = vmatmul.msk.f32.gmra.mxu0 %vm74_vm0, %v58_v57 }
 0x9ae   :  { %v818_v36 = vpop.permute.xlu2 %817 }
 0x9af   :  { %v820_v37 = vmul.f32 %v818_v36, %v792_v35 }
 0x9b1   :  { %822 = vrot.lane.b32.xlu1 %v820_v37, %s2849_s18 }
 0x9b6   :  { %v835_v48 = vpop.permute.xlu0 %834 }
 0x9b7   :  { %v837_v54 = vmul.f32 %v835_v48, %v812_v51 }
 0x9b9   :  { %839 = vrot.lane.b32.xlu2 %v837_v54, %s2849_s18 }
 0xa13   :  { %v840_v60 = vpop.permute.xlu2 %839 }
 0xa14   :  { %v3169_v42 = vadd.f32 %v840_v60, %v832_v59 }
 0xa16   :  { %2659 = vtanh.f32 %v3169_v42 }
 0xa1c   :  { %v2660_v62 = vpop.eup %2659 }
 0xa1d   :  { %845 = vrot.lane.b32.xlu1 %v2660_v62, %s2849_s18 }
 0xa23   :  { %v823_v58 = vpop.permute.xlu1 %822 }
 0xa24   :  { %v3174_v63 = vadd.f32 %v823_v58, %v815_v50  ;;  %v67_v50 = vld [vmem:[%s3627_s1 + $0x30] sm:$0xff] }
 0xa25   :  { %2496 = vmatmul.msk.f32.gmra.mxu1 %vm74_vm0, %v67_v50  ;;  %v59_v58 = vld [vmem:[%s3625_s0 + $0x30] sm:$0xff] }
 0xa26   :  { %2661 = vtanh.f32 %v3174_v63  ;;  %2488 = vmatmul.msk.f32.gmra.mxu0 %vm74_vm0, %v59_v58  ;;  %v1287_v50 = vld [vmem:[%s3633_s8 + $0x10] sm:$0xff]  ;;  %v60_v58 = vld [vmem:[%s3625_s0 + $0x38] sm:$0xff] }
 0xa2c   :  { %v2662_v0 = vpop.eup %2661 }
 0xa2d   :  { %828 = vrot.lane.b32.xlu0 %v2662_v0, %s2849_s18 }
 0xa2e   :  { %2489 = vmatmul.msk.f32.gmra.mxu0 %vm74_vm0, %v60_v58  ;;  %v3333_v58 = vld [vmem:[%s3637_s12 + $0x18] sm:$0xff] }
 0xa2f   :  { %1564 = vmatpush.msrb.mxu1 %v3333_v58 }
 0xa8f   :  { %v846_v49 = vpop.permute.xlu1 %845 }
 0xa90   :  { %v848_v61 = vmul.f32 %v846_v49, %v812_v51 }
 0xa92   :  { %856 = vrot.lane.b32.xlu0 %v848_v61, %s2850_s19  ;;  %v2843_v61 = vld [vmem:[%s3629_s7] ss:$0 sm:$0xff] }
 0xa9f   :  { %v829_v1 = vpop.permute.xlu0 %828 }
 0xaa0   :  { %v831_v2 = vmul.f32 %v829_v1, %v792_v35 }
 0xaa2   :  { %850 = vrot.lane.b32.xlu2 %v831_v2, %s2850_s19  ;;  %v212_v49 = vpop.f32.mrf.mxu1 }
 0xaa3   :  { %v213_v1 = vadd.f32 %v2843_v61, %v212_v49  ;;  %v1277_v61 = vld [vmem:[#allocation5] sm:$0xff] }
 0xafc   :  { %v851_v5 = vpop.permute.xlu2 %850 }
 0xafd   :  { %854 = vst.msk [vmem:[#allocation4 + $0x20] sm:$0xff] %vm302_vm9, %v851_v5  ;;  %2516 = vmatmul.msk.f32.vlgmr.msra.gmra.mxu2 %vm302_vm9, %v851_v5 }
 0xafe   :  { %1149 = vmatpush.msra.mxu2 %v2972_v44  ;;  %v131_v44 = vpop.f32.mrf.mxu0 }
 0xb00   :  { %1150 = vmatpush.msra.mxu2 %v2977_v45  ;;  %v132_v45 = vadd.f32 %v2953_v4, %v131_v44 }
 0xb02   :  { %1151 = vmatpush.msra.mxu2 %v2983_v46 }
 0xb04   :  { %v857_v6 = vpop.permute.xlu0 %856  ;;  %1152 = vmatpush.msra.mxu2 %v2989_v47  ;;  %v210_v47 = vadd.f32 %v2959_v7, %v209_v9 }
 0xb05   :  { %860 = vst.msk [vmem:[#allocation5 + $0x20] sm:$0xff] %vm302_vm9, %v857_v6  ;;  %2517 = vmatmul.msk.f32.vlgmr.msra.gmra.mxu3 %vm302_vm9, %v857_v6  ;;  %v2844_v6 = vld [vmem:[%s3628_s4] ss:$0 sm:$0xff] }
 0xb06   :  { %1174 = vmatpush.msra.mxu3 %v3003_v52  ;;  %v134_v5 = vpop.f32.mrf.mxu0 }
 0xb07   :  { %v135_v44 = vadd.f32 %v2844_v6, %v134_v5  ;;  %v1270_v5 = vld [vmem:[#allocation4 + $0x8] sm:$0xff]  ;;  %v1280_v6 = vld [vmem:[#allocation5 + $0x18] sm:$0xff] }
 0xb08   :  { %1175 = vmatpush.msra.mxu3 %v3008_v53 }
 0xb0a   :  { %1176 = vmatpush.msra.mxu3 %v3018_v55 }
 0xb0c   :  { %1177 = vmatpush.msra.mxu3 %v3024_v56 }
 0xb80   :  { %v882_v8 = vpop.f32.mrf.mxu2 }
 0xb81   :  { %v885_v46 = vadd.f32 %v882_v8, %v132_v45 }
 0xb83   :  { %2663 = vtanh.f32 %v885_v46  ;;  %v2518_v4 = vmul.f32 -1.442695, %v885_v46 }
 0xb88   :  { %v907_v10 = vpop.f32.mrf.mxu3 }
 0xb89   :  { %v2664_v11 = vpop.eup %2663  ;;  %v910_v12 = vadd.f32 %v907_v10, %v210_v47 }
 0xb8a   :  { %953 = vrot.lane.b32.xlu1 %v2664_v11, %s2849_s18 }
 0xb8b   :  { %2665 = vtanh.f32 %v910_v12  ;;  %v2519_v53 = vmul.f32 -1.442695, %v910_v12 }
 0xb8d   :  { %2667 = vpow2.f32 %v2519_v53 }
 0xb91   :  { %v2666_v52 = vpop.eup %2665 }
 0xb92   :  { %970 = vrot.lane.b32.xlu2 %v2666_v52, %s2849_s18 }
 0xb93   :  { %v2668_v55 = vpop.eup %2667 }
 0xb94   :  { %v934_v56 = vadd.f32 1.0, %v2668_v55 }
 0xb96   :  { %2669 = vrcp.f32 %v934_v56  ;;  %v946_v20 = vand.u32 2147483648, %v934_v56  ;;  %vm940_vm15 = vweird.f32 %v934_v56  ;;  %v944_v21 = vand.u32 2147483647, %v934_v56 }
 0xb97   :  { %2671 = vpow2.f32 %v2518_v4 }
 0xb98   :  { %v947_v24 = vor.u32 1.1754944e-38, %v946_v20  ;;  %vm945_vm2 = vcmp.eq.f32.partialorder %v944_v21, 8.507059e+37 }
 0xb9c   :  { %v2670_v13 = vpop.eup %2669 }
 0xb9d   :  { %v2672_v14 = vpop.eup %2671  ;;  %v936_v15 = vmul.f32 %v2670_v13, %v934_v56  ;;  %vm941_vm14 = vweird.f32 %v2670_v13 }
 0xb9e   :  { %v914_v7 = vadd.f32 1.0, %v2672_v14  ;;  %vm942_vm1 = vmor %vm940_vm15, %vm941_vm14 }
 0xb9f   :  { %v937_v16 = vsub.f32 1.0, %v936_v15 }
 0xba0   :  { %2673 = vrcp.f32 %v914_v7  ;;  %v926_v31 = vand.u32 2147483648, %v914_v7  ;;  %vm920_vm4 = vweird.f32 %v914_v7  ;;  %v924_v32 = vand.u32 2147483647, %v914_v7 }
 0xba1   :  { %v938_v17 = vmul.f32 %v2670_v13, %v937_v16 }
 0xba2   :  { %v927_v34 = vor.u32 1.1754944e-38, %v926_v31  ;;  %vm925_vm6 = vcmp.eq.f32.partialorder %v924_v32, 8.507059e+37 }
 0xba3   :  { %v939_v18 = vadd.f32 %v2670_v13, %v938_v17 }
 0xba5   :  { %v943_v22 = vsel %vm942_vm1, %v2670_v13, %v939_v18 }
 0xba6   :  { %v2674_v19 = vpop.eup %2673  ;;  %v948_v25 = vsel %vm945_vm2, %v947_v24, %v943_v22 }
 0xba7   :  { %v916_v23 = vmul.f32 %v2674_v19, %v914_v7  ;;  %vm921_vm3 = vweird.f32 %v2674_v19  ;;  %v968_v38 = vmul.f32 %v948_v25, %v3169_v42 }
 0xba8   :  { %vm922_vm5 = vmor %vm920_vm4, %vm921_vm3 }
 0xba9   :  { %v917_v28 = vsub.f32 1.0, %v916_v23 }
 0xbab   :  { %v918_v29 = vmul.f32 %v2674_v19, %v917_v28 }
 0xbad   :  { %v919_v30 = vadd.f32 %v2674_v19, %v918_v29 }
 0xbaf   :  { %v923_v33 = vsel %vm922_vm5, %v2674_v19, %v919_v30 }
 0xbb0   :  { %v928_v36 = vsel %vm925_vm6, %v927_v34, %v923_v33 }
 0xbb1   :  { %v951_v43 = vmul.f32 %v928_v36, %v3174_v63 }
 0xbec   :  { %v971_v26 = vpop.permute.xlu2 %970 }
 0xbed   :  { %v973_v27 = vmul.f32 %v971_v26, %v948_v25 }
 0xbef   :  { %975 = vrot.lane.b32.xlu1 %v973_v27, %s2849_s18 }
 0xbfc   :  { %v954_v35 = vpop.permute.xlu1 %953 }
 0xbfd   :  { %v956_v37 = vmul.f32 %v954_v35, %v928_v36 }
 0xbff   :  { %958 = vrot.lane.b32.xlu0 %v956_v37, %s2849_s18 }
 0xc61   :  { %v976_v39 = vpop.permute.xlu1 %975 }
 0xc62   :  { %v3207_v40 = vadd.f32 %v976_v39, %v968_v38 }
 0xc64   :  { %2675 = vtanh.f32 %v3207_v40 }
 0xc6a   :  { %v2676_v41 = vpop.eup %2675 }
 0xc6b   :  { %981 = vrot.lane.b32.xlu0 %v2676_v41, %s2849_s18 }
 0xc71   :  { %v959_v48 = vpop.permute.xlu0 %958 }
 0xc72   :  { %v3212_v51 = vadd.f32 %v959_v48, %v951_v43 }
 0xc74   :  { %2677 = vtanh.f32 %v3212_v51 }
 0xc7a   :  { %v2678_v54 = vpop.eup %2677 }
 0xc7b   :  { %964 = vrot.lane.b32.xlu2 %v2678_v54, %s2849_s18  ;;  %v1368_v54 = vld [vmem:[%s3632_s11 + $0x10] sm:$0xff] }
 0xcd5   :  { %v965_v59 = vpop.permute.xlu2 %964 }
 0xcd6   :  { %v967_v60 = vmul.f32 %v965_v59, %v928_v36  ;;  %v68_v59 = vld [vmem:[%s3627_s1 + $0x38] sm:$0xff] }
 0xcd7   :  { %2497 = vmatmul.msk.f32.gmra.mxu1 %vm74_vm0, %v68_v59 }
 0xcd8   :  { %986 = vrot.lane.b32.xlu1 %v967_v60, %s2850_s19  ;;  %v1367_v60 = vld [vmem:[%s3632_s11 + $0x8] sm:$0xff] }
 0xcdd   :  { %v982_v42 = vpop.permute.xlu0 %981 }
 0xcde   :  { %v984_v62 = vmul.f32 %v982_v42, %v948_v25  ;;  %v1366_v42 = vld [vmem:[%s3632_s11] sm:$0xff] }
 0xce0   :  { %992 = vrot.lane.b32.xlu2 %v984_v62, %s2850_s19  ;;  %v1288_v62 = vld [vmem:[%s3633_s8 + $0x18] sm:$0xff] }
 0xd3a   :  { %v993_v63 = vpop.permute.xlu2 %992 }
 0xd3b   :  { %996 = vst.msk [vmem:[#allocation5 + $0x28] sm:$0xff] %vm302_vm9, %v993_v63  ;;  %2521 = vmatmul.msk.f32.vlgmr.msrb.gmra.mxu3 %vm302_vm9, %v993_v63  ;;  %v1286_v63 = vld [vmem:[%s3633_s8 + $0x8] sm:$0xff] }
 0xd4a   :  { %v987_v0 = vpop.permute.xlu1 %986 }
 0xd4b   :  { %990 = vst.msk [vmem:[#allocation4 + $0x28] sm:$0xff] %vm302_vm9, %v987_v0  ;;  %2520 = vmatmul.msk.f32.vlgmr.msrb.gmra.mxu2 %vm302_vm9, %v987_v0  ;;  %v1285_v0 = vld [vmem:[%s3633_s8] sm:$0xff] }
 0xd4c   :  { %1329 = vmatpush.msrb.mxu2 %v1288_v62 }
 0xd4e   :  { %1330 = vmatpush.msrb.mxu2 %v1287_v50  ;;  %v3328_v50 = vld [vmem:[%s3636_s9 + $0x18] sm:$0xff] }
 0xd4f   :  { %1537 = vmatpush.msrb.mxu0 %v3328_v50 }
 0xd50   :  { %1331 = vmatpush.msrb.mxu2 %v1286_v63  ;;  %v3338_v63 = vld [vmem:[%s3636_s9 + $0x10] sm:$0xff] }
 0xd51   :  { %1538 = vmatpush.msrb.mxu0 %v3338_v63 }
 0xd52   :  { %1332 = vmatpush.msrb.mxu2 %v1285_v0  ;;  %v3345_v0 = vld [vmem:[%s3637_s12 + $0x10] sm:$0xff] }
 0xd53   :  { %1565 = vmatpush.msrb.mxu1 %v3345_v0 }
 0xdbe   :  { %v1043_v2 = vpop.f32.mrf.mxu3 }
 0xdbf   :  { %v1046_v57 = vadd.f32 %v1043_v2, %v213_v1  ;;  %v1278_v2 = vld [vmem:[#allocation5 + $0x8] sm:$0xff] }
 0xdc1   :  { %2679 = vtanh.f32 %v1046_v57  ;;  %v2523_v9 = vmul.f32 -1.442695, %v1046_v57  ;;  %v1269_v57 = vld [vmem:[#allocation4] sm:$0xff] }
 0xdc7   :  { %v2680_v3 = vpop.eup %2679 }
 0xdc8   :  { %1106 = vrot.lane.b32.xlu1 %v2680_v3, %s2849_s18  ;;  %v1279_v3 = vld [vmem:[#allocation5 + $0x10] sm:$0xff] }
 0xdce   :  { %v1018_v45 = vpop.f32.mrf.mxu2 }
 0xdcf   :  { %v1021_v8 = vadd.f32 %v1018_v45, %v135_v44  ;;  %v1271_v44 = vld [vmem:[#allocation4 + $0x10] sm:$0xff]  ;;  %v1281_v45 = vld [vmem:[#allocation5 + $0x20] sm:$0xff] }
 0xdd1   :  { %2681 = vtanh.f32 %v1021_v8  ;;  %v2522_v11 = vmul.f32 -1.442695, %v1021_v8  ;;  %v1272_v8 = vld [vmem:[#allocation4 + $0x18] sm:$0xff] }
 0xdd2   :  { %2683 = vpow2.f32 %v2523_v9  ;;  %v1273_v9 = vld [vmem:[#allocation4 + $0x20] sm:$0xff] }
 0xdd7   :  { %v2682_v46 = vpop.eup %2681 }
 0xdd8   :  { %1089 = vrot.lane.b32.xlu0 %v2682_v46, %s2849_s18  ;;  %v2684_v47 = vpop.eup %2683  ;;  %v1282_v46 = vld [vmem:[#allocation5 + $0x28] sm:$0xff] }
 0xdd9   :  { %v1070_v10 = vadd.f32 1.0, %v2684_v47 }
 0xddb   :  { %2685 = vrcp.f32 %v1070_v10  ;;  %v1082_v15 = vand.u32 2147483648, %v1070_v10  ;;  %vm1076_vm8 = vweird.f32 %v1070_v10  ;;  %v1080_v7 = vand.u32 2147483647, %v1070_v10 }
 0xddc   :  { %2687 = vpow2.f32 %v2522_v11 }
 0xddd   :  { %v1083_v18 = vor.u32 1.1754944e-38, %v1082_v15  ;;  %vm1081_vm11 = vcmp.eq.f32.partialorder %v1080_v7, 8.507059e+37 }
 0xde1   :  { %v2686_v12 = vpop.eup %2685 }
 0xde2   :  { %v2688_v52 = vpop.eup %2687  ;;  %v1072_v53 = vmul.f32 %v2686_v12, %v1070_v10  ;;  %vm1077_vm7 = vweird.f32 %v2686_v12  ;;  %v1274_v10 = vld [vmem:[#allocation4 + $0x28] sm:$0xff] }
 0xde3   :  { %v1050_v55 = vadd.f32 1.0, %v2688_v52  ;;  %vm1078_vm10 = vmor %vm1076_vm8, %vm1077_vm7  ;;  %v3307_v52 = vld [vmem:[%s3634_s13] ss:$0 sm:$0xff] }
 0xde4   :  { %v1073_v56 = vsub.f32 1.0, %v1072_v53 }
 0xde5   :  { %2689 = vrcp.f32 %v1050_v55  ;;  %v1062_v25 = vand.u32 2147483648, %v1050_v55  ;;  %vm1056_vm13 = vweird.f32 %v1050_v55  ;;  %v1060_v26 = vand.u32 2147483647, %v1050_v55 }
 0xde6   :  { %v1074_v4 = vmul.f32 %v2686_v12, %v1073_v56 }
 0xde7   :  { %v1063_v28 = vor.u32 1.1754944e-38, %v1062_v25  ;;  %vm1061_vm15 = vcmp.eq.f32.partialorder %v1060_v26, 8.507059e+37 }
 0xde8   :  { %v1075_v13 = vadd.f32 %v2686_v12, %v1074_v4 }
 0xdea   :  { %v1079_v16 = vsel %vm1078_vm10, %v2686_v12, %v1075_v13  ;;  %v3316_v13 = vld [vmem:[%s3635_s10] ss:$0 sm:$0xff] }
 0xdeb   :  { %v2690_v14 = vpop.eup %2689  ;;  %v1084_v20 = vsel %vm1081_vm11, %v1083_v18, %v1079_v16 }
 0xdec   :  { %v1052_v17 = vmul.f32 %v2690_v14, %v1050_v55  ;;  %vm1057_vm12 = vweird.f32 %v2690_v14  ;;  %v1104_v35 = vmul.f32 %v1084_v20, %v3207_v40  ;;  %v1369_v40 = vld [vmem:[%s3632_s11 + $0x18] sm:$0xff] }
 0xded   :  { %vm1058_vm14 = vmor %vm1056_vm13, %vm1057_vm12  ;;  %1410 = vmatpush.msrb.mxu3 %v1369_v40 }
 0xdee   :  { %v1053_v22 = vsub.f32 1.0, %v1052_v17 }
 0xdef   :  { %1411 = vmatpush.msrb.mxu3 %v1368_v54 }
 0xdf0   :  { %v1054_v23 = vmul.f32 %v2690_v14, %v1053_v22 }
 0xdf1   :  { %1412 = vmatpush.msrb.mxu3 %v1367_v60 }
 0xdf2   :  { %v1055_v24 = vadd.f32 %v2690_v14, %v1054_v23 }
 0xdf3   :  { %1413 = vmatpush.msrb.mxu3 %v1366_v42 }
 0xdf4   :  { %v1059_v27 = vsel %vm1058_vm14, %v2690_v14, %v1055_v24 }
 0xdf5   :  { %v1064_v30 = vsel %vm1061_vm15, %v1063_v28, %v1059_v27 }
 0xdf6   :  { %v1087_v32 = vmul.f32 %v1064_v30, %v3212_v51 }
 0xe3a   :  { %v1107_v19 = vpop.permute.xlu1 %1106 }
 0xe3b   :  { %v1109_v21 = vmul.f32 %v1107_v19, %v1084_v20 }
 0xe3d   :  { %1111 = vrot.lane.b32.xlu0 %v1109_v21, %s2849_s18 }
 0xe4a   :  { %v1090_v29 = vpop.permute.xlu0 %1089 }
 0xe4b   :  { %v1092_v31 = vmul.f32 %v1090_v29, %v1064_v30 }
 0xe4d   :  { %1094 = vrot.lane.b32.xlu2 %v1092_v31, %s2849_s18 }
 0xea7   :  { %v1095_v33 = vpop.permute.xlu2 %1094 }
 0xea8   :  { %v3241_v34 = vadd.f32 %v1095_v33, %v1087_v32 }
 0xeaa   :  { %2691 = vtanh.f32 %v3241_v34 }
 0xeaf   :  { %v1112_v36 = vpop.permute.xlu0 %1111 }
 0xeb0   :  { %v2692_v37 = vpop.eup %2691  ;;  %v3245_v38 = vadd.f32 %v1112_v36, %v1104_v35 }
 0xeb1   :  { %1100 = vrot.lane.b32.xlu1 %v2692_v37, %s2849_s18 }
 0xeb2   :  { %2693 = vtanh.f32 %v3245_v38 }
 0xeb8   :  { %v2694_v39 = vpop.eup %2693 }
 0xeb9   :  { %1117 = vrot.lane.b32.xlu2 %v2694_v39, %s2849_s18 }
 0xf13   :  { %v1118_v41 = vpop.permute.xlu2 %1117 }
 0xf14   :  { %v1120_v43 = vmul.f32 %v1118_v41, %v1084_v20 }
 0xf16   :  { %1128 = vrot.lane.b32.xlu1 %v1120_v43, %s2850_s19 }
 0xf23   :  { %v1101_v48 = vpop.permute.xlu1 %1100 }
 0xf24   :  { %v1103_v51 = vmul.f32 %v1101_v48, %v1064_v30 }
 0xf26   :  { %1122 = vrot.lane.b32.xlu0 %v1103_v51, %s2850_s19 }
 0xf88   :  { %v1129_v49 = vpop.permute.xlu1 %1128 }
 0xf89   :  { %1132 = vst.msk [vmem:[#allocation5 + $0x30] sm:$0xff] %vm302_vm9, %v1129_v49  ;;  %2525 = vmatmul.msk.f32.vlgmr.msra.gmra.mxu3 %vm302_vm9, %v1129_v49  ;;  %v3350_v49 = vld [vmem:[%s3636_s9 + $0x8] sm:$0xff] }
 0xf8a   :  { %1539 = vmatpush.msrb.mxu0 %v3350_v49 }
 0xf90   :  { %v1283_v47 = vld [vmem:[#allocation5 + $0x30] sm:$0xff] }
 0xf91   :  { %2536 = vmatmul.msk.f32.vlgmr.msrb.gmra.mxu3 %vm302_vm9, %v1277_v61  ;;  %v3355_v61 = vld [vmem:[%s3637_s12 + $0x8] sm:$0xff] }
 0xf92   :  { %1566 = vmatpush.msrb.mxu1 %v3355_v61 }
 0xf98   :  { %v1123_v1 = vpop.permute.xlu0 %1122 }
 0xf99   :  { %1126 = vst.msk [vmem:[#allocation4 + $0x30] sm:$0xff] %vm302_vm9, %v1123_v1  ;;  %2524 = vmatmul.msk.f32.vlgmr.msra.gmra.mxu2 %vm302_vm9, %v1123_v1  ;;  %2537 = vmatmul.msk.f32.gmra.mxu3 %vm302_vm9, %v1278_v2  ;;  %v3362_v1 = vld [vmem:[%s3637_s12] sm:$0xff] }
 0xf9a   :  { %1567 = vmatpush.msrb.mxu1 %v3362_v1 }
 0xf9c   :  { %1700 = vmatpush.msra.mxu1 %v3333_v58 }
 0xf9e   :  { %1701 = vmatpush.msra.mxu1 %v3345_v0 }
 0xfa0   :  { %v1275_v11 = vld [vmem:[#allocation4 + $0x30] sm:$0xff]  ;;  %1702 = vmatpush.msra.mxu1 %v3355_v61 }
 0xfa1   :  { %2528 = vmatmul.msk.f32.vlgmr.msrb.gmra.mxu2 %vm302_vm9, %v1269_v57  ;;  %2538 = vmatmul.msk.f32.gmra.mxu3 %vm302_vm9, %v1279_v3 }
 0xfa2   :  { %1703 = vmatpush.msra.mxu1 %v3362_v1 }
 0xfa9   :  { %2529 = vmatmul.msk.f32.gmra.mxu2 %vm302_vm9, %v1270_v5  ;;  %2539 = vmatmul.msk.f32.gmra.mxu3 %vm302_vm9, %v1280_v6  ;;  %v3377_v6 = vld [vmem:[%s3636_s9] sm:$0xff] }
 0xfaa   :  { %1540 = vmatpush.msrb.mxu0 %v3377_v6 }
 0xfac   :  { %1673 = vmatpush.msra.mxu0 %v3328_v50 }
 0xfae   :  { %1674 = vmatpush.msra.mxu0 %v3338_v63 }
 0xfb0   :  { %1675 = vmatpush.msra.mxu0 %v3350_v49 }
 0xfb1   :  { %2530 = vmatmul.msk.f32.gmra.mxu2 %vm302_vm9, %v1271_v44  ;;  %2540 = vmatmul.msk.f32.gmra.mxu3 %vm302_vm9, %v1281_v45 }
 0xfb2   :  { %1676 = vmatpush.msra.mxu0 %v3377_v6 }
 0xfb9   :  { %2531 = vmatmul.msk.f32.gmra.mxu2 %vm302_vm9, %v1272_v8  ;;  %2541 = vmatmul.msk.f32.gmra.mxu3 %vm302_vm9, %v1282_v46  ;;  %v3394_v8 = vpop.f32.mrf.mxu1 }
 0xfc1   :  { %2532 = vmatmul.msk.f32.gmra.mxu2 %vm302_vm9, %v1273_v9  ;;  %2542 = vmatmul.msk.f32.gmra.mxu3 %vm302_vm9, %v1283_v47 }
 0xfc9   :  { %2533 = vmatmul.msk.f32.gmra.mxu2 %vm302_vm9, %v1274_v10 }
 0xfd1   :  { %2534 = vmatmul.msk.f32.gmra.mxu2 %vm302_vm9, %v1275_v11  ;;  %v3397_v11 = vpop.f32.mrf.mxu0 }
0x100c   :  { %v3302_v12 = vpop.f32.mrf.mxu3 }
0x1014   :  { %v1415_v53 = vpop.f32.mrf.mxu3 }
0x1015   :  { %v1416_v55 = vadd.f32 %v3307_v52, %v1415_v53 }
0x1017   :  { %2695 = vtanh.f32 %v1416_v55  ;;  %v2545_v17 = vmul.f32 -1.442695, %v1416_v55 }
0x101c   :  { %v3310_v56 = vpop.f32.mrf.mxu2  ;;  %v1418_v46 = vpop.f32.mrf.mxu3 }
0x101d   :  { %v2696_v4 = vpop.eup %2695  ;;  %v1419_v9 = vadd.f32 %v3307_v52, %v1418_v46 }
0x101e   :  { %1509 = vrot.lane.b32.xlu0 %v2696_v4, %s2849_s18 }
0x1024   :  { %v1334_v14 = vpop.f32.mrf.mxu2 }
0x1025   :  { %v1335_v15 = vadd.f32 %v3316_v13, %v1334_v14 }
0x1027   :  { %2697 = vtanh.f32 %v1335_v15  ;;  %v2544_v16 = vmul.f32 -1.442695, %v1335_v15 }
0x1029   :  { %2699 = vpow2.f32 %v2544_v16 }
0x102a   :  { %2701 = vpow2.f32 %v2545_v17 }
0x102c   :  { %v1337_v55 = vpop.f32.mrf.mxu2 }
0x102d   :  { %v2698_v7 = vpop.eup %2697  ;;  %v1338_v4 = vadd.f32 %v3316_v13, %v1337_v55 }
0x102e   :  { %1498 = vrot.lane.b32.xlu2 %v2698_v7, %s2849_s18 }
0x102f   :  { %v2700_v18 = vpop.eup %2699 }
0x1030   :  { %v1460_v19 = vadd.f32 1.0, %v2700_v18  ;;  %v2702_v20 = vpop.eup %2701 }
0x1031   :  { %v1480_v21 = vadd.f32 1.0, %v2702_v20 }
0x1032   :  { %2703 = vrcp.f32 %v1460_v19  ;;  %v1472_v30 = vand.u32 2147483648, %v1460_v19  ;;  %vm1466_vm1 = vweird.f32 %v1460_v19  ;;  %v1470_v31 = vand.u32 2147483647, %v1460_v19 }
0x1033   :  { %2705 = vrcp.f32 %v1480_v21  ;;  %v1492_v43 = vand.u32 2147483648, %v1480_v21  ;;  %vm1486_vm5 = vweird.f32 %v1480_v21  ;;  %v1490_v48 = vand.u32 2147483647, %v1480_v21 }
0x1034   :  { %v1473_v35 = vor.u32 1.1754944e-38, %v1472_v30  ;;  %vm1471_vm3 = vcmp.eq.f32.partialorder %v1470_v31, 8.507059e+37 }
0x1035   :  { %v1493_v40 = vor.u32 1.1754944e-38, %v1492_v43  ;;  %vm1491_vm7 = vcmp.eq.f32.partialorder %v1490_v48, 8.507059e+37 }
0x1038   :  { %v2704_v22 = vpop.eup %2703 }
0x1039   :  { %v1462_v23 = vmul.f32 %v2704_v22, %v1460_v19  ;;  %v2706_v25 = vpop.eup %2705  ;;  %vm1467_vm0 = vweird.f32 %v2704_v22 }
0x103a   :  { %v1482_v27 = vmul.f32 %v2706_v25, %v1480_v21  ;;  %vm1468_vm2 = vmor %vm1466_vm1, %vm1467_vm0  ;;  %vm1487_vm4 = vweird.f32 %v2706_v25 }
0x103b   :  { %v1463_v24 = vsub.f32 1.0, %v1462_v23  ;;  %vm1488_vm6 = vmor %vm1486_vm5, %vm1487_vm4 }
0x103c   :  { %v1483_v29 = vsub.f32 1.0, %v1482_v27 }
0x103d   :  { %v1464_v26 = vmul.f32 %v2704_v22, %v1463_v24 }
0x103e   :  { %v1484_v33 = vmul.f32 %v2706_v25, %v1483_v29 }
0x103f   :  { %v1465_v28 = vadd.f32 %v2704_v22, %v1464_v26 }
0x1040   :  { %v1485_v41 = vadd.f32 %v2706_v25, %v1484_v33 }
0x1041   :  { %v1469_v32 = vsel %vm1468_vm2, %v2704_v22, %v1465_v28 }
0x1042   :  { %v1474_v36 = vsel %vm1471_vm3, %v1473_v35, %v1469_v32  ;;  %v1489_v51 = vsel %vm1488_vm6, %v2706_v25, %v1485_v41 }
0x1043   :  { %v1494_v59 = vsel %vm1491_vm7, %v1493_v40, %v1489_v51 }
0x1088   :  { %v1499_v37 = vpop.permute.xlu2 %1498 }
0x1089   :  { %v1501_v39 = vmul.f32 %v1499_v37, %v1474_v36 }
0x108b   :  { %2707 = vtanh.f32 %v1501_v39 }
0x1090   :  { %v1510_v54 = vpop.permute.xlu0 %1509 }
0x1091   :  { %v2708_v60 = vpop.eup %2707  ;;  %v3320_v42 = vmul.f32 %v1510_v54, %v1494_v59 }
0x1092   :  { %1504 = vrot.lane.b32.xlu1 %v2708_v60, %s2850_s19 }
0x1093   :  { %2709 = vtanh.f32 %v3320_v42 }
0x1099   :  { %v2710_v62 = vpop.eup %2709 }
0x109a   :  { %1515 = vrot.lane.b32.xlu2 %v2710_v62, %s2850_s19 }
0x10f4   :  { %v1516_v2 = vpop.permute.xlu2 %1515 }
0x10f5   :  { %v1518_v57 = vmul.f32 %v1516_v2, %v1494_v59 }
0x10f7   :  { %1548 = vrot.lane.b32.xlu1 %v1518_v57, %s2850_s19 }
0x10ff   :  { %1614 = vrot.lane.b32.xlu1 %v1501_v39, %s2849_s18 }
0x1104   :  { %v1505_v3 = vpop.permute.xlu1 %1504 }
0x1105   :  { %v1507_v5 = vmul.f32 %v1505_v3, %v1474_v36 }
0x1107   :  { %1521 = vrot.lane.b32.xlu0 %v1507_v5, %s2850_s19 }
0x1169   :  { %v1549_v44 = vpop.permute.xlu1 %1548 }
0x116a   :  { %2547 = vmatmul.msk.f32.vlgmr.msrb.gmra.mxu1 %vm302_vm9, %v1549_v44 }
0x116b   :  { %1828 = vmatpush.msrb.mxu1 %v3333_v58 }
0x116d   :  { %1829 = vmatpush.msrb.mxu1 %v3345_v0 }
0x116f   :  { %1830 = vmatpush.msrb.mxu1 %v3355_v61 }
0x1171   :  { %1831 = vmatpush.msrb.mxu1 %v3362_v1 }
0x1179   :  { %v1522_v45 = vpop.permute.xlu0 %1521 }
0x117a   :  { %2546 = vmatmul.msk.f32.vlgmr.msrb.gmra.mxu0 %vm302_vm9, %v1522_v45 }
0x117b   :  { %1801 = vmatpush.msrb.mxu0 %v3328_v50 }
0x117d   :  { %1802 = vmatpush.msrb.mxu0 %v3338_v63 }
0x117f   :  { %1803 = vmatpush.msrb.mxu0 %v3350_v49 }
0x1181   :  { %1804 = vmatpush.msrb.mxu0 %v3377_v6 }
0x11e7   :  { %v1569_v47 = vpop.f32.mrf.mxu1 }
0x11e8   :  { %v1572_v10 = vadd.f32 %v1569_v47, %v1419_v9 }
0x11ea   :  { %2711 = vtanh.f32 %v1572_v10  ;;  %v2549_v17 = vmul.f32 -1.442695, %v1572_v10 }
0x11f0   :  { %v2712_v53 = vpop.eup %2711 }
0x11f1   :  { %1640 = vrot.lane.b32.xlu0 %v2712_v53, %s2849_s18 }
0x11f7   :  { %v1542_v14 = vpop.f32.mrf.mxu0 }
0x11f8   :  { %v1545_v15 = vadd.f32 %v1542_v14, %v1338_v4 }
0x11fa   :  { %2713 = vtanh.f32 %v1545_v15  ;;  %v2548_v16 = vmul.f32 -1.442695, %v1545_v15  ;;  %v1340_v15 = vpop.f32.mrf.mxu2 }
0x11fc   :  { %2715 = vpow2.f32 %v2548_v16 }
0x11fd   :  { %2717 = vpow2.f32 %v2549_v17 }
0x1200   :  { %v2714_v7 = vpop.eup %2713 }
0x1201   :  { %1619 = vrot.lane.b32.xlu2 %v2714_v7, %s2849_s18  ;;  %v1341_v7 = vadd.f32 %v3316_v13, %v1340_v15 }
0x1202   :  { %v2716_v18 = vpop.eup %2715 }
0x1203   :  { %v1576_v19 = vadd.f32 1.0, %v2716_v18  ;;  %v2718_v20 = vpop.eup %2717  ;;  %v1421_v18 = vpop.f32.mrf.mxu3 }
0x1204   :  { %v1596_v21 = vadd.f32 1.0, %v2718_v20 }
0x1205   :  { %2719 = vrcp.f32 %v1576_v19  ;;  %v1588_v30 = vand.u32 2147483648, %v1576_v19  ;;  %vm1582_vm10 = vweird.f32 %v1576_v19  ;;  %v1586_v31 = vand.u32 2147483647, %v1576_v19 }
0x1206   :  { %2721 = vrcp.f32 %v1596_v21  ;;  %v1608_v43 = vand.u32 2147483648, %v1596_v21  ;;  %vm1602_vm14 = vweird.f32 %v1596_v21  ;;  %v1606_v48 = vand.u32 2147483647, %v1596_v21 }
0x1207   :  { %v1589_v35 = vor.u32 1.1754944e-38, %v1588_v30  ;;  %vm1587_vm12 = vcmp.eq.f32.partialorder %v1586_v31, 8.507059e+37 }
0x1208   :  { %v1609_v40 = vor.u32 1.1754944e-38, %v1608_v43  ;;  %vm1607_vm0 = vcmp.eq.f32.partialorder %v1606_v48, 8.507059e+37 }
0x1209   :  { %1635 = vrot.lane.b32.xlu2 %v3320_v42, %s2849_s18  ;;  %v1615_v42 = vpop.permute.xlu1 %1614 }
0x120b   :  { %v2720_v22 = vpop.eup %2719 }
0x120c   :  { %v1578_v23 = vmul.f32 %v2720_v22, %v1576_v19  ;;  %v2722_v25 = vpop.eup %2721  ;;  %vm1583_vm8 = vweird.f32 %v2720_v22  ;;  %v1422_v19 = vadd.f32 %v3307_v52, %v1421_v18 }
0x120d   :  { %v1598_v27 = vmul.f32 %v2722_v25, %v1596_v21  ;;  %vm1584_vm11 = vmor %vm1582_vm10, %vm1583_vm8  ;;  %vm1603_vm13 = vweird.f32 %v2722_v25 }
0x120e   :  { %v1579_v24 = vsub.f32 1.0, %v1578_v23  ;;  %vm1604_vm15 = vmor %vm1602_vm14, %vm1603_vm13 }
0x120f   :  { %v1599_v29 = vsub.f32 1.0, %v1598_v27 }
0x1210   :  { %v1580_v26 = vmul.f32 %v2720_v22, %v1579_v24 }
0x1211   :  { %v1600_v33 = vmul.f32 %v2722_v25, %v1599_v29 }
0x1212   :  { %v1581_v28 = vadd.f32 %v2720_v22, %v1580_v26 }
0x1213   :  { %v1601_v41 = vadd.f32 %v2722_v25, %v1600_v33 }
0x1214   :  { %v1585_v32 = vsel %vm1584_vm11, %v2720_v22, %v1581_v28 }
0x1215   :  { %v1590_v36 = vsel %vm1587_vm12, %v1589_v35, %v1585_v32  ;;  %v1605_v51 = vsel %vm1604_vm15, %v2722_v25, %v1601_v41 }
0x1216   :  { %v1610_v59 = vsel %vm1607_vm0, %v1609_v40, %v1605_v51  ;;  %v1617_v62 = vmul.f32 %v1615_v42, %v1590_v36 }
0x125b   :  { %v1620_v37 = vpop.permute.xlu2 %1619 }
0x125c   :  { %v1622_v39 = vmul.f32 %v1620_v37, %v1590_v36 }
0x125e   :  { %1624 = vrot.lane.b32.xlu0 %v1622_v39, %s2849_s18 }
0x1263   :  { %v1641_v54 = vpop.permute.xlu0 %1640  ;;  %v1636_v3 = vpop.permute.xlu2 %1635 }
0x1264   :  { %v1643_v60 = vmul.f32 %v1641_v54, %v1610_v59  ;;  %v1638_v5 = vmul.f32 %v1636_v3, %v1610_v59 }
0x1266   :  { %1645 = vrot.lane.b32.xlu1 %v1643_v60, %s2849_s18 }
0x12d0   :  { %v1625_v2 = vpop.permute.xlu0 %1624 }
0x12d1   :  { %v3406_v57 = vadd.f32 %v1625_v2, %v1617_v62 }
0x12d3   :  { %2723 = vtanh.f32 %v3406_v57 }
0x12d8   :  { %v1646_v44 = vpop.permute.xlu1 %1645 }
0x12d9   :  { %v2724_v45 = vpop.eup %2723  ;;  %v3409_v46 = vadd.f32 %v1646_v44, %v1638_v5 }
0x12da   :  { %1630 = vrot.lane.b32.xlu2 %v2724_v45, %s2849_s18 }
0x12db   :  { %2725 = vtanh.f32 %v3409_v46 }
0x12e1   :  { %v2726_v9 = vpop.eup %2725 }
0x12e2   :  { %1651 = vrot.lane.b32.xlu0 %v2726_v9, %s2849_s18 }
0x1334   :  { %v1631_v47 = vpop.permute.xlu2 %1630 }
0x1335   :  { %v1633_v10 = vmul.f32 %v1631_v47, %v1590_v36 }
0x1337   :  { %1657 = vrot.lane.b32.xlu1 %v1633_v10, %s2850_s19 }
0x1354   :  { %v1652_v53 = vpop.permute.xlu0 %1651 }
0x1355   :  { %v1654_v55 = vmul.f32 %v1652_v53, %v1610_v59 }
0x1357   :  { %1684 = vrot.lane.b32.xlu2 %v1654_v55, %s2850_s19 }
0x13a9   :  { %v1658_v4 = vpop.permute.xlu1 %1657 }
0x13aa   :  { %2550 = vmatmul.msk.f32.vlgmr.msra.gmra.mxu0 %vm302_vm9, %v1658_v4 }
0x13ab   :  { %1929 = vmatpush.msra.mxu0 %v3328_v50 }
0x13ad   :  { %1930 = vmatpush.msra.mxu0 %v3338_v63 }
0x13af   :  { %1931 = vmatpush.msra.mxu0 %v3350_v49 }
0x13b1   :  { %v1685_v14 = vpop.permute.xlu2 %1684  ;;  %1932 = vmatpush.msra.mxu0 %v3377_v6 }
0x13b2   :  { %2551 = vmatmul.msk.f32.vlgmr.msra.gmra.mxu1 %vm302_vm9, %v1685_v14 }
0x13b3   :  { %1956 = vmatpush.msra.mxu1 %v3333_v58 }
0x13b5   :  { %1957 = vmatpush.msra.mxu1 %v3345_v0 }
0x13b7   :  { %1958 = vmatpush.msra.mxu1 %v3355_v61 }
0x13b9   :  { %1959 = vmatpush.msra.mxu1 %v3362_v1 }
0x1427   :  { %v1678_v16 = vpop.f32.mrf.mxu0 }
0x1428   :  { %v1681_v17 = vadd.f32 %v1678_v16, %v1341_v7 }
0x142a   :  { %2727 = vtanh.f32 %v1681_v17  ;;  %v2552_v24 = vmul.f32 -1.442695, %v1681_v17 }
0x142f   :  { %v1705_v20 = vpop.f32.mrf.mxu1 }
0x1430   :  { %v2728_v21 = vpop.eup %2727  ;;  %v1708_v22 = vadd.f32 %v1705_v20, %v1422_v19  ;;  %v1343_v20 = vpop.f32.mrf.mxu2 }
0x1431   :  { %1751 = vrot.lane.b32.xlu0 %v2728_v21, %s2849_s18  ;;  %v1344_v21 = vadd.f32 %v3316_v13, %v1343_v20 }
0x1432   :  { %2729 = vtanh.f32 %v1708_v22  ;;  %v2553_v25 = vmul.f32 -1.442695, %v1708_v22 }
0x1433   :  { %2731 = vpow2.f32 %v2552_v24  ;;  %v1424_v24 = vpop.f32.mrf.mxu3 }
0x1434   :  { %2733 = vpow2.f32 %v2553_v25  ;;  %v1425_v25 = vadd.f32 %v3307_v52, %v1424_v24 }
0x1438   :  { %v2730_v23 = vpop.eup %2729 }
0x1439   :  { %1768 = vrot.lane.b32.xlu1 %v2730_v23, %s2849_s18  ;;  %v2732_v26 = vpop.eup %2731 }
0x143a   :  { %v1712_v27 = vadd.f32 1.0, %v2732_v26  ;;  %v2734_v28 = vpop.eup %2733 }
0x143b   :  { %v1732_v29 = vadd.f32 1.0, %v2734_v28 }
0x143c   :  { %2735 = vrcp.f32 %v1712_v27  ;;  %v1724_v41 = vand.u32 2147483648, %v1712_v27  ;;  %vm1718_vm2 = vweird.f32 %v1712_v27  ;;  %v1722_v43 = vand.u32 2147483647, %v1712_v27 }
0x143d   :  { %2737 = vrcp.f32 %v1732_v29  ;;  %v1744_v62 = vand.u32 2147483648, %v1732_v29  ;;  %vm1738_vm6 = vweird.f32 %v1732_v29  ;;  %v1742_v2 = vand.u32 2147483647, %v1732_v29 }
0x143e   :  { %v1725_v40 = vor.u32 1.1754944e-38, %v1724_v41  ;;  %vm1723_vm4 = vcmp.eq.f32.partialorder %v1722_v43, 8.507059e+37 }
0x143f   :  { %v1745_v5 = vor.u32 1.1754944e-38, %v1744_v62  ;;  %vm1743_vm8 = vcmp.eq.f32.partialorder %v1742_v2, 8.507059e+37 }
0x1442   :  { %v2736_v30 = vpop.eup %2735 }
0x1443   :  { %v1714_v31 = vmul.f32 %v2736_v30, %v1712_v27  ;;  %v2738_v33 = vpop.eup %2737  ;;  %vm1719_vm1 = vweird.f32 %v2736_v30 }
0x1444   :  { %v1734_v36 = vmul.f32 %v2738_v33, %v1732_v29  ;;  %vm1720_vm3 = vmor %vm1718_vm2, %vm1719_vm1  ;;  %vm1739_vm5 = vweird.f32 %v2738_v33 }
0x1445   :  { %v1715_v32 = vsub.f32 1.0, %v1714_v31  ;;  %vm1740_vm7 = vmor %vm1738_vm6, %vm1739_vm5 }
0x1446   :  { %v1735_v39 = vsub.f32 1.0, %v1734_v36 }
0x1447   :  { %v1716_v35 = vmul.f32 %v2736_v30, %v1715_v32 }
0x1448   :  { %v1736_v51 = vmul.f32 %v2738_v33, %v1735_v39 }
0x1449   :  { %v1717_v37 = vadd.f32 %v2736_v30, %v1716_v35 }
0x144a   :  { %v1737_v42 = vadd.f32 %v2738_v33, %v1736_v51 }
0x144b   :  { %v1721_v48 = vsel %vm1720_vm3, %v2736_v30, %v1717_v37 }
0x144c   :  { %v1726_v59 = vsel %vm1723_vm4, %v1725_v40, %v1721_v48  ;;  %v1741_v3 = vsel %vm1740_vm7, %v2738_v33, %v1737_v42 }
0x144d   :  { %v1746_v45 = vsel %vm1743_vm8, %v1745_v5, %v1741_v3  ;;  %v1749_v47 = vmul.f32 %v1726_v59, %v3406_v57 }
0x144e   :  { %v1766_v4 = vmul.f32 %v1746_v45, %v3409_v46 }
0x14a3   :  { %v1752_v54 = vpop.permute.xlu0 %1751 }
0x14a4   :  { %v1754_v60 = vmul.f32 %v1752_v54, %v1726_v59 }
0x14a6   :  { %1756 = vrot.lane.b32.xlu2 %v1754_v60, %s2849_s18 }
0x14ab   :  { %v1769_v44 = vpop.permute.xlu1 %1768 }
0x14ac   :  { %v1771_v9 = vmul.f32 %v1769_v44, %v1746_v45 }
0x14ae   :  { %1773 = vrot.lane.b32.xlu0 %v1771_v9, %s2849_s18 }
0x1500   :  { %v1757_v10 = vpop.permute.xlu2 %1756 }
0x1501   :  { %v3433_v53 = vadd.f32 %v1757_v10, %v1749_v47 }
0x1503   :  { %2739 = vtanh.f32 %v3433_v53 }
0x1509   :  { %v2740_v55 = vpop.eup %2739 }
0x150a   :  { %1762 = vrot.lane.b32.xlu1 %v2740_v55, %s2849_s18 }
0x1520   :  { %v1774_v14 = vpop.permute.xlu0 %1773 }
0x1521   :  { %v3438_v15 = vadd.f32 %v1774_v14, %v1766_v4 }
0x1523   :  { %2741 = vtanh.f32 %v3438_v15 }
0x1529   :  { %v2742_v7 = vpop.eup %2741 }
0x152a   :  { %1779 = vrot.lane.b32.xlu2 %v2742_v7, %s2849_s18 }
0x157c   :  { %v1763_v16 = vpop.permute.xlu1 %1762 }
0x157d   :  { %v1765_v57 = vmul.f32 %v1763_v16, %v1726_v59 }
0x157f   :  { %1785 = vrot.lane.b32.xlu0 %v1765_v57, %s2850_s19 }
0x1584   :  { %v1780_v17 = vpop.permute.xlu2 %1779 }
0x1585   :  { %v1782_v18 = vmul.f32 %v1780_v17, %v1746_v45 }
0x1587   :  { %1812 = vrot.lane.b32.xlu1 %v1782_v18, %s2850_s19 }
0x15f1   :  { %v1786_v19 = vpop.permute.xlu0 %1785 }
0x15f2   :  { %2554 = vmatmul.msk.f32.vlgmr.msrb.gmra.mxu0 %vm302_vm9, %v1786_v19 }
0x15f3   :  { %2057 = vmatpush.msrb.mxu0 %v3328_v50 }
0x15f5   :  { %2058 = vmatpush.msrb.mxu0 %v3338_v63 }
0x15f7   :  { %2059 = vmatpush.msrb.mxu0 %v3350_v49 }
0x15f9   :  { %v1813_v46 = vpop.permute.xlu1 %1812  ;;  %2060 = vmatpush.msrb.mxu0 %v3377_v6 }
0x15fa   :  { %2555 = vmatmul.msk.f32.vlgmr.msrb.gmra.mxu1 %vm302_vm9, %v1813_v46 }
0x15fb   :  { %2084 = vmatpush.msrb.mxu1 %v3333_v58 }
0x15fd   :  { %2085 = vmatpush.msrb.mxu1 %v3345_v0 }
0x15ff   :  { %2086 = vmatpush.msrb.mxu1 %v3355_v61 }
0x1601   :  { %2087 = vmatpush.msrb.mxu1 %v3362_v1 }
0x166f   :  { %v1806_v22 = vpop.f32.mrf.mxu0 }
0x1670   :  { %v1809_v23 = vadd.f32 %v1806_v22, %v1344_v21 }
0x1672   :  { %2743 = vtanh.f32 %v1809_v23  ;;  %v2556_v30 = vmul.f32 -1.442695, %v1809_v23 }
0x1677   :  { %v1833_v26 = vpop.f32.mrf.mxu1 }
0x1678   :  { %v2744_v27 = vpop.eup %2743  ;;  %v1836_v28 = vadd.f32 %v1833_v26, %v1425_v25  ;;  %v1346_v26 = vpop.f32.mrf.mxu2 }
0x1679   :  { %1879 = vrot.lane.b32.xlu2 %v2744_v27, %s2849_s18  ;;  %v1347_v27 = vadd.f32 %v3316_v13, %v1346_v26 }
0x167a   :  { %2745 = vtanh.f32 %v1836_v28  ;;  %v2557_v37 = vmul.f32 -1.442695, %v1836_v28 }
0x167b   :  { %2747 = vpow2.f32 %v2556_v30 }
0x1680   :  { %v2746_v29 = vpop.eup %2745 }
0x1681   :  { %1896 = vrot.lane.b32.xlu0 %v2746_v29, %s2849_s18  ;;  %v2748_v31 = vpop.eup %2747 }
0x1682   :  { %v1840_v32 = vadd.f32 1.0, %v2748_v31  ;;  %v1427_v31 = vpop.f32.mrf.mxu3 }
0x1684   :  { %2749 = vrcp.f32 %v1840_v32  ;;  %v1852_v43 = vand.u32 2147483648, %v1840_v32  ;;  %vm1846_vm11 = vweird.f32 %v1840_v32  ;;  %v1850_v48 = vand.u32 2147483647, %v1840_v32 }
0x1685   :  { %2751 = vpow2.f32 %v2557_v37 }
0x1686   :  { %v1853_v54 = vor.u32 1.1754944e-38, %v1852_v43  ;;  %vm1851_vm13 = vcmp.eq.f32.partialorder %v1850_v48, 8.507059e+37 }
0x168a   :  { %v2750_v33 = vpop.eup %2749 }
0x168b   :  { %v1842_v35 = vmul.f32 %v2750_v33, %v1840_v32  ;;  %vm1847_vm10 = vweird.f32 %v2750_v33  ;;  %v2752_v51 = vpop.eup %2751  ;;  %v1428_v32 = vadd.f32 %v3307_v52, %v1427_v31 }
0x168c   :  { %vm1848_vm12 = vmor %vm1846_vm11, %vm1847_vm10  ;;  %v1860_v59 = vadd.f32 1.0, %v2752_v51 }
0x168d   :  { %v1843_v36 = vsub.f32 1.0, %v1842_v35 }
0x168e   :  { %2753 = vrcp.f32 %v1860_v59  ;;  %v1872_v9 = vand.u32 2147483648, %v1860_v59  ;;  %vm1866_vm15 = vweird.f32 %v1860_v59  ;;  %v1870_v47 = vand.u32 2147483647, %v1860_v59 }
0x168f   :  { %v1844_v39 = vmul.f32 %v2750_v33, %v1843_v36 }
0x1690   :  { %v1873_v55 = vor.u32 1.1754944e-38, %v1872_v9  ;;  %vm1871_vm1 = vcmp.eq.f32.partialorder %v1870_v47, 8.507059e+37 }
0x1691   :  { %v1845_v41 = vadd.f32 %v2750_v33, %v1844_v39 }
0x1693   :  { %v1849_v40 = vsel %vm1848_vm12, %v2750_v33, %v1845_v41 }
0x1694   :  { %v1854_v60 = vsel %vm1851_vm13, %v1853_v54, %v1849_v40  ;;  %v2754_v2 = vpop.eup %2753 }
0x1695   :  { %v1862_v3 = vmul.f32 %v2754_v2, %v1860_v59  ;;  %vm1867_vm14 = vweird.f32 %v2754_v2  ;;  %v1877_v16 = vmul.f32 %v1854_v60, %v3433_v53 }
0x1696   :  { %vm1868_vm0 = vmor %vm1866_vm15, %vm1867_vm14 }
0x1697   :  { %v1863_v5 = vsub.f32 1.0, %v1862_v3 }
0x1699   :  { %v1864_v44 = vmul.f32 %v2754_v2, %v1863_v5 }
0x169b   :  { %v1865_v45 = vadd.f32 %v2754_v2, %v1864_v44 }
0x169d   :  { %v1869_v10 = vsel %vm1868_vm0, %v2754_v2, %v1865_v45 }
0x169e   :  { %v1874_v14 = vsel %vm1871_vm1, %v1873_v55, %v1869_v10 }
0x169f   :  { %v1894_v18 = vmul.f32 %v1874_v14, %v3438_v15 }
0x16d3   :  { %v1880_v42 = vpop.permute.xlu2 %1879 }
0x16d4   :  { %v1882_v62 = vmul.f32 %v1880_v42, %v1854_v60 }
0x16d6   :  { %1884 = vrot.lane.b32.xlu1 %v1882_v62, %s2849_s18 }
0x16f3   :  { %v1897_v4 = vpop.permute.xlu0 %1896 }
0x16f4   :  { %v1899_v7 = vmul.f32 %v1897_v4, %v1874_v14 }
0x16f6   :  { %1901 = vrot.lane.b32.xlu2 %v1899_v7, %s2849_s18 }
0x1748   :  { %v1885_v57 = vpop.permute.xlu1 %1884 }
0x1749   :  { %v3461_v17 = vadd.f32 %v1885_v57, %v1877_v16 }
0x174b   :  { %2755 = vtanh.f32 %v3461_v17 }
0x1750   :  { %v1902_v19 = vpop.permute.xlu2 %1901 }
0x1751   :  { %v2756_v46 = vpop.eup %2755  ;;  %v3465_v20 = vadd.f32 %v1902_v19, %v1894_v18 }
0x1752   :  { %1890 = vrot.lane.b32.xlu0 %v2756_v46, %s2849_s18 }
0x1753   :  { %2757 = vtanh.f32 %v3465_v20 }
0x1759   :  { %v2758_v21 = vpop.eup %2757 }
0x175a   :  { %1907 = vrot.lane.b32.xlu1 %v2758_v21, %s2849_s18 }
0x17c4   :  { %v1891_v22 = vpop.permute.xlu0 %1890 }
0x17c5   :  { %v1893_v53 = vmul.f32 %v1891_v22, %v1854_v60 }
0x17c7   :  { %1913 = vrot.lane.b32.xlu2 %v1893_v53, %s2850_s19 }
0x17cc   :  { %v1908_v23 = vpop.permute.xlu1 %1907 }
0x17cd   :  { %v1910_v24 = vmul.f32 %v1908_v23, %v1874_v14 }
0x17cf   :  { %1940 = vrot.lane.b32.xlu0 %v1910_v24, %s2850_s19 }
0x1821   :  { %v1914_v15 = vpop.permute.xlu2 %1913 }
0x1822   :  { %2558 = vmatmul.msk.f32.vlgmr.msra.gmra.mxu0 %vm302_vm9, %v1914_v15 }
0x1823   :  { %2185 = vmatpush.msra.mxu0 %v3328_v50 }
0x1825   :  { %2186 = vmatpush.msra.mxu0 %v3338_v63 }
0x1827   :  { %2187 = vmatpush.msra.mxu0 %v3350_v49 }
0x1829   :  { %2188 = vmatpush.msra.mxu0 %v3377_v6 }
0x1841   :  { %v1941_v25 = vpop.permute.xlu0 %1940 }
0x1842   :  { %2559 = vmatmul.msk.f32.vlgmr.msra.gmra.mxu1 %vm302_vm9, %v1941_v25 }
0x1843   :  { %2212 = vmatpush.msra.mxu1 %v3333_v58 }
0x1845   :  { %2213 = vmatpush.msra.mxu1 %v3345_v0 }
0x1847   :  { %2214 = vmatpush.msra.mxu1 %v3355_v61 }
0x1849   :  { %2215 = vmatpush.msra.mxu1 %v3362_v1 }
0x189f   :  { %v1934_v28 = vpop.f32.mrf.mxu0 }
0x18a0   :  { %v1937_v29 = vadd.f32 %v1934_v28, %v1347_v27 }
0x18a2   :  { %2759 = vtanh.f32 %v1937_v29  ;;  %v2560_v37 = vmul.f32 -1.442695, %v1937_v29 }
0x18a8   :  { %v2760_v30 = vpop.eup %2759 }
0x18a9   :  { %2007 = vrot.lane.b32.xlu1 %v2760_v30, %s2849_s18 }
0x18bf   :  { %v1961_v33 = vpop.f32.mrf.mxu1 }
0x18c0   :  { %v1964_v35 = vadd.f32 %v1961_v33, %v1428_v32  ;;  %v1349_v32 = vpop.f32.mrf.mxu2 }
0x18c2   :  { %2761 = vtanh.f32 %v1964_v35  ;;  %v2561_v39 = vmul.f32 -1.442695, %v1964_v35 }
0x18c3   :  { %2763 = vpow2.f32 %v2560_v37 }
0x18c4   :  { %2765 = vpow2.f32 %v2561_v39 }
0x18c8   :  { %v2762_v36 = vpop.eup %2761 }
0x18c9   :  { %2024 = vrot.lane.b32.xlu2 %v2762_v36, %s2849_s18  ;;  %v2764_v41 = vpop.eup %2763 }
0x18ca   :  { %v1968_v43 = vadd.f32 1.0, %v2764_v41  ;;  %v2766_v48 = vpop.eup %2765 }
0x18cb   :  { %v1988_v51 = vadd.f32 1.0, %v2766_v48 }
0x18cc   :  { %2767 = vrcp.f32 %v1968_v43  ;;  %v1980_v5 = vand.u32 2147483648, %v1968_v43  ;;  %vm1974_vm3 = vweird.f32 %v1968_v43  ;;  %v1978_v44 = vand.u32 2147483647, %v1968_v43 }
0x18cd   :  { %2769 = vrcp.f32 %v1988_v51  ;;  %v2000_v7 = vand.u32 2147483648, %v1988_v51  ;;  %vm1994_vm7 = vweird.f32 %v1988_v51  ;;  %v1998_v16 = vand.u32 2147483647, %v1988_v51 }
0x18ce   :  { %v1981_v47 = vor.u32 1.1754944e-38, %v1980_v5  ;;  %vm1979_vm5 = vcmp.eq.f32.partialorder %v1978_v44, 8.507059e+37 }
0x18cf   :  { %v2001_v18 = vor.u32 1.1754944e-38, %v2000_v7  ;;  %vm1999_vm10 = vcmp.eq.f32.partialorder %v1998_v16, 8.507059e+37 }
0x18d2   :  { %v2768_v40 = vpop.eup %2767 }
0x18d3   :  { %v1970_v54 = vmul.f32 %v2768_v40, %v1968_v43  ;;  %v2770_v60 = vpop.eup %2769  ;;  %vm1975_vm2 = vweird.f32 %v2768_v40 }
0x18d4   :  { %v1990_v62 = vmul.f32 %v2770_v60, %v1988_v51  ;;  %vm1976_vm4 = vmor %vm1974_vm3, %vm1975_vm2  ;;  %vm1995_vm6 = vweird.f32 %v2770_v60 }
0x18d5   :  { %v1971_v59 = vsub.f32 1.0, %v1970_v54  ;;  %vm1996_vm8 = vmor %vm1994_vm7, %vm1995_vm6 }
0x18d6   :  { %v1991_v3 = vsub.f32 1.0, %v1990_v62 }
0x18d7   :  { %v1972_v42 = vmul.f32 %v2768_v40, %v1971_v59 }
0x18d8   :  { %v1992_v9 = vmul.f32 %v2770_v60, %v1991_v3 }
0x18d9   :  { %v1973_v2 = vadd.f32 %v2768_v40, %v1972_v42 }
0x18da   :  { %v1993_v14 = vadd.f32 %v2770_v60, %v1992_v9 }
0x18db   :  { %v1977_v45 = vsel %vm1976_vm4, %v2768_v40, %v1973_v2 }
0x18dc   :  { %v1982_v55 = vsel %vm1979_vm5, %v1981_v47, %v1977_v45  ;;  %v1997_v57 = vsel %vm1996_vm8, %v2770_v60, %v1993_v14 }
0x18dd   :  { %v2002_v19 = vsel %vm1999_vm10, %v2001_v18, %v1997_v57  ;;  %v2005_v22 = vmul.f32 %v1982_v55, %v3461_v17 }
0x18de   :  { %v2022_v24 = vmul.f32 %v2002_v19, %v3465_v20 }
0x191b   :  { %v2008_v10 = vpop.permute.xlu1 %2007 }
0x191c   :  { %v2010_v4 = vmul.f32 %v2008_v10, %v1982_v55 }
0x191e   :  { %2012 = vrot.lane.b32.xlu0 %v2010_v4, %s2849_s18 }
0x1923   :  { %v2025_v46 = vpop.permute.xlu2 %2024 }
0x1924   :  { %v2027_v21 = vmul.f32 %v2025_v46, %v2002_v19 }
0x1926   :  { %2029 = vrot.lane.b32.xlu1 %v2027_v21, %s2849_s18 }
0x1990   :  { %v2013_v53 = vpop.permute.xlu0 %2012 }
0x1991   :  { %v3489_v23 = vadd.f32 %v2013_v53, %v2005_v22 }
0x1993   :  { %2771 = vtanh.f32 %v3489_v23 }
0x1998   :  { %v2030_v15 = vpop.permute.xlu1 %2029 }
0x1999   :  { %v2772_v25 = vpop.eup %2771  ;;  %v3493_v26 = vadd.f32 %v2030_v15, %v2022_v24  ;;  %v2845_v15 = vld [vmem:[%s3628_s4] ss:$0 sm:$0xff] }
0x199a   :  { %2018 = vrot.lane.b32.xlu2 %v2772_v25, %s2849_s18  ;;  %v138_v25 = vadd.f32 %v2845_v15, %v3397_v11  ;;  %v2846_v11 = vld [vmem:[%s3629_s7] ss:$0 sm:$0xff] }
0x199b   :  { %2773 = vtanh.f32 %v3493_v26 }
0x19a1   :  { %v2774_v27 = vpop.eup %2773 }
0x19a2   :  { %2035 = vrot.lane.b32.xlu0 %v2774_v27, %s2849_s18 }
0x19f4   :  { %v2019_v28 = vpop.permute.xlu2 %2018 }
0x19f5   :  { %v2021_v17 = vmul.f32 %v2019_v28, %v1982_v55 }
0x19f7   :  { %2041 = vrot.lane.b32.xlu1 %v2021_v17, %s2850_s19 }
0x1a14   :  { %v2036_v29 = vpop.permute.xlu0 %2035 }
0x1a15   :  { %v2038_v30 = vmul.f32 %v2036_v29, %v2002_v19 }
0x1a17   :  { %2068 = vrot.lane.b32.xlu2 %v2038_v30, %s2850_s19 }
0x1a69   :  { %v2042_v20 = vpop.permute.xlu1 %2041 }
0x1a6a   :  { %2562 = vmatmul.msk.f32.vlgmr.msrb.gmra.mxu0 %vm302_vm9, %v2042_v20  ;;  %v216_v20 = vadd.f32 %v2846_v11, %v3394_v8 }
0x1a6b   :  { %2313 = vmatpush.msrb.mxu0 %v3328_v50  ;;  %v1350_v50 = vadd.f32 %v3316_v13, %v1349_v32 }
0x1a6d   :  { %2314 = vmatpush.msrb.mxu0 %v3338_v63 }
0x1a6f   :  { %2315 = vmatpush.msrb.mxu0 %v3350_v49  ;;  %v1430_v49 = vpop.f32.mrf.mxu3 }
0x1a70   :  { %v1431_v35 = vadd.f32 %v3307_v52, %v1430_v49 }
0x1a71   :  { %v2069_v31 = vpop.permute.xlu2 %2068  ;;  %2316 = vmatpush.msrb.mxu0 %v3377_v6 }
0x1a72   :  { %2563 = vmatmul.msk.f32.vlgmr.msrb.gmra.mxu1 %vm302_vm9, %v2069_v31  ;;  %v1182_v31 = vadd.f32 %v3302_v12, %v216_v20 }
0x1a73   :  { %2340 = vmatpush.msrb.mxu1 %v3333_v58 }
0x1a75   :  { %2341 = vmatpush.msrb.mxu1 %v3345_v0 }
0x1a77   :  { %2342 = vmatpush.msrb.mxu1 %v3355_v61 }
0x1a79   :  { %2343 = vmatpush.msrb.mxu1 %v3362_v1 }
0x1ae7   :  { %v2062_v33 = vpop.f32.mrf.mxu0 }
0x1ae8   :  { %v2065_v63 = vadd.f32 %v2062_v33, %v1350_v50 }
0x1aea   :  { %2775 = vtanh.f32 %v2065_v63  ;;  %v2564_v0 = vmul.f32 -1.442695, %v2065_v63 }
0x1aef   :  { %v2089_v6 = vpop.f32.mrf.mxu1 }
0x1af0   :  { %v2776_v36 = vpop.eup %2775  ;;  %v2092_v37 = vadd.f32 %v2089_v6, %v1431_v35 }
0x1af1   :  { %2135 = vrot.lane.b32.xlu0 %v2776_v36, %s2849_s18 }
0x1af2   :  { %2777 = vtanh.f32 %v2092_v37  ;;  %v2565_v61 = vmul.f32 -1.442695, %v2092_v37 }
0x1af3   :  { %2779 = vpow2.f32 %v2564_v0 }
0x1af4   :  { %2781 = vpow2.f32 %v2565_v61 }
0x1af8   :  { %v2778_v58 = vpop.eup %2777 }
0x1af9   :  { %2152 = vrot.lane.b32.xlu1 %v2778_v58, %s2849_s18  ;;  %v2780_v1 = vpop.eup %2779 }
0x1afa   :  { %v2096_v13 = vadd.f32 1.0, %v2780_v1  ;;  %v2782_v39 = vpop.eup %2781 }
0x1afb   :  { %v2116_v41 = vadd.f32 1.0, %v2782_v39 }
0x1afc   :  { %2783 = vrcp.f32 %v2096_v13  ;;  %v2108_v42 = vand.u32 2147483648, %v2096_v13  ;;  %vm2102_vm12 = vweird.f32 %v2096_v13  ;;  %v2106_v62 = vand.u32 2147483647, %v2096_v13 }
0x1afd   :  { %2785 = vrcp.f32 %v2116_v41  ;;  %v2128_v10 = vand.u32 2147483648, %v2116_v41  ;;  %vm2122_vm0 = vweird.f32 %v2116_v41  ;;  %v2126_v55 = vand.u32 2147483647, %v2116_v41 }
0x1afe   :  { %v2109_v5 = vor.u32 1.1754944e-38, %v2108_v42  ;;  %vm2107_vm14 = vcmp.eq.f32.partialorder %v2106_v62, 8.507059e+37 }
0x1aff   :  { %v2129_v14 = vor.u32 1.1754944e-38, %v2128_v10  ;;  %vm2127_vm2 = vcmp.eq.f32.partialorder %v2126_v55, 8.507059e+37 }
0x1b02   :  { %v2784_v43 = vpop.eup %2783 }
0x1b03   :  { %v2098_v52 = vmul.f32 %v2784_v43, %v2096_v13  ;;  %v2786_v51 = vpop.eup %2785  ;;  %vm2103_vm11 = vweird.f32 %v2784_v43 }
0x1b04   :  { %v2118_v54 = vmul.f32 %v2786_v51, %v2116_v41  ;;  %vm2104_vm13 = vmor %vm2102_vm12, %vm2103_vm11  ;;  %vm2123_vm15 = vweird.f32 %v2786_v51  ;;  %v2527_v41 = vmul.f32 -1.442695, %v1182_v31 }
0x1b05   :  { %v2099_v48 = vsub.f32 1.0, %v2098_v52  ;;  %vm2124_vm1 = vmor %vm2122_vm0, %vm2123_vm15 }
0x1b06   :  { %v2119_v60 = vsub.f32 1.0, %v2118_v54  ;;  %v3549_v54 = vld [vmem:[%s3635_s10] ss:$0 sm:$0xff] }
0x1b07   :  { %v2100_v40 = vmul.f32 %v2784_v43, %v2099_v48 }
0x1b08   :  { %v2120_v3 = vmul.f32 %v2786_v51, %v2119_v60 }
0x1b09   :  { %v2101_v59 = vadd.f32 %v2784_v43, %v2100_v40 }
0x1b0a   :  { %v2121_v47 = vadd.f32 %v2786_v51, %v2120_v3  ;;  %v1433_v3 = vpop.f32.mrf.mxu3 }
0x1b0b   :  { %v2105_v2 = vsel %vm2104_vm13, %v2784_v43, %v2101_v59 }
0x1b0c   :  { %v2110_v45 = vsel %vm2107_vm14, %v2109_v5, %v2105_v2  ;;  %v2125_v4 = vsel %vm2124_vm1, %v2786_v51, %v2121_v47  ;;  %v1352_v51 = vpop.f32.mrf.mxu2 }
0x1b0d   :  { %v2130_v16 = vsel %vm2127_vm2, %v2129_v14, %v2125_v4  ;;  %v2133_v18 = vmul.f32 %v2110_v45, %v3489_v23  ;;  %v1157_v23 = vadd.f32 %v3310_v56, %v138_v25  ;;  %v1353_v59 = vadd.f32 %v3549_v54, %v1352_v51 }
0x1b0e   :  { %v2150_v22 = vmul.f32 %v2130_v16, %v3493_v26 }
0x1b0f   :  { %v2526_v26 = vmul.f32 -1.442695, %v1157_v23 }
0x1b63   :  { %v2136_v44 = vpop.permute.xlu0 %2135 }
0x1b64   :  { %v2138_v9 = vmul.f32 %v2136_v44, %v2110_v45  ;;  %v3555_v44 = vld [vmem:[%s3634_s13] ss:$0 sm:$0xff] }
0x1b66   :  { %2140 = vrot.lane.b32.xlu2 %v2138_v9, %s2849_s18 }
0x1b6b   :  { %v2153_v7 = vpop.permute.xlu1 %2152 }
0x1b6c   :  { %v2155_v57 = vmul.f32 %v2153_v7, %v2130_v16 }
0x1b6e   :  { %2157 = vrot.lane.b32.xlu0 %v2155_v57, %s2849_s18 }
0x1bc0   :  { %v2141_v19 = vpop.permute.xlu2 %2140 }
0x1bc1   :  { %v3517_v46 = vadd.f32 %v2141_v19, %v2133_v18 }
0x1bc3   :  { %2787 = vtanh.f32 %v3517_v46 }
0x1bc9   :  { %v2788_v21 = vpop.eup %2787 }
0x1bca   :  { %2146 = vrot.lane.b32.xlu1 %v2788_v21, %s2849_s18 }
0x1be0   :  { %v2158_v53 = vpop.permute.xlu0 %2157 }
0x1be1   :  { %v3522_v24 = vadd.f32 %v2158_v53, %v2150_v22 }
0x1be3   :  { %2789 = vtanh.f32 %v3522_v24 }
0x1be4   :  { %2791 = vtanh.f32 %v1157_v23 }
0x1be5   :  { %2793 = vpow2.f32 %v2526_v26 }
0x1be9   :  { %v2790_v27 = vpop.eup %2789 }
0x1bea   :  { %2163 = vrot.lane.b32.xlu2 %v2790_v27, %s2849_s18  ;;  %v2792_v28 = vpop.eup %2791 }
0x1beb   :  { %v2794_v17 = vpop.eup %2793 }
0x1bec   :  { %v1186_v29 = vadd.f32 1.0, %v2794_v17 }
0x1bee   :  { %2795 = vrcp.f32 %v1186_v29  ;;  %v1198_v37 = vand.u32 2147483648, %v1186_v29  ;;  %vm1192_vm4 = vweird.f32 %v1186_v29  ;;  %v1196_v8 = vand.u32 2147483647, %v1186_v29 }
0x1bef   :  { %2797 = vtanh.f32 %v1182_v31 }
0x1bf0   :  { %v1199_v58 = vor.u32 1.1754944e-38, %v1198_v37  ;;  %vm1197_vm6 = vcmp.eq.f32.partialorder %v1196_v8, 8.507059e+37  ;;  %2799 = vpow2.f32 %v2527_v41 }
0x1bf2   :  { %1225 = vrot.lane.b32.xlu2 %v2792_v28, %s2849_s18 }
0x1bf4   :  { %v2796_v30 = vpop.eup %2795 }
0x1bf5   :  { %v1188_v56 = vmul.f32 %v2796_v30, %v1186_v29  ;;  %vm1193_vm3 = vweird.f32 %v2796_v30  ;;  %v2798_v36 = vpop.eup %2797 }
0x1bf6   :  { %vm1194_vm5 = vmor %vm1192_vm4, %vm1193_vm3  ;;  %v2800_v43 = vpop.eup %2799 }
0x1bf7   :  { %v1189_v33 = vsub.f32 1.0, %v1188_v56  ;;  %v1206_v52 = vadd.f32 1.0, %v2800_v43 }
0x1bf9   :  { %v1190_v63 = vmul.f32 %v2796_v30, %v1189_v33  ;;  %2801 = vrcp.f32 %v1206_v52  ;;  %v1218_v55 = vand.u32 2147483648, %v1206_v52  ;;  %vm1212_vm8 = vweird.f32 %v1206_v52 }
0x1bfa   :  { %v1216_v14 = vand.u32 2147483647, %v1206_v52 }
0x1bfb   :  { %v1191_v6 = vadd.f32 %v2796_v30, %v1190_v63  ;;  %v1219_v57 = vor.u32 1.1754944e-38, %v1218_v55 }
0x1bfc   :  { %vm1217_vm11 = vcmp.eq.f32.partialorder %v1216_v14, 8.507059e+37 }
0x1bfd   :  { %v1195_v12 = vsel %vm1194_vm5, %v2796_v30, %v1191_v6 }
0x1bfe   :  { %v3540_v0 = vsel %vm1197_vm6, %v1199_v58, %v1195_v12 }
0x1bff   :  { %v2802_v48 = vpop.eup %2801  ;;  %v1223_v18 = vmul.f32 %v3540_v0, %v3241_v34 }
0x1c00   :  { %v1208_v40 = vmul.f32 %v2802_v48, %v1206_v52  ;;  %vm1213_vm7 = vweird.f32 %v2802_v48 }
0x1c01   :  { %vm1214_vm10 = vmor %vm1212_vm8, %vm1213_vm7 }
0x1c02   :  { %v1209_v60 = vsub.f32 1.0, %v1208_v40 }
0x1c04   :  { %v1210_v5 = vmul.f32 %v2802_v48, %v1209_v60 }
0x1c06   :  { %v1211_v9 = vadd.f32 %v2802_v48, %v1210_v5 }
0x1c08   :  { %v1215_v7 = vsel %vm1214_vm10, %v2802_v48, %v1211_v9 }
0x1c09   :  { %v3561_v19 = vsel %vm1217_vm11, %v1219_v57, %v1215_v7 }
0x1c0a   :  { %v1240_v43 = vmul.f32 %v3561_v19, %v3245_v38 }
0x1c3c   :  { %v2147_v32 = vpop.permute.xlu1 %2146 }
0x1c3d   :  { %v2149_v50 = vmul.f32 %v2147_v32, %v2110_v45  ;;  %v1434_v45 = vadd.f32 %v3555_v44, %v1433_v3 }
0x1c3f   :  { %2169 = vrot.lane.b32.xlu0 %v2149_v50, %s2850_s19 }
0x1c44   :  { %v2164_v49 = vpop.permute.xlu2 %2163 }
0x1c45   :  { %v2166_v35 = vmul.f32 %v2164_v49, %v2130_v16 }
0x1c47   :  { %1242 = vrot.lane.b32.xlu0 %v2798_v36, %s2849_s18  ;;  %2196 = vrot.lane.b32.xlu1 %v2166_v35, %s2850_s19 }
0x1c4c   :  { %v1226_v61 = vpop.permute.xlu2 %1225 }
0x1c4d   :  { %v1228_v1 = vmul.f32 %v1226_v61, %v3540_v0 }
0x1c4f   :  { %1230 = vrot.lane.b32.xlu0 %v1228_v1, %s2849_s18 }
0x1cb1   :  { %v2170_v13 = vpop.permute.xlu0 %2169 }
0x1cb2   :  { %2566 = vmatmul.msk.f32.vlgmr.msra.gmra.mxu0 %vm302_vm9, %v2170_v13 }
0x1cb9   :  { %v2197_v39 = vpop.permute.xlu1 %2196  ;;  %v1243_v2 = vpop.permute.xlu0 %1242 }
0x1cba   :  { %2567 = vmatmul.msk.f32.vlgmr.msra.gmra.mxu1 %vm302_vm9, %v2197_v39  ;;  %v1245_v22 = vmul.f32 %v1243_v2, %v3561_v19 }
0x1cc1   :  { %v1231_v16 = vpop.permute.xlu0 %1230 }
0x1cc2   :  { %v1233_v21 = vadd.f32 %v1231_v16, %v1223_v18 }
0x1d2f   :  { %v2190_v42 = vpop.f32.mrf.mxu0 }
0x1d30   :  { %v2193_v62 = vadd.f32 %v2190_v42, %v1353_v59 }
0x1d32   :  { %2803 = vtanh.f32 %v2193_v62  ;;  %v2568_v34 = vmul.f32 -1.442695, %v2193_v62 }
0x1d37   :  { %v2217_v47 = vpop.f32.mrf.mxu1 }
0x1d38   :  { %v2804_v10 = vpop.eup %2803  ;;  %v2220_v4 = vadd.f32 %v2217_v47, %v1434_v45 }
0x1d39   :  { %2263 = vrot.lane.b32.xlu1 %v2804_v10, %s2849_s18 }
0x1d3a   :  { %2805 = vtanh.f32 %v2220_v4  ;;  %v2569_v25 = vmul.f32 -1.442695, %v2220_v4 }
0x1d3b   :  { %2807 = vtanh.f32 %v1233_v21 }
0x1d3c   :  { %2809 = vpow2.f32 %v2569_v25 }
0x1d40   :  { %v2806_v53 = vpop.eup %2805 }
0x1d41   :  { %1247 = vrot.lane.b32.xlu1 %v1245_v22, %s2849_s18  ;;  %2280 = vrot.lane.b32.xlu2 %v2806_v53, %s2849_s18  ;;  %v2808_v15 = vpop.eup %2807 }
0x1d42   :  { %v2810_v23 = vpop.eup %2809 }
0x1d43   :  { %v2244_v27 = vadd.f32 1.0, %v2810_v23 }
0x1d45   :  { %2811 = vrcp.f32 %v2244_v27  ;;  %v2256_v31 = vand.u32 2147483648, %v2244_v27  ;;  %vm2250_vm13 = vweird.f32 %v2244_v27  ;;  %v2254_v32 = vand.u32 2147483647, %v2244_v27 }
0x1d46   :  { %2813 = vpow2.f32 %v2568_v34 }
0x1d47   :  { %v2257_v63 = vor.u32 1.1754944e-38, %v2256_v31  ;;  %vm2255_vm15 = vcmp.eq.f32.partialorder %v2254_v32, 8.507059e+37 }
0x1d49   :  { %1236 = vrot.lane.b32.xlu1 %v2808_v15, %s2849_s18 }
0x1d4b   :  { %v2812_v28 = vpop.eup %2811 }
0x1d4c   :  { %v2814_v26 = vpop.eup %2813  ;;  %v2246_v17 = vmul.f32 %v2812_v28, %v2244_v27  ;;  %vm2251_vm12 = vweird.f32 %v2812_v28 }
0x1d4d   :  { %v2224_v29 = vadd.f32 1.0, %v2814_v26  ;;  %vm2252_vm14 = vmor %vm2250_vm13, %vm2251_vm12 }
0x1d4e   :  { %v2247_v30 = vsub.f32 1.0, %v2246_v17 }
0x1d4f   :  { %2815 = vrcp.f32 %v2224_v29  ;;  %v2236_v12 = vand.u32 2147483648, %v2224_v29  ;;  %vm2230_vm1 = vweird.f32 %v2224_v29  ;;  %v2234_v58 = vand.u32 2147483647, %v2224_v29 }
0x1d50   :  { %v2248_v11 = vmul.f32 %v2812_v28, %v2247_v30 }
0x1d51   :  { %v2237_v1 = vor.u32 1.1754944e-38, %v2236_v12  ;;  %vm2235_vm3 = vcmp.eq.f32.partialorder %v2234_v58, 8.507059e+37 }
0x1d52   :  { %v2249_v20 = vadd.f32 %v2812_v28, %v2248_v11 }
0x1d54   :  { %v2253_v50 = vsel %vm2252_vm14, %v2812_v28, %v2249_v20 }
0x1d55   :  { %v2816_v56 = vpop.eup %2815  ;;  %v2258_v49 = vsel %vm2255_vm15, %v2257_v63, %v2253_v50  ;;  %vm2476_vm15 = vcmask 15360  }
0x1d56   :  { %v2226_v33 = vmul.f32 %v2816_v56, %v2224_v29  ;;  %vm2231_vm0 = vweird.f32 %v2816_v56  ;;  %v2278_v38 = vmul.f32 %v2258_v49, %v3522_v24 }
0x1d57   :  { %vm2232_vm2 = vmor %vm2230_vm1, %vm2231_vm0 }
0x1d58   :  { %v2227_v36 = vsub.f32 1.0, %v2226_v33 }
0x1d5a   :  { %v2228_v37 = vmul.f32 %v2816_v56, %v2227_v36 }
0x1d5c   :  { %v2229_v8 = vadd.f32 %v2816_v56, %v2228_v37 }
0x1d5e   :  { %v2233_v61 = vsel %vm2232_vm2, %v2816_v56, %v2229_v8 }
0x1d5f   :  { %v2238_v13 = vsel %vm2235_vm3, %v2237_v1, %v2233_v61 }
0x1d60   :  { %v2261_v60 = vmul.f32 %v2238_v13, %v3517_v46 }
0x1d9b   :  { %v2281_v35 = vpop.permute.xlu2 %2280 }
0x1d9c   :  { %v2283_v6 = vmul.f32 %v2281_v35, %v2258_v49 }
0x1d9e   :  { %2285 = vrot.lane.b32.xlu0 %v2283_v6, %s2849_s18 }
0x1dab   :  { %v2264_v39 = vpop.permute.xlu1 %2263 }
0x1dac   :  { %v2266_v41 = vmul.f32 %v2264_v39, %v2238_v13 }
0x1dae   :  { %2268 = vrot.lane.b32.xlu2 %v2266_v41, %s2849_s18 }
0x1db3   :  { %v1248_v52 = vpop.permute.xlu1 %1247 }
0x1db4   :  { %v1250_v48 = vadd.f32 %v1248_v52, %v1240_v43 }
0x1db6   :  { %2817 = vtanh.f32 %v1250_v48 }
0x1dbb   :  { %v1237_v40 = vpop.permute.xlu1 %1236 }
0x1dbc   :  { %v2818_v51 = vpop.eup %2817  ;;  %v1239_v59 = vmul.f32 %v1237_v40, %v3540_v0 }
0x1dbd   :  { %1253 = vrot.lane.b32.xlu2 %v2818_v51, %s2849_s18 }
0x1dc5   :  { %1258 = vrot.lane.b32.xlu2 %v1239_v59, %s2850_s19 }
0x1e08   :  { %v2269_v42 = vpop.permute.xlu2 %2268 }
0x1e09   :  { %v3575_v62 = vadd.f32 %v2269_v42, %v2261_v60 }
0x1e0b   :  { %2819 = vtanh.f32 %v3575_v62 }
0x1e10   :  { %v2286_v2 = vpop.permute.xlu0 %2285 }
0x1e11   :  { %v2820_v3 = vpop.eup %2819  ;;  %v3579_v5 = vadd.f32 %v2286_v2, %v2278_v38 }
0x1e12   :  { %2274 = vrot.lane.b32.xlu0 %v2820_v3, %s2849_s18  ;;  %v2427_v3 = vld [vmem:[%s3638_s14 + $0x18] sm:$0xff] }
0x1e13   :  { %2821 = vtanh.f32 %v3579_v5  ;;  %2449 = vmatpush.msra.mxu0 %v2427_v3 }
0x1e17   :  { %v1254_v0 = vpop.permute.xlu2 %1253 }
0x1e18   :  { %v1256_v45 = vmul.f32 %v1254_v0, %v3561_v19  ;;  %v2424_v0 = vld [vmem:[%s3638_s14] sm:$0xff] }
0x1e19   :  { %v2822_v9 = vpop.eup %2821 }
0x1e1a   :  { %2291 = vrot.lane.b32.xlu1 %v2822_v9, %s2849_s18  ;;  %1264 = vrot.lane.b32.xlu0 %v1256_v45, %s2850_s19 }
0x1e1f   :  { %v1259_v46 = vpop.permute.xlu2 %1258 }
0x1e20   :  { %1262 = vst.msk [vmem:[#allocation4 + $0x38] sm:$0xff] %vm302_vm9, %v1259_v46 }
0x1e27   :  { %v1276_v24 = vld [vmem:[#allocation4 + $0x38] sm:$0xff] }
0x1e28   :  { %2535 = vmatmul.msk.f32.gmra.mxu2 %vm302_vm9, %v1276_v24 }
0x1e84   :  { %v2275_v47 = vpop.permute.xlu0 %2274 }
0x1e85   :  { %v2277_v10 = vmul.f32 %v2275_v47, %v2238_v13 }
0x1e87   :  { %2297 = vrot.lane.b32.xlu1 %v2277_v10, %s2850_s19 }
0x1e8c   :  { %v2292_v55 = vpop.permute.xlu1 %2291  ;;  %v1265_v4 = vpop.permute.xlu0 %1264 }
0x1e8d   :  { %v2294_v14 = vmul.f32 %v2292_v55, %v2258_v49  ;;  %1268 = vst.msk [vmem:[#allocation5 + $0x38] sm:$0xff] %vm302_vm9, %v1265_v4  ;;  %v2582_v55 = vld [vmem:[%s3639_s15] ss:$0 sm:$0xff] }
0x1e8f   :  { %2324 = vrot.lane.b32.xlu2 %v2294_v14, %s2850_s19 }
0x1e94   :  { %v1284_v7 = vld [vmem:[#allocation5 + $0x38] sm:$0xff] }
0x1e95   :  { %2543 = vmatmul.msk.f32.gmra.mxu3 %vm302_vm9, %v1284_v7 }
0x1eab   :  { %v1355_v15 = vpop.f32.mrf.mxu2 }
0x1eac   :  { %v1356_v25 = vadd.f32 %v3549_v54, %v1355_v15 }
0x1ee9   :  { %v2325_v16 = vpop.permute.xlu2 %2324 }
0x1eea   :  { %2571 = vmatmul.msk.f32.vlgmr.msrb.gmra.mxu1 %vm302_vm9, %v2325_v16 }
0x1ef9   :  { %v2298_v57 = vpop.permute.xlu1 %2297 }
0x1efa   :  { %2570 = vmatmul.msk.f32.vlgmr.msrb.gmra.mxu0 %vm302_vm9, %v2298_v57 }
0x1f18   :  { %v1436_v18 = vpop.f32.mrf.mxu3 }
0x1f19   :  { %v1437_v19 = vadd.f32 %v3555_v44, %v1436_v18 }
0x1f67   :  { %v2345_v21 = vpop.f32.mrf.mxu1 }
0x1f68   :  { %v2348_v22 = vadd.f32 %v2345_v21, %v1437_v19 }
0x1f6a   :  { %2823 = vtanh.f32 %v2348_v22  ;;  %v2573_v28 = vmul.f32 -1.442695, %v2348_v22 }
0x1f70   :  { %v2824_v53 = vpop.eup %2823 }
0x1f71   :  { %2408 = vrot.lane.b32.xlu1 %v2824_v53, %s2849_s18 }
0x1f77   :  { %v2318_v23 = vpop.f32.mrf.mxu0 }
0x1f78   :  { %v2321_v27 = vadd.f32 %v2318_v23, %v1356_v25 }
0x1f7a   :  { %2825 = vtanh.f32 %v2321_v27  ;;  %v2572_v44 = vmul.f32 -1.442695, %v2321_v27 }
0x1f7b   :  { %2827 = vpow2.f32 %v2573_v28 }
0x1f80   :  { %v2826_v34 = vpop.eup %2825 }
0x1f81   :  { %2391 = vrot.lane.b32.xlu0 %v2826_v34, %s2849_s18  ;;  %v2828_v26 = vpop.eup %2827 }
0x1f82   :  { %v2372_v17 = vadd.f32 1.0, %v2828_v26 }
0x1f84   :  { %2829 = vrcp.f32 %v2372_v17  ;;  %v2384_v50 = vand.u32 2147483648, %v2372_v17  ;;  %vm2378_vm5 = vweird.f32 %v2372_v17  ;;  %v2382_v33 = vand.u32 2147483647, %v2372_v17 }
0x1f85   :  { %2831 = vpow2.f32 %v2572_v44 }
0x1f86   :  { %v2385_v35 = vor.u32 1.1754944e-38, %v2384_v50  ;;  %vm2383_vm7 = vcmp.eq.f32.partialorder %v2382_v33, 8.507059e+37 }
0x1f8a   :  { %v2830_v29 = vpop.eup %2829 }
0x1f8b   :  { %v2832_v30 = vpop.eup %2831  ;;  %v2374_v11 = vmul.f32 %v2830_v29, %v2372_v17  ;;  %vm2379_vm4 = vweird.f32 %v2830_v29 }
0x1f8c   :  { %v2352_v20 = vadd.f32 1.0, %v2832_v30  ;;  %vm2380_vm6 = vmor %vm2378_vm5, %vm2379_vm4 }
0x1f8d   :  { %v2375_v56 = vsub.f32 1.0, %v2374_v11 }
0x1f8e   :  { %2833 = vrcp.f32 %v2352_v20  ;;  %v2364_v61 = vand.u32 2147483648, %v2352_v20  ;;  %vm2358_vm10 = vweird.f32 %v2352_v20  ;;  %v2362_v1 = vand.u32 2147483647, %v2352_v20 }
0x1f8f   :  { %v2376_v54 = vmul.f32 %v2830_v29, %v2375_v56 }
0x1f90   :  { %v2365_v39 = vor.u32 1.1754944e-38, %v2364_v61  ;;  %vm2363_vm12 = vcmp.eq.f32.partialorder %v2362_v1, 8.507059e+37 }
0x1f91   :  { %v2377_v31 = vadd.f32 %v2830_v29, %v2376_v54 }
0x1f93   :  { %v2381_v63 = vsel %vm2380_vm6, %v2830_v29, %v2377_v31 }
0x1f94   :  { %v2834_v32 = vpop.eup %2833  ;;  %v2386_v36 = vsel %vm2383_vm7, %v2385_v35, %v2381_v63 }
0x1f95   :  { %v2354_v49 = vmul.f32 %v2834_v32, %v2352_v20  ;;  %vm2359_vm8 = vweird.f32 %v2834_v32  ;;  %v2406_v59 = vmul.f32 %v2386_v36, %v3579_v5  ;;  %v2425_v5 = vld [vmem:[%s3638_s14 + $0x8] sm:$0xff] }
0x1f96   :  { %vm2360_vm11 = vmor %vm2358_vm10, %vm2359_vm8 }
0x1f97   :  { %v2355_v8 = vsub.f32 1.0, %v2354_v49 }
0x1f99   :  { %v2356_v12 = vmul.f32 %v2834_v32, %v2355_v8 }
0x1f9b   :  { %v2357_v58 = vadd.f32 %v2834_v32, %v2356_v12 }
0x1f9d   :  { %v2361_v13 = vsel %vm2360_vm11, %v2834_v32, %v2357_v58 }
0x1f9e   :  { %v2366_v43 = vsel %vm2363_vm12, %v2365_v39, %v2361_v13 }
0x1f9f   :  { %v2389_v48 = vmul.f32 %v2366_v43, %v3575_v62  ;;  %v2426_v62 = vld [vmem:[%s3638_s14 + $0x10] sm:$0xff] }
0x1fa0   :  { %2450 = vmatpush.msra.mxu0 %v2426_v62 }
0x1fa2   :  { %2451 = vmatpush.msra.mxu0 %v2425_v5 }
0x1fa4   :  { %2452 = vmatpush.msra.mxu0 %v2424_v0 }
0x1fe3   :  { %v2409_v6 = vpop.permute.xlu1 %2408 }
0x1fe4   :  { %v2411_v37 = vmul.f32 %v2409_v6, %v2386_v36 }
0x1fe6   :  { %2413 = vrot.lane.b32.xlu0 %v2411_v37, %s2849_s18 }
0x1ff3   :  { %v2392_v41 = vpop.permute.xlu0 %2391 }
0x1ff4   :  { %v2394_v52 = vmul.f32 %v2392_v41, %v2366_v43 }
0x1ff6   :  { %2396 = vrot.lane.b32.xlu2 %v2394_v52, %s2849_s18 }
0x2050   :  { %v2397_v51 = vpop.permute.xlu2 %2396 }
0x2051   :  { %v2399_v40 = vadd.f32 %v2397_v51, %v2389_v48 }
0x2053   :  { %2835 = vtanh.f32 %v2399_v40 }
0x2058   :  { %v2414_v60 = vpop.permute.xlu0 %2413 }
0x2059   :  { %v2836_v42 = vpop.eup %2835  ;;  %v2416_v38 = vadd.f32 %v2414_v60, %v2406_v59 }
0x205a   :  { %2402 = vrot.lane.b32.xlu1 %v2836_v42, %s2849_s18 }
0x205b   :  { %2837 = vtanh.f32 %v2416_v38 }
0x2061   :  { %v2838_v2 = vpop.eup %2837 }
0x2062   :  { %2419 = vrot.lane.b32.xlu2 %v2838_v2, %s2849_s18 }
0x20bc   :  { %v2420_v45 = vpop.permute.xlu2 %2419 }
0x20bd   :  { %v2422_v46 = vmul.f32 %v2420_v45, %v2386_v36 }
0x20cc   :  { %v2403_v9 = vpop.permute.xlu1 %2402 }
0x20cd   :  { %v2405_v24 = vmul.f32 %v2403_v9, %v2366_v43 }
0x20cf   :  { %v2423_v47 = vmul.f32 %v2422_v46, %v2405_v24 }
0x20d1   :  { %2433 = vrot.lane.b32.xlu0 %v2423_v47, %s2850_s19 }
0x2143   :  { %v2434_v10 = vpop.permute.xlu0 %2433 }
0x2144   :  { %2574 = vmatmul.msk.f32.vlgmr.msra.gmra.mxu0 %vm302_vm9, %v2434_v10 }
0x21c1   :  { %v2454_v4 = vpop.f32.mrf.mxu0 }
0x21c2   :  { %v2455_v14 = vadd.f32 %v2582_v55, %v2454_v4 }
0x21c4   :  { %v2575_v7 = vmul.f32 -1.442695, %v2455_v14 }
0x21c6   :  { %2839 = vpow2.f32 %v2575_v7 }
0x21cc   :  { %v2840_v16 = vpop.eup %2839 }
0x21cd   :  { %v2460_v57 = vadd.f32 1.0, %v2840_v16 }
0x21cf   :  { %2841 = vrcp.f32 %v2460_v57  ;;  %v2472_v22 = vand.u32 2147483648, %v2460_v57  ;;  %v2470_v15 = vand.u32 2147483647, %v2460_v57  ;;  %vm2466_vm9 = vweird.f32 %v2460_v57 }
0x21d1   :  { %v2473_v23 = vor.u32 1.1754944e-38, %v2472_v22  ;;  %vm2471_vm0 = vcmp.eq.f32.partialorder %v2470_v15, 8.507059e+37 }
0x21d5   :  { %v2842_v18 = vpop.eup %2841 }
0x21d6   :  { %v2462_v19 = vmul.f32 %v2842_v18, %v2460_v57  ;;  %vm2467_vm13 = vweird.f32 %v2842_v18 }
0x21d7   :  { %vm2468_vm14 = vmor %vm2466_vm9, %vm2467_vm13 }
0x21d8   :  { %v2463_v21 = vsub.f32 1.0, %v2462_v19 }
0x21da   :  { %v2464_v53 = vmul.f32 %v2842_v18, %v2463_v21 }
0x21dc   :  { %v2465_v25 = vadd.f32 %v2842_v18, %v2464_v53 }
0x21de   :  { %v2469_v27 = vsel %vm2468_vm14, %v2842_v18, %v2465_v25 }
0x21df   :  { %v2474_v34 = vsel %vm2471_vm0, %v2473_v23, %v2469_v27 }
0x21e0   :  { %2477 = vst.msk [vmem:[%s3640_s16] sm:$0xff] %vm2476_vm15, %v2474_v34 }

</bundles_post_ra>
